<compile_context>
chip_gen: v7x
topology: tpu7x:2x2x1
jax: 0.10.0
libtpu: 0.0.40
codegen_flags: <defaults>
</compile_context>

<pallas_src>
import jax
import jax.numpy as jnp
from jax.experimental import pallas as pl
from jax.experimental.pallas import tpu as pltpu

LEAKY_SLOPE = 0.01  # PyTorch default negative_slope


def _leaky_relu(x):
    # max(x, 0.01*x): one vmul + one vmax on the VPU.
    return jnp.maximum(x, LEAKY_SLOPE * x)


def _full_spec(a):
    nd = a.ndim
    return pl.BlockSpec(a.shape, lambda n, _nd=nd: (0,) * _nd)


def _flat_w(w):
    # HWIO (3,3,cin,cout) -> im2col weight (9*cin, cout), bf16 MXU operand.
    # Row ordering (kh, kw, cin) matches the in-kernel patch concatenation.
    return w.reshape(9 * w.shape[2], w.shape[3]).astype(jnp.bfloat16)


def _block_diag_w(w_a, w_b):
    # (3,3,ci_a,co_a) + (3,3,ci_b,co_b) -> (3,3,ci_a+ci_b,co_a+co_b) block-diag.
    ci_a, co_a = w_a.shape[2], w_a.shape[3]
    ci_b, co_b = w_b.shape[2], w_b.shape[3]
    top = jnp.concatenate([w_a, jnp.zeros((3, 3, ci_a, co_b), w_a.dtype)], axis=3)
    bot = jnp.concatenate([jnp.zeros((3, 3, ci_b, co_a), w_b.dtype), w_b], axis=3)
    return jnp.concatenate([top, bot], axis=2)


def realnvp_permute_forward(transf, const, params, parity=False):
    """transf / const: NCHW float32.  Returns (y_nchw, const_nchw, logdet[N, W])."""
    if parity:
        transf, const = const, transf
    t_nhwc = jnp.transpose(transf, (0, 2, 3, 1)).astype(jnp.float32)
    c_nhwc = jnp.transpose(const, (0, 2, 3, 1)).astype(jnp.float32)
    N, H, W, C = t_nhwc.shape
    HW = H * W

    ws1, bs1, ws2, bs2, ws3, bs3 = params["s"]
    wt1, bt1, wt2, bt2, wt3, bt3 = params["t"]
    Hd = ws1.shape[-1]
    Hd2 = 2 * Hd

    # Fused weights (s-block first, then t-block).
    w1f = jnp.concatenate([_flat_w(ws1), _flat_w(wt1)], axis=1)       # (9C,   2Hd)
    b1f = jnp.concatenate([bs1, bt1], axis=1).astype(jnp.float32)     # (1,    2Hd)
    w2f = _flat_w(_block_diag_w(ws2, wt2))                            # (18Hd, 2Hd)
    b2f = jnp.concatenate([bs2, bt2], axis=1).astype(jnp.float32)     # (1,    2Hd)
    w3f = _flat_w(_block_diag_w(ws3, wt3))                            # (18Hd, 2C)
    b3f = jnp.concatenate([bs3, bt3], axis=1).astype(jnp.float32)     # (1,    2C)

    def kernel(transf_ref, const_ref,
               w1_ref, b1_ref, w2_ref, b2_ref, w3_ref, b3_ref,
               y_ref, ld_ref,
               pad_in, pad_hid):

        def zero_border(pad):
            cp = pad.shape[2]
            zr = jnp.zeros((1, W + 2, cp), jnp.float32)
            zc = jnp.zeros((H, 1, cp), jnp.float32)
            pad[0:1, :, :] = zr
            pad[H + 1:H + 2, :, :] = zr
            pad[1:H + 1, 0:1, :] = zc
            pad[1:H + 1, W + 1:W + 2, :] = zc

        # Only the 1-element border needs zeroing; the interior is fully
        # overwritten.  Done unconditionally every step so per-core scratch
        # under megacore ("parallel") sharding is always valid.
        zero_border(pad_in)
        zero_border(pad_hid)

        pad_in[1:H + 1, 1:W + 1, :] = const_ref[0]

        def conv(pad, cin, w_ref, b_ref):
            # im2col: one (HW, 9*cin) @ (9*cin, cout) MXU matmul per layer,
            # bf16 operands (cast per-slice, before the lane concat),
            # f32 accumulation, f32 bias add.
            cols = [pad[kh:kh + H, kw:kw + W, :].reshape(HW, cin).astype(jnp.bfloat16)
                    for kh in range(3) for kw in range(3)]
            patches = jnp.concatenate(cols, axis=-1)
            return jnp.dot(patches, w_ref[...],
                           preferred_element_type=jnp.float32) + b_ref[...]

        # Layer 1: s-net and t-net fused along Cout (both read pad_in).
        h = _leaky_relu(conv(pad_in, C, w1_ref, b1_ref))              # (HW, 2Hd)

        # Layer 2: block-diagonal fused weights (s-channels | t-channels).
        pad_hid[1:H + 1, 1:W + 1, :] = h.reshape(H, W, Hd2)
        h = _leaky_relu(conv(pad_hid, Hd2, w2_ref, b2_ref))           # (HW, 2Hd)

        # Layer 3: block-diagonal fused weights -> (HW, 2C) = [s_pre | t].
        pad_hid[1:H + 1, 1:W + 1, :] = h.reshape(H, W, Hd2)
        o = conv(pad_hid, Hd2, w3_ref, b3_ref)                        # (HW, 2C)

        s = jnp.tanh(o[:, :C])
        t = o[:, C:]

        # coupling:  y = transf * exp(s) + t
        y = transf_ref[0].reshape(HW, C) * jnp.exp(s) + t
        y_ref[...] = y.reshape(1, H, W, C)

        # PyTorch: s is NCHW, returned term is s.sum((1, 2)) -> (N, W).
        # In NHWC that is a sum over (H, C).
        ld_ref[...] = jnp.sum(s.reshape(H, W, C), axis=(0, 2)).reshape(1, 1, W)

    img_spec = pl.BlockSpec((1, H, W, C), lambda n: (n, 0, 0, 0))
    weights = [w1f, b1f, w2f, b2f, w3f, b3f]

    y_nhwc, logdet3 = pl.pallas_call(
        kernel,
        out_shape=(jax.ShapeDtypeStruct((N, H, W, C), jnp.float32),
                   jax.ShapeDtypeStruct((N, 1, W), jnp.float32)),
        grid_spec=pltpu.PrefetchScalarGridSpec(
            num_scalar_prefetch=0,
            grid=(N,),
            in_specs=[img_spec, img_spec] + [_full_spec(a) for a in weights],
            out_specs=(pl.BlockSpec((1, H, W, C), lambda n: (n, 0, 0, 0)),
                       pl.BlockSpec((1, 1, W), lambda n: (n, 0, 0))),
            scratch_shapes=[pltpu.VMEM((H + 2, W + 2, C), jnp.float32),
                            pltpu.VMEM((H + 2, W + 2, Hd2), jnp.float32)]),
        compiler_params=pltpu.CompilerParams(
            dimension_semantics=("parallel",)),
    )(t_nhwc, c_nhwc, *weights)

    y = jnp.transpose(y_nhwc, (0, 3, 1, 2))
    return y, const, logdet3.reshape(N, W)


def init_params(key, in_channels, hidden_size):
    """Deterministic synthetic weights for the two Conv2dRect nets (HWIO layout)."""
    def conv_init(k, cin, cout):
        kw, kb = jax.random.split(k)
        scale = 1.0 / jnp.sqrt(9.0 * cin)
        w = jax.random.normal(kw, (3, 3, cin, cout), jnp.float32) * scale
        b = jax.random.normal(kb, (1, cout), jnp.float32) * 0.01
        return w, b

    keys = jax.random.split(key, 6)
    s = conv_init(keys[0], in_channels, hidden_size) + \
        conv_init(keys[1], hidden_size, hidden_size) + \
        conv_init(keys[2], hidden_size, in_channels)
    t = conv_init(keys[3], in_channels, hidden_size) + \
        conv_init(keys[4], hidden_size, hidden_size) + \
        conv_init(keys[5], hidden_size, in_channels)
    return {"s": s, "t": t}


def ref_forward(transf, const, params, parity=False):
    """Pure-JAX f32 reference matching the PyTorch module semantics."""
    if parity:
        transf, const = const, transf
    t_nhwc = jnp.transpose(transf, (0, 2, 3, 1))
    c_nhwc = jnp.transpose(const, (0, 2, 3, 1))

    def conv(x, w, b):
        y = jax.lax.conv_general_dilated(
            x, w, (1, 1), 'SAME',
            dimension_numbers=('NHWC', 'HWIO', 'NHWC'))
        return y + b.reshape(1, 1, 1, -1)

    def net(x, p, final_tanh):
        w1, b1, w2, b2, w3, b3 = p
        h = _leaky_relu(conv(x, w1, b1))
        h = _leaky_relu(conv(h, w2, b2))
        o = conv(h, w3, b3)
        return jnp.tanh(o) if final_tanh else o

    s = net(c_nhwc, params["s"], True)
    t = net(c_nhwc, params["t"], False)
    y_nhwc = t_nhwc * jnp.exp(s) + t
    y = jnp.transpose(y_nhwc, (0, 3, 1, 2))
    logdet = jnp.sum(s, axis=(1, 3))        # == NCHW sum((1, 2)) -> (N, W)
    return y, const, logdet


if __name__ == "__main__":
    key = jax.random.PRNGKey(0)
    k1, k2, k3 = jax.random.split(key, 3)
    N, C, H, W, HID = 2, 4, 16, 16, 32

    transf = jax.random.normal(k1, (N, C, H, W), jnp.float32)
    const = jax.random.normal(k2, (N, C, H, W), jnp.float32)
    params = init_params(k3, C, HID)

    y, c_out, logdet = realnvp_permute_forward(transf, const, params, parity=False)
    jax.block_until_ready((y, c_out, logdet))

    # Exact f32 reference (module semantics).
    y_ref, c_ref, ld_ref = ref_forward(transf, const, params, parity=False)

    # Reference with weights rounded to bf16 (isolates the kernel's MXU dtype).
    def _round_w(p):
        return tuple(a.astype(jnp.bfloat16).astype(jnp.float32) if a.ndim == 4 else a
                     for a in p)
    params_q = {"s": _round_w(params["s"]), "t": _round_w(params["t"])}
    y_q, _, ld_q = ref_forward(transf, const, params_q, parity=False)

    assert y.shape == (N, C, H, W) and logdet.shape == (N, W)
    assert bool(jnp.all(jnp.isfinite(y))) and bool(jnp.all(jnp.isfinite(logdet)))
    assert float(jnp.max(jnp.abs(c_out - c_ref))) == 0.0
    # vs exact f32 reference (difference dominated by bf16 MXU operands)
    assert float(jnp.max(jnp.abs(y - y_ref))) < 1.5e-1
    assert float(jnp.max(jnp.abs(logdet - ld_ref))) < 7e-1
    # vs bf16-weight reference (only activation/patch rounding remains)
    assert float(jnp.max(jnp.abs(y - y_q))) < 8e-2
    assert float(jnp.max(jnp.abs(logdet - ld_q))) < 3e-1

    print("KERNEL_OK")
</pallas_src>

<mosaic_0001>
module attributes {stable_mosaic.version = 11 : i64} {
  func.func @kernel(%arg0: i32, %arg1: memref<1x16x16x4xf32, #tpu.memory_space<vmem>>, %arg2: memref<1x16x16x4xf32, #tpu.memory_space<vmem>>, %arg3: memref<36x64xbf16, #tpu.memory_space<vmem>>, %arg4: memref<1x64xf32, #tpu.memory_space<vmem>>, %arg5: memref<576x64xbf16, #tpu.memory_space<vmem>>, %arg6: memref<1x64xf32, #tpu.memory_space<vmem>>, %arg7: memref<576x8xbf16, #tpu.memory_space<vmem>>, %arg8: memref<1x8xf32, #tpu.memory_space<vmem>>, %arg9: memref<1x16x16x4xf32, #tpu.memory_space<vmem>>, %arg10: memref<1x1x16xf32, #tpu.memory_space<vmem>>, %arg11: memref<18x18x4xf32, #tpu.memory_space<vmem>>, %arg12: memref<18x18x64xf32, #tpu.memory_space<vmem>>) attributes {dimension_semantics = [#tpu.dimension_semantics<parallel>], iteration_bounds = array<i64: 2>, scalar_prefetch = 0 : i64, scratch_operands = 2 : i64, tpu.core_type = #tpu.core_type<tc>, window_params = [{transform_indices = @transform_0, window_bounds = array<i64: 1, 16, 16, 4>}, {transform_indices = @transform_1, window_bounds = array<i64: 1, 16, 16, 4>}, {pipeline_mode = #tpu.pipeline_mode<synchronous>, transform_indices = @transform_2, window_bounds = array<i64: 36, 64>}, {pipeline_mode = #tpu.pipeline_mode<synchronous>, transform_indices = @transform_3, window_bounds = array<i64: 1, 64>}, {pipeline_mode = #tpu.pipeline_mode<synchronous>, transform_indices = @transform_4, window_bounds = array<i64: 576, 64>}, {pipeline_mode = #tpu.pipeline_mode<synchronous>, transform_indices = @transform_5, window_bounds = array<i64: 1, 64>}, {pipeline_mode = #tpu.pipeline_mode<synchronous>, transform_indices = @transform_6, window_bounds = array<i64: 576, 8>}, {pipeline_mode = #tpu.pipeline_mode<synchronous>, transform_indices = @transform_7, window_bounds = array<i64: 1, 8>}, {transform_indices = @transform_8, window_bounds = array<i64: 1, 16, 16, 4>}, {transform_indices = @transform_9, window_bounds = array<i64: 1, 1, 16>}]} {
    %cst = arith.constant 0.000000e+00 : f32
    %0 = vector.broadcast %cst : f32 to vector<1x18x4xf32>
    %cst_0 = arith.constant 0.000000e+00 : f32
    %1 = vector.broadcast %cst_0 : f32 to vector<16x1x4xf32>
    %c0 = arith.constant 0 : index
    %c0_1 = arith.constant 0 : index
    %c0_2 = arith.constant 0 : index
    %2 = vector.load %arg11[%c0, %c0_1, %c0_2] : memref<18x18x4xf32, #tpu.memory_space<vmem>>, vector<1x18x4xf32>
    tpu.vector_store %arg11[%c0, %c0_1, %c0_2], %0 {strides = array<i32>} : memref<18x18x4xf32, #tpu.memory_space<vmem>>, vector<1x18x4xf32>,
    %c17 = arith.constant 17 : index
    %c0_3 = arith.constant 0 : index
    %c0_4 = arith.constant 0 : index
    %3 = vector.load %arg11[%c17, %c0_3, %c0_4] : memref<18x18x4xf32, #tpu.memory_space<vmem>>, vector<1x18x4xf32>
    tpu.vector_store %arg11[%c17, %c0_3, %c0_4], %0 {strides = array<i32>} : memref<18x18x4xf32, #tpu.memory_space<vmem>>, vector<1x18x4xf32>,
    %c1 = arith.constant 1 : index
    %c0_5 = arith.constant 0 : index
    %c0_6 = arith.constant 0 : index
    %4 = vector.load %arg11[%c1, %c0_5, %c0_6] : memref<18x18x4xf32, #tpu.memory_space<vmem>>, vector<16x1x4xf32>
    tpu.vector_store %arg11[%c1, %c0_5, %c0_6], %1 {strides = array<i32>} : memref<18x18x4xf32, #tpu.memory_space<vmem>>, vector<16x1x4xf32>,
    %c1_7 = arith.constant 1 : index
    %c17_8 = arith.constant 17 : index
    %c0_9 = arith.constant 0 : index
    %5 = vector.load %arg11[%c1_7, %c17_8, %c0_9] : memref<18x18x4xf32, #tpu.memory_space<vmem>>, vector<16x1x4xf32>
    tpu.vector_store %arg11[%c1_7, %c17_8, %c0_9], %1 {strides = array<i32>} : memref<18x18x4xf32, #tpu.memory_space<vmem>>, vector<16x1x4xf32>,
    %cst_10 = arith.constant 0.000000e+00 : f32
    %6 = vector.broadcast %cst_10 : f32 to vector<1x18x64xf32>
    %cst_11 = arith.constant 0.000000e+00 : f32
    %7 = vector.broadcast %cst_11 : f32 to vector<16x1x64xf32>
    %c0_12 = arith.constant 0 : index
    %c0_13 = arith.constant 0 : index
    %c0_14 = arith.constant 0 : index
    %8 = vector.load %arg12[%c0_12, %c0_13, %c0_14] : memref<18x18x64xf32, #tpu.memory_space<vmem>>, vector<1x18x64xf32>
    tpu.vector_store %arg12[%c0_12, %c0_13, %c0_14], %6 {strides = array<i32>} : memref<18x18x64xf32, #tpu.memory_space<vmem>>, vector<1x18x64xf32>,
    %c17_15 = arith.constant 17 : index
    %c0_16 = arith.constant 0 : index
    %c0_17 = arith.constant 0 : index
    %9 = vector.load %arg12[%c17_15, %c0_16, %c0_17] : memref<18x18x64xf32, #tpu.memory_space<vmem>>, vector<1x18x64xf32>
    tpu.vector_store %arg12[%c17_15, %c0_16, %c0_17], %6 {strides = array<i32>} : memref<18x18x64xf32, #tpu.memory_space<vmem>>, vector<1x18x64xf32>,
    %c1_18 = arith.constant 1 : index
    %c0_19 = arith.constant 0 : index
    %c0_20 = arith.constant 0 : index
    %10 = vector.load %arg12[%c1_18, %c0_19, %c0_20] : memref<18x18x64xf32, #tpu.memory_space<vmem>>, vector<16x1x64xf32>
    tpu.vector_store %arg12[%c1_18, %c0_19, %c0_20], %7 {strides = array<i32>} : memref<18x18x64xf32, #tpu.memory_space<vmem>>, vector<16x1x64xf32>,
    %c1_21 = arith.constant 1 : index
    %c17_22 = arith.constant 17 : index
    %c0_23 = arith.constant 0 : index
    %11 = vector.load %arg12[%c1_21, %c17_22, %c0_23] : memref<18x18x64xf32, #tpu.memory_space<vmem>>, vector<16x1x64xf32>
    tpu.vector_store %arg12[%c1_21, %c17_22, %c0_23], %7 {strides = array<i32>} : memref<18x18x64xf32, #tpu.memory_space<vmem>>, vector<16x1x64xf32>,
    %c0_24 = arith.constant 0 : index
    %c0_25 = arith.constant 0 : index
    %c0_26 = arith.constant 0 : index
    %c0_27 = arith.constant 0 : index
    %12 = vector.load %arg2[%c0_24, %c0_25, %c0_26, %c0_27] : memref<1x16x16x4xf32, #tpu.memory_space<vmem>>, vector<1x16x16x4xf32>
    %13 = vector.shape_cast %12 : vector<1x16x16x4xf32> to vector<16x16x4xf32>
    %c1_28 = arith.constant 1 : index
    %c1_29 = arith.constant 1 : index
    %c0_30 = arith.constant 0 : index
    %14 = vector.load %arg11[%c1_28, %c1_29, %c0_30] : memref<18x18x4xf32, #tpu.memory_space<vmem>>, vector<16x16x4xf32>
    tpu.vector_store %arg11[%c1_28, %c1_29, %c0_30], %13 {strides = array<i32>} : memref<18x18x4xf32, #tpu.memory_space<vmem>>, vector<16x16x4xf32>,
    %c0_31 = arith.constant 0 : index
    %c0_32 = arith.constant 0 : index
    %c0_33 = arith.constant 0 : index
    %15 = vector.load %arg11[%c0_31, %c0_32, %c0_33] : memref<18x18x4xf32, #tpu.memory_space<vmem>>, vector<16x16x4xf32>
    %16 = vector.shape_cast %15 : vector<16x16x4xf32> to vector<256x4xf32>
    %17 = arith.truncf %16 : vector<256x4xf32> to vector<256x4xbf16>
    %c0_34 = arith.constant 0 : index
    %c1_35 = arith.constant 1 : index
    %c0_36 = arith.constant 0 : index
    %18 = vector.load %arg11[%c0_34, %c1_35, %c0_36] : memref<18x18x4xf32, #tpu.memory_space<vmem>>, vector<16x16x4xf32>
    %19 = vector.shape_cast %18 : vector<16x16x4xf32> to vector<256x4xf32>
    %20 = arith.truncf %19 : vector<256x4xf32> to vector<256x4xbf16>
    %c0_37 = arith.constant 0 : index
    %c2 = arith.constant 2 : index
    %c0_38 = arith.constant 0 : index
    %21 = vector.load %arg11[%c0_37, %c2, %c0_38] : memref<18x18x4xf32, #tpu.memory_space<vmem>>, vector<16x16x4xf32>
    %22 = vector.shape_cast %21 : vector<16x16x4xf32> to vector<256x4xf32>
    %23 = arith.truncf %22 : vector<256x4xf32> to vector<256x4xbf16>
    %c1_39 = arith.constant 1 : index
    %c0_40 = arith.constant 0 : index
    %c0_41 = arith.constant 0 : index
    %24 = vector.load %arg11[%c1_39, %c0_40, %c0_41] : memref<18x18x4xf32, #tpu.memory_space<vmem>>, vector<16x16x4xf32>
    %25 = vector.shape_cast %24 : vector<16x16x4xf32> to vector<256x4xf32>
    %26 = arith.truncf %25 : vector<256x4xf32> to vector<256x4xbf16>
    %c1_42 = arith.constant 1 : index
    %c1_43 = arith.constant 1 : index
    %c0_44 = arith.constant 0 : index
    %27 = vector.load %arg11[%c1_42, %c1_43, %c0_44] : memref<18x18x4xf32, #tpu.memory_space<vmem>>, vector<16x16x4xf32>
    %28 = vector.shape_cast %27 : vector<16x16x4xf32> to vector<256x4xf32>
    %29 = arith.truncf %28 : vector<256x4xf32> to vector<256x4xbf16>
    %c1_45 = arith.constant 1 : index
    %c2_46 = arith.constant 2 : index
    %c0_47 = arith.constant 0 : index
    %30 = vector.load %arg11[%c1_45, %c2_46, %c0_47] : memref<18x18x4xf32, #tpu.memory_space<vmem>>, vector<16x16x4xf32>
    %31 = vector.shape_cast %30 : vector<16x16x4xf32> to vector<256x4xf32>
    %32 = arith.truncf %31 : vector<256x4xf32> to vector<256x4xbf16>
    %c2_48 = arith.constant 2 : index
    %c0_49 = arith.constant 0 : index
    %c0_50 = arith.constant 0 : index
    %33 = vector.load %arg11[%c2_48, %c0_49, %c0_50] : memref<18x18x4xf32, #tpu.memory_space<vmem>>, vector<16x16x4xf32>
    %34 = vector.shape_cast %33 : vector<16x16x4xf32> to vector<256x4xf32>
    %35 = arith.truncf %34 : vector<256x4xf32> to vector<256x4xbf16>
    %c2_51 = arith.constant 2 : index
    %c1_52 = arith.constant 1 : index
    %c0_53 = arith.constant 0 : index
    %36 = vector.load %arg11[%c2_51, %c1_52, %c0_53] : memref<18x18x4xf32, #tpu.memory_space<vmem>>, vector<16x16x4xf32>
    %37 = vector.shape_cast %36 : vector<16x16x4xf32> to vector<256x4xf32>
    %38 = arith.truncf %37 : vector<256x4xf32> to vector<256x4xbf16>
    %c2_54 = arith.constant 2 : index
    %c2_55 = arith.constant 2 : index
    %c0_56 = arith.constant 0 : index
    %39 = vector.load %arg11[%c2_54, %c2_55, %c0_56] : memref<18x18x4xf32, #tpu.memory_space<vmem>>, vector<16x16x4xf32>
    %40 = vector.shape_cast %39 : vector<16x16x4xf32> to vector<256x4xf32>
    %41 = arith.truncf %40 : vector<256x4xf32> to vector<256x4xbf16>
    %42 = tpu.concatenate %17, %20, %23, %26, %29, %32, %35, %38, %41 in 1 : vector<256x4xbf16>, vector<256x4xbf16>, vector<256x4xbf16>, vector<256x4xbf16>, vector<256x4xbf16>, vector<256x4xbf16>, vector<256x4xbf16>, vector<256x4xbf16>, vector<256x4xbf16> -> vector<256x36xbf16>
    %c0_57 = arith.constant 0 : index
    %c0_58 = arith.constant 0 : index
    %43 = vector.load %arg3[%c0_57, %c0_58] : memref<36x64xbf16, #tpu.memory_space<vmem>>, vector<36x64xbf16>
    %cst_59 = arith.constant dense<0.000000e+00> : vector<256x64xf32>
    %44 = tpu.matmul %42, %43, %cst_59 {dimension_numbers = #tpu.dot_dimension_numbers<[1], [0], [0], [1], [0, 0, 1, 1], [], []>} : vector<256x36xbf16>, vector<36x64xbf16>, vector<256x64xf32> -> vector<256x64xf32>
    %c0_60 = arith.constant 0 : index
    %c0_61 = arith.constant 0 : index
    %45 = vector.load %arg4[%c0_60, %c0_61] : memref<1x64xf32, #tpu.memory_space<vmem>>, vector<1x64xf32>
    %46 = vector.broadcast %45 : vector<1x64xf32> to vector<256x64xf32>
    %47 = arith.addf %44, %46 : vector<256x64xf32>
    %cst_62 = arith.constant 0.00999999977 : f32
    %48 = vector.broadcast %cst_62 : f32 to vector<256x64xf32>
    %49 = arith.mulf %48, %47 : vector<256x64xf32>
    %50 = arith.maximumf %47, %49 : vector<256x64xf32>
    %51 = vector.shape_cast %50 : vector<256x64xf32> to vector<16x16x64xf32>
    %c1_63 = arith.constant 1 : index
    %c1_64 = arith.constant 1 : index
    %c0_65 = arith.constant 0 : index
    %52 = vector.load %arg12[%c1_63, %c1_64, %c0_65] : memref<18x18x64xf32, #tpu.memory_space<vmem>>, vector<16x16x64xf32>
    tpu.vector_store %arg12[%c1_63, %c1_64, %c0_65], %51 {strides = array<i32>} : memref<18x18x64xf32, #tpu.memory_space<vmem>>, vector<16x16x64xf32>,
    %c0_66 = arith.constant 0 : index
    %c0_67 = arith.constant 0 : index
    %c0_68 = arith.constant 0 : index
    %53 = vector.load %arg12[%c0_66, %c0_67, %c0_68] : memref<18x18x64xf32, #tpu.memory_space<vmem>>, vector<16x16x64xf32>
    %54 = vector.shape_cast %53 : vector<16x16x64xf32> to vector<256x64xf32>
    %55 = arith.truncf %54 : vector<256x64xf32> to vector<256x64xbf16>
    %c0_69 = arith.constant 0 : index
    %c1_70 = arith.constant 1 : index
    %c0_71 = arith.constant 0 : index
    %56 = vector.load %arg12[%c0_69, %c1_70, %c0_71] : memref<18x18x64xf32, #tpu.memory_space<vmem>>, vector<16x16x64xf32>
    %57 = vector.shape_cast %56 : vector<16x16x64xf32> to vector<256x64xf32>
    %58 = arith.truncf %57 : vector<256x64xf32> to vector<256x64xbf16>
    %c0_72 = arith.constant 0 : index
    %c2_73 = arith.constant 2 : index
    %c0_74 = arith.constant 0 : index
    %59 = vector.load %arg12[%c0_72, %c2_73, %c0_74] : memref<18x18x64xf32, #tpu.memory_space<vmem>>, vector<16x16x64xf32>
    %60 = vector.shape_cast %59 : vector<16x16x64xf32> to vector<256x64xf32>
    %61 = arith.truncf %60 : vector<256x64xf32> to vector<256x64xbf16>
    %c1_75 = arith.constant 1 : index
    %c0_76 = arith.constant 0 : index
    %c0_77 = arith.constant 0 : index
    %62 = vector.load %arg12[%c1_75, %c0_76, %c0_77] : memref<18x18x64xf32, #tpu.memory_space<vmem>>, vector<16x16x64xf32>
    %63 = vector.shape_cast %62 : vector<16x16x64xf32> to vector<256x64xf32>
    %64 = arith.truncf %63 : vector<256x64xf32> to vector<256x64xbf16>
    %c1_78 = arith.constant 1 : index
    %c1_79 = arith.constant 1 : index
    %c0_80 = arith.constant 0 : index
    %65 = vector.load %arg12[%c1_78, %c1_79, %c0_80] : memref<18x18x64xf32, #tpu.memory_space<vmem>>, vector<16x16x64xf32>
    %66 = vector.shape_cast %65 : vector<16x16x64xf32> to vector<256x64xf32>
    %67 = arith.truncf %66 : vector<256x64xf32> to vector<256x64xbf16>
    %c1_81 = arith.constant 1 : index
    %c2_82 = arith.constant 2 : index
    %c0_83 = arith.constant 0 : index
    %68 = vector.load %arg12[%c1_81, %c2_82, %c0_83] : memref<18x18x64xf32, #tpu.memory_space<vmem>>, vector<16x16x64xf32>
    %69 = vector.shape_cast %68 : vector<16x16x64xf32> to vector<256x64xf32>
    %70 = arith.truncf %69 : vector<256x64xf32> to vector<256x64xbf16>
    %c2_84 = arith.constant 2 : index
    %c0_85 = arith.constant 0 : index
    %c0_86 = arith.constant 0 : index
    %71 = vector.load %arg12[%c2_84, %c0_85, %c0_86] : memref<18x18x64xf32, #tpu.memory_space<vmem>>, vector<16x16x64xf32>
    %72 = vector.shape_cast %71 : vector<16x16x64xf32> to vector<256x64xf32>
    %73 = arith.truncf %72 : vector<256x64xf32> to vector<256x64xbf16>
    %c2_87 = arith.constant 2 : index
    %c1_88 = arith.constant 1 : index
    %c0_89 = arith.constant 0 : index
    %74 = vector.load %arg12[%c2_87, %c1_88, %c0_89] : memref<18x18x64xf32, #tpu.memory_space<vmem>>, vector<16x16x64xf32>
    %75 = vector.shape_cast %74 : vector<16x16x64xf32> to vector<256x64xf32>
    %76 = arith.truncf %75 : vector<256x64xf32> to vector<256x64xbf16>
    %c2_90 = arith.constant 2 : index
    %c2_91 = arith.constant 2 : index
    %c0_92 = arith.constant 0 : index
    %77 = vector.load %arg12[%c2_90, %c2_91, %c0_92] : memref<18x18x64xf32, #tpu.memory_space<vmem>>, vector<16x16x64xf32>
    %78 = vector.shape_cast %77 : vector<16x16x64xf32> to vector<256x64xf32>
    %79 = arith.truncf %78 : vector<256x64xf32> to vector<256x64xbf16>
    %80 = tpu.concatenate %55, %58, %61, %64, %67, %70, %73, %76, %79 in 1 : vector<256x64xbf16>, vector<256x64xbf16>, vector<256x64xbf16>, vector<256x64xbf16>, vector<256x64xbf16>, vector<256x64xbf16>, vector<256x64xbf16>, vector<256x64xbf16>, vector<256x64xbf16> -> vector<256x576xbf16>
    %c0_93 = arith.constant 0 : index
    %c0_94 = arith.constant 0 : index
    %81 = vector.load %arg5[%c0_93, %c0_94] : memref<576x64xbf16, #tpu.memory_space<vmem>>, vector<576x64xbf16>
    %cst_95 = arith.constant dense<0.000000e+00> : vector<256x64xf32>
    %82 = tpu.matmul %80, %81, %cst_95 {dimension_numbers = #tpu.dot_dimension_numbers<[1], [0], [0], [1], [0, 0, 1, 1], [], []>} : vector<256x576xbf16>, vector<576x64xbf16>, vector<256x64xf32> -> vector<256x64xf32>
    %c0_96 = arith.constant 0 : index
    %c0_97 = arith.constant 0 : index
    %83 = vector.load %arg6[%c0_96, %c0_97] : memref<1x64xf32, #tpu.memory_space<vmem>>, vector<1x64xf32>
    %84 = vector.broadcast %83 : vector<1x64xf32> to vector<256x64xf32>
    %85 = arith.addf %82, %84 : vector<256x64xf32>
    %cst_98 = arith.constant 0.00999999977 : f32
    %86 = vector.broadcast %cst_98 : f32 to vector<256x64xf32>
    %87 = arith.mulf %86, %85 : vector<256x64xf32>
    %88 = arith.maximumf %85, %87 : vector<256x64xf32>
    %89 = vector.shape_cast %88 : vector<256x64xf32> to vector<16x16x64xf32>
    %c1_99 = arith.constant 1 : index
    %c1_100 = arith.constant 1 : index
    %c0_101 = arith.constant 0 : index
    %90 = vector.load %arg12[%c1_99, %c1_100, %c0_101] : memref<18x18x64xf32, #tpu.memory_space<vmem>>, vector<16x16x64xf32>
    tpu.vector_store %arg12[%c1_99, %c1_100, %c0_101], %89 {strides = array<i32>} : memref<18x18x64xf32, #tpu.memory_space<vmem>>, vector<16x16x64xf32>,
    %c0_102 = arith.constant 0 : index
    %c0_103 = arith.constant 0 : index
    %c0_104 = arith.constant 0 : index
    %91 = vector.load %arg12[%c0_102, %c0_103, %c0_104] : memref<18x18x64xf32, #tpu.memory_space<vmem>>, vector<16x16x64xf32>
    %92 = vector.shape_cast %91 : vector<16x16x64xf32> to vector<256x64xf32>
    %93 = arith.truncf %92 : vector<256x64xf32> to vector<256x64xbf16>
    %c0_105 = arith.constant 0 : index
    %c1_106 = arith.constant 1 : index
    %c0_107 = arith.constant 0 : index
    %94 = vector.load %arg12[%c0_105, %c1_106, %c0_107] : memref<18x18x64xf32, #tpu.memory_space<vmem>>, vector<16x16x64xf32>
    %95 = vector.shape_cast %94 : vector<16x16x64xf32> to vector<256x64xf32>
    %96 = arith.truncf %95 : vector<256x64xf32> to vector<256x64xbf16>
    %c0_108 = arith.constant 0 : index
    %c2_109 = arith.constant 2 : index
    %c0_110 = arith.constant 0 : index
    %97 = vector.load %arg12[%c0_108, %c2_109, %c0_110] : memref<18x18x64xf32, #tpu.memory_space<vmem>>, vector<16x16x64xf32>
    %98 = vector.shape_cast %97 : vector<16x16x64xf32> to vector<256x64xf32>
    %99 = arith.truncf %98 : vector<256x64xf32> to vector<256x64xbf16>
    %c1_111 = arith.constant 1 : index
    %c0_112 = arith.constant 0 : index
    %c0_113 = arith.constant 0 : index
    %100 = vector.load %arg12[%c1_111, %c0_112, %c0_113] : memref<18x18x64xf32, #tpu.memory_space<vmem>>, vector<16x16x64xf32>
    %101 = vector.shape_cast %100 : vector<16x16x64xf32> to vector<256x64xf32>
    %102 = arith.truncf %101 : vector<256x64xf32> to vector<256x64xbf16>
    %c1_114 = arith.constant 1 : index
    %c1_115 = arith.constant 1 : index
    %c0_116 = arith.constant 0 : index
    %103 = vector.load %arg12[%c1_114, %c1_115, %c0_116] : memref<18x18x64xf32, #tpu.memory_space<vmem>>, vector<16x16x64xf32>
    %104 = vector.shape_cast %103 : vector<16x16x64xf32> to vector<256x64xf32>
    %105 = arith.truncf %104 : vector<256x64xf32> to vector<256x64xbf16>
    %c1_117 = arith.constant 1 : index
    %c2_118 = arith.constant 2 : index
    %c0_119 = arith.constant 0 : index
    %106 = vector.load %arg12[%c1_117, %c2_118, %c0_119] : memref<18x18x64xf32, #tpu.memory_space<vmem>>, vector<16x16x64xf32>
    %107 = vector.shape_cast %106 : vector<16x16x64xf32> to vector<256x64xf32>
    %108 = arith.truncf %107 : vector<256x64xf32> to vector<256x64xbf16>
    %c2_120 = arith.constant 2 : index
    %c0_121 = arith.constant 0 : index
    %c0_122 = arith.constant 0 : index
    %109 = vector.load %arg12[%c2_120, %c0_121, %c0_122] : memref<18x18x64xf32, #tpu.memory_space<vmem>>, vector<16x16x64xf32>
    %110 = vector.shape_cast %109 : vector<16x16x64xf32> to vector<256x64xf32>
    %111 = arith.truncf %110 : vector<256x64xf32> to vector<256x64xbf16>
    %c2_123 = arith.constant 2 : index
    %c1_124 = arith.constant 1 : index
    %c0_125 = arith.constant 0 : index
    %112 = vector.load %arg12[%c2_123, %c1_124, %c0_125] : memref<18x18x64xf32, #tpu.memory_space<vmem>>, vector<16x16x64xf32>
    %113 = vector.shape_cast %112 : vector<16x16x64xf32> to vector<256x64xf32>
    %114 = arith.truncf %113 : vector<256x64xf32> to vector<256x64xbf16>
    %c2_126 = arith.constant 2 : index
    %c2_127 = arith.constant 2 : index
    %c0_128 = arith.constant 0 : index
    %115 = vector.load %arg12[%c2_126, %c2_127, %c0_128] : memref<18x18x64xf32, #tpu.memory_space<vmem>>, vector<16x16x64xf32>
    %116 = vector.shape_cast %115 : vector<16x16x64xf32> to vector<256x64xf32>
    %117 = arith.truncf %116 : vector<256x64xf32> to vector<256x64xbf16>
    %118 = tpu.concatenate %93, %96, %99, %102, %105, %108, %111, %114, %117 in 1 : vector<256x64xbf16>, vector<256x64xbf16>, vector<256x64xbf16>, vector<256x64xbf16>, vector<256x64xbf16>, vector<256x64xbf16>, vector<256x64xbf16>, vector<256x64xbf16>, vector<256x64xbf16> -> vector<256x576xbf16>
    %c0_129 = arith.constant 0 : index
    %c0_130 = arith.constant 0 : index
    %119 = vector.load %arg7[%c0_129, %c0_130] : memref<576x8xbf16, #tpu.memory_space<vmem>>, vector<576x8xbf16>
    %cst_131 = arith.constant dense<0.000000e+00> : vector<256x8xf32>
    %120 = tpu.matmul %118, %119, %cst_131 {dimension_numbers = #tpu.dot_dimension_numbers<[1], [0], [0], [1], [0, 0, 1, 1], [], []>} : vector<256x576xbf16>, vector<576x8xbf16>, vector<256x8xf32> -> vector<256x8xf32>
    %c0_132 = arith.constant 0 : index
    %c0_133 = arith.constant 0 : index
    %121 = vector.load %arg8[%c0_132, %c0_133] : memref<1x8xf32, #tpu.memory_space<vmem>>, vector<1x8xf32>
    %122 = vector.broadcast %121 : vector<1x8xf32> to vector<256x8xf32>
    %123 = arith.addf %120, %122 : vector<256x8xf32>
    %124 = vector.extract_strided_slice %123 {offsets = [0, 0], sizes = [256, 4], strides = [1, 1]} : vector<256x8xf32> to vector<256x4xf32>
    %125 = math.tanh %124 : vector<256x4xf32>
    %126 = vector.extract_strided_slice %123 {offsets = [0, 4], sizes = [256, 4], strides = [1, 1]} : vector<256x8xf32> to vector<256x4xf32>
    %c0_134 = arith.constant 0 : index
    %c0_135 = arith.constant 0 : index
    %c0_136 = arith.constant 0 : index
    %c0_137 = arith.constant 0 : index
    %127 = vector.load %arg1[%c0_134, %c0_135, %c0_136, %c0_137] : memref<1x16x16x4xf32, #tpu.memory_space<vmem>>, vector<1x16x16x4xf32>
    %128 = vector.shape_cast %127 : vector<1x16x16x4xf32> to vector<16x16x4xf32>
    %129 = vector.shape_cast %128 : vector<16x16x4xf32> to vector<256x4xf32>
    %130 = math.exp %125 : vector<256x4xf32>
    %131 = arith.mulf %129, %130 : vector<256x4xf32>
    %132 = arith.addf %131, %126 : vector<256x4xf32>
    %133 = vector.shape_cast %132 : vector<256x4xf32> to vector<1x16x16x4xf32>
    %c0_138 = arith.constant 0 : index
    %c0_139 = arith.constant 0 : index
    %c0_140 = arith.constant 0 : index
    %c0_141 = arith.constant 0 : index
    %134 = vector.load %arg9[%c0_138, %c0_139, %c0_140, %c0_141] : memref<1x16x16x4xf32, #tpu.memory_space<vmem>>, vector<1x16x16x4xf32>
    tpu.vector_store %arg9[%c0_138, %c0_139, %c0_140, %c0_141], %133 {strides = array<i32>} : memref<1x16x16x4xf32, #tpu.memory_space<vmem>>, vector<1x16x16x4xf32>,
    %135 = vector.shape_cast %125 : vector<256x4xf32> to vector<16x16x4xf32>
    %cst_142 = arith.constant dense<0.000000e+00> : vector<16xf32>
    %136 = vector.multi_reduction <add>, %135, %cst_142 [0, 2] : vector<16x16x4xf32> to vector<16xf32>
    %137 = vector.shape_cast %136 : vector<16xf32> to vector<1x1x16xf32>
    %c0_143 = arith.constant 0 : index
    %c0_144 = arith.constant 0 : index
    %c0_145 = arith.constant 0 : index
    %138 = vector.load %arg10[%c0_143, %c0_144, %c0_145] : memref<1x1x16xf32, #tpu.memory_space<vmem>>, vector<1x1x16xf32>
    tpu.vector_store %arg10[%c0_143, %c0_144, %c0_145], %137 {strides = array<i32>} : memref<1x1x16xf32, #tpu.memory_space<vmem>>, vector<1x1x16xf32>,
    return
  }
  func.func @transform_0(%arg0: i32) -> (i32, i32, i32, i32) {
    %c0_i32 = arith.constant 0 : i32
    %c0_i32_0 = arith.constant 0 : i32
    %c0_i32_1 = arith.constant 0 : i32
    %c0_i32_2 = arith.constant 0 : i32
    return %arg0, %c0_i32, %c0_i32_0, %c0_i32_1 : i32, i32, i32, i32
  }
  func.func @transform_1(%arg0: i32) -> (i32, i32, i32, i32) {
    %c0_i32 = arith.constant 0 : i32
    %c0_i32_0 = arith.constant 0 : i32
    %c0_i32_1 = arith.constant 0 : i32
    %c0_i32_2 = arith.constant 0 : i32
    return %arg0, %c0_i32, %c0_i32_0, %c0_i32_1 : i32, i32, i32, i32
  }
  func.func @transform_2(%arg0: i32) -> (i32, i32) {
    %c0_i32 = arith.constant 0 : i32
    %c0_i32_0 = arith.constant 0 : i32
    %c0_i32_1 = arith.constant 0 : i32
    return %c0_i32, %c0_i32_0 : i32, i32
  }
  func.func @transform_3(%arg0: i32) -> (i32, i32) {
    %c0_i32 = arith.constant 0 : i32
    %c0_i32_0 = arith.constant 0 : i32
    %c0_i32_1 = arith.constant 0 : i32
    return %c0_i32, %c0_i32_0 : i32, i32
  }
  func.func @transform_4(%arg0: i32) -> (i32, i32) {
    %c0_i32 = arith.constant 0 : i32
    %c0_i32_0 = arith.constant 0 : i32
    %c0_i32_1 = arith.constant 0 : i32
    return %c0_i32, %c0_i32_0 : i32, i32
  }
  func.func @transform_5(%arg0: i32) -> (i32, i32) {
    %c0_i32 = arith.constant 0 : i32
    %c0_i32_0 = arith.constant 0 : i32
    %c0_i32_1 = arith.constant 0 : i32
    return %c0_i32, %c0_i32_0 : i32, i32
  }
  func.func @transform_6(%arg0: i32) -> (i32, i32) {
    %c0_i32 = arith.constant 0 : i32
    %c0_i32_0 = arith.constant 0 : i32
    %c0_i32_1 = arith.constant 0 : i32
    return %c0_i32, %c0_i32_0 : i32, i32
  }
  func.func @transform_7(%arg0: i32) -> (i32, i32) {
    %c0_i32 = arith.constant 0 : i32
    %c0_i32_0 = arith.constant 0 : i32
    %c0_i32_1 = arith.constant 0 : i32
    return %c0_i32, %c0_i32_0 : i32, i32
  }
  func.func @transform_8(%arg0: i32) -> (i32, i32, i32, i32) {
    %c0_i32 = arith.constant 0 : i32
    %c0_i32_0 = arith.constant 0 : i32
    %c0_i32_1 = arith.constant 0 : i32
    %c0_i32_2 = arith.constant 0 : i32
    return %arg0, %c0_i32, %c0_i32_0, %c0_i32_1 : i32, i32, i32, i32
  }
  func.func @transform_9(%arg0: i32) -> (i32, i32, i32) {
    %c0_i32 = arith.constant 0 : i32
    %c0_i32_0 = arith.constant 0 : i32
    %c0_i32_1 = arith.constant 0 : i32
    return %arg0, %c0_i32, %c0_i32_0 : i32, i32, i32
  }
}

</mosaic_0001>

<bundles_post_ra>
// kernel: tpu_custom_call.1
= control target key start
LH: loop header
LB: loop body
LE: loop exit
PB: predicated region body
PF: predicated region fallthrough
CT: control target
= control target key end

     0   :  { %15 = vsyncpa [#allocation5], 0  ;;  %s9546_s0 = inlined_call_operand.vmem [shape: f32[2,16,16,4], index: 0, kind: input, shape index: {}]   ;;  %s9547_s1 = inlined_call_operand.vmem [shape: f32[2,16,16,4], index: 1, kind: input, shape index: {}]   ;;  %s9548_s2 = inlined_call_operand.vmem [shape: bf16[36,64], index: 2, kind: input, shape index: {}]   ;;  %s9549_s3 = inlined_call_operand.vmem [shape: f32[1,64], index: 3, kind: input, shape index: {}]   ;;  %s9550_s4 = inlined_call_operand.vmem [shape: bf16[576,64], index: 4, kind: input, shape index: {}]   ;;  %s9551_s5 = inlined_call_operand.vmem [shape: f32[1,64], index: 5, kind: input, shape index: {}]   ;;  %s9552_s6 = inlined_call_operand.vmem [shape: bf16[576,8], index: 6, kind: input, shape index: {}]   ;;  %s9553_s7 = inlined_call_operand.vmem [shape: f32[1,8], index: 7, kind: input, shape index: {}]   ;;  %s9554_s8 = inlined_call_operand.vmem [shape: f32[2,16,16,4], index: 8, kind: output, shape index: {0}]   ;;  %s9555_s9 = inlined_call_operand.hbm [shape: f32[2,1,16], index: 9, kind: output, shape index: {1}]  }
   0x1   :  { %17 = vsyncpa [#allocation5 + $0x1], 0  ;;  %s7143_s30 = smov 0   ;;  %s7145_s10 = smov 0  }
   0x2   :  { %s7147_s11 = smov 0   ;;  %s7149_s12 = smov 0  }
   0x3 LB: > { %s7164_s13 = sadd.s32 4294967295, %s7079_s12   ;;  %s5989_s14 = sadd.s32 4294967294, %s7079_s12   ;;  %s7079_s12 = sphi %s7149_s12, %s9561_s12   ;;  %s7075_s11 = sphi %s7147_s11, %s9560_s11   ;;  %s7071_s10 = sphi %s7145_s10, %s9559_s10   ;;  %s7067_s30 = sphi %s7143_s30, %s9558_s30  }
   0x4   : > { %s7168_s15 = sadd.s32 1, %s7079_s12   ;;  %s234_s16 = sadd.s32 1, %s7075_s11 }
   0x5   : > { %s231_s17 = ssub.s32 %s7079_s12, %s7168_s15  ;;  %p244_p0 = scmp.ne.s32.totalorder %s7075_s11, %s7071_s10 }
   0x6   : > { %p232_p1 = scmp.eq.s32.totalorder %s231_s17, 0  ;;  %p245_p2 = scmp.eq.s32.totalorder %s7164_s13, 1 }
   0x7   : > { %p250_p3 = scmp.ne.s32.totalorder %s7071_s10, %s7067_s30  ;;  %p251_p4 = scmp.eq.s32.totalorder %s5989_s14, 1 }
   0x8   : > { %s7179_s18 = scalar_select %p232_p1, %s7075_s11, %s234_s16  }
   0x9   : > { %p7181_p5 = por %p245_p2, %p244_p0  ;;  %p7185_p6 = por %p251_p4, %p250_p3 }
   0xa   : > { %p5992_p7 = scmp.ge.s32.totalorder %s7079_s12, 1  ;;  %p303_p8 = scmp.lt.s32.totalorder %s7079_s12, 3 }
   0xc   : > { %p304_p9 = pnand %p5992_p7, %p303_p8 }
   0xd   : > { %vm364_vm0 = vcmask (!%p304_p9), 31744   ;;  %vm367_vm1 = vcmask (!%p304_p9), 25600   ;;  %vm374_vm2 = vcmask (!%p304_p9), 24576   ;;  %v7081_v0 = vmov (!%p304_p9), 0.0   ;;  %p348_p10 = scmp.lt.s32.totalorder (!%p304_p9), %s7164_s13, 1  ;;  %s7082_s26 = smov (!%p304_p9), 8  }
   0xe   : > { %307 = sbr.rel (%p304_p9) target bundleno = 1720 (0x6b8), region = 52  ;;  %365 = vst.msk [vmem:[#allocation2] sm:$0xff] (!%p304_p9), %vm364_vm0, %v7081_v0  ;;  %366 = vst.msk [vmem:[#allocation2 + $0x8] sm:$0xff] (!%p304_p9), %vm364_vm0, %v7081_v0  ;;  %s7083_s27 = smov (!%p304_p9), 4   ;;  %v6814_v49 = vld [vmem:[%s9548_s2] sm:$0xff] (!%p304_p9)   ;;  %v6815_v54 = vld [vmem:[%s9548_s2 + $0x8] sm:$0xff] (!%p304_p9)  }
   0xf   : > { %368 = vst.msk [vmem:[#allocation2 + $0x10] sm:$0x3] (!%p304_p9), %vm367_vm1, %v7081_v0  ;;  %372 = vst.msk [vmem:[#allocation2 + $0x1a8] sm:$0x3] (!%p304_p9), %vm367_vm1, %v7081_v0  ;;  %s7084_s28 = smov (!%p304_p9), 12   ;;  %s7085_s29 = smov (!%p304_p9), 16   ;;  %6638 = vmatprep.subr.bf16.mxu0 (!%p304_p9), %v6814_v49  ;;  %6756 = vmatprep.subr.bf16.mxu1 (!%p304_p9), %v6814_v49 }
  0x10   : > { %370 = vst.msk [vmem:[#allocation2 + $0x198] sm:$0xff] (!%p304_p9), %vm364_vm0, %v7081_v0  ;;  %371 = vst.msk [vmem:[#allocation2 + $0x1a0] sm:$0xff] (!%p304_p9), %vm364_vm0, %v7081_v0  ;;  %s7086_s14 = smov (!%p304_p9), 20   ;;  %v6816_v56 = vld [vmem:[%s9548_s2 + $0x10] ss:$0 sps:$4 sm:$0x33] (!%p304_p9)   ;;  %6639 = vmatpush3.bf16.msra.mxu0 (!%p304_p9), %v6814_v49  ;;  %6759 = vmatpush3.bf16.msra.mxu1 (!%p304_p9), %v6814_v49 }
  0x11   : > { %391 = vst.msk [vmem:[#allocation2 + $0x29] sm:$0x1] (!%p304_p9), %vm374_vm2, %v7081_v0  ;;  %375 = vst.msk [vmem:[#allocation2 + $0x18] sm:$0x1] (!%p304_p9), %vm374_vm2, %v7081_v0  ;;  %vm1670_vm3 = vcmask (!%p304_p9), 1041408   ;;  %6640 = vmatprep.subr.bf16.mxu0 (!%p304_p9), %v6815_v54  ;;  %s7088_s23 = smov (!%p304_p9), 28   ;;  %6757 = vmatprep.subr.bf16.mxu1 (!%p304_p9), %v6815_v54 }
  0x12   : > { %376 = vst.msk [vmem:[#allocation2 + $0x30] sm:$0x1] (!%p304_p9), %vm374_vm2, %v7081_v0  ;;  %377 = vst.msk [vmem:[#allocation2 + $0x48] sm:$0x1] (!%p304_p9), %vm374_vm2, %v7081_v0  ;;  %v1672_v59 = vsel (!%p304_p9), %vm1670_vm3, %v6816_v56, 0  ;;  %s7089_s24 = smov (!%p304_p9), 32  }
  0x13   : > { %378 = vst.msk [vmem:[#allocation2 + $0x60] sm:$0x1] (!%p304_p9), %vm374_vm2, %v7081_v0  ;;  %379 = vst.msk [vmem:[#allocation2 + $0x78] sm:$0x1] (!%p304_p9), %vm374_vm2, %v7081_v0  ;;  %vm1379_vm4 = vcmask (!%p304_p9), 64512   ;;  %vm1412_vm5 = vcmask (!%p304_p9), 97280  }
  0x14   : > { %380 = vst.msk [vmem:[#allocation2 + $0x90] sm:$0x1] (!%p304_p9), %vm374_vm2, %v7081_v0  ;;  %381 = vst.msk [vmem:[#allocation2 + $0xa8] sm:$0x1] (!%p304_p9), %vm374_vm2, %v7081_v0  ;;  %6641 = vmatpush3.bf16.msra.mxu0 (!%p304_p9), %v6815_v54  ;;  %6760 = vmatpush3.bf16.msra.mxu1 (!%p304_p9), %v6815_v54  ;;  %vm1445_vm6 = vcmask (!%p304_p9), 130048   ;;  %vm1478_vm7 = vcmask (!%p304_p9), 162816  }
  0x15   : > { %382 = vst.msk [vmem:[#allocation2 + $0xc0] sm:$0x1] %vm374_vm2, %v7081_v0  ;;  %383 = vst.msk [vmem:[#allocation2 + $0xd8] sm:$0x1] %vm374_vm2, %v7081_v0  ;;  %s349_s21 = scalar_select %p348_p10, %s7164_s13, 1  ;;  %v610_v4 = vld [vmem:[#allocation2 + $0x2] sm:$0xff]  ;;  %6762 = vmatprep.subr.msk.bf16.mxu0 %vm1670_vm3, %v6816_v56  ;;  %6763 = vmatprep.subr.msk.bf16.mxu1 %vm1670_vm3, %v6816_v56 }
  0x16   : > { %384 = vst.msk [vmem:[#allocation2 + $0xf0] sm:$0x1] %vm374_vm2, %v7081_v0  ;;  %385 = vst.msk [vmem:[#allocation2 + $0x108] sm:$0x1] %vm374_vm2, %v7081_v0  ;;  %v611_v5 = vld [vmem:[#allocation2 + $0xa] sm:$0xff]  ;;  %v562_v6 = vld [vmem:[#allocation2 + $0x1] sm:$0xff] }
  0x17   : > { %386 = vst.msk [vmem:[#allocation2 + $0x120] sm:$0x1] %vm374_vm2, %v7081_v0  ;;  %387 = vst.msk [vmem:[#allocation2 + $0x138] sm:$0x1] %vm374_vm2, %v7081_v0  ;;  %s7269_s22 = sshll.u32 %s349_s21, 8  ;;  %v642_v7 = vpack.c.bf16 %v611_v5, %v610_v4  ;;  %v563_v8 = vld [vmem:[#allocation2 + $0x9] sm:$0xff] }
  0x18   : > { %388 = vst.msk [vmem:[#allocation2 + $0x150] sm:$0x1] %vm374_vm2, %v7081_v0  ;;  %389 = vst.msk [vmem:[#allocation2 + $0x168] sm:$0x1] %vm374_vm2, %v7081_v0  ;;  %s7275_s25 = scalar_lea.vmem %s9547_s1, %s7269_s22  ;;  %v594_v11 = vpack.c.bf16 %v563_v8, %v562_v6  ;;  %s7087_s21 = smov 24   ;;  %6643 = vmatpush3.bf16.msra.mxu0 %v1672_v59  ;;  %6761 = vmatpush3.bf16.msra.mxu1 %v1672_v59  ;;  %vm1511_vm8 = vcmask 195584  }
  0x19   : > { %390 = vst.msk [vmem:[#allocation2 + $0x180] sm:$0x1] %vm374_vm2, %v7081_v0  ;;  %392 = vst.msk [vmem:[#allocation2 + $0x41] sm:$0x1] %vm374_vm2, %v7081_v0  ;;  %v450_v1 = vld [vmem:[%s7275_s25] sm:$0xff]  ;;  %v451_v2 = vld [vmem:[%s7275_s25 + $0x8] sm:$0xff]  ;;  %1011 = vrot.lane.b32.xlu1 %v642_v7, %s7082_s26 }
  0x1a   : > { %393 = vst.msk [vmem:[#allocation2 + $0x59] sm:$0x1] %vm374_vm2, %v7081_v0  ;;  %394 = vst.msk [vmem:[#allocation2 + $0x71] sm:$0x1] %vm374_vm2, %v7081_v0  ;;  %v452_v3 = vld [vmem:[%s7275_s25 + $0x10] sm:$0xff]  ;;  %v453_v9 = vld [vmem:[%s7275_s25 + $0x18] sm:$0xff]  ;;  %963 = vrot.lane.b32.xlu0 %v594_v11, %s7083_s27 }
  0x1b   : > { %395 = vst.msk [vmem:[#allocation2 + $0x89] sm:$0x1] %vm374_vm2, %v7081_v0  ;;  %396 = vst.msk [vmem:[#allocation2 + $0xa1] sm:$0x1] %vm374_vm2, %v7081_v0  ;;  %v454_v10 = vld [vmem:[%s7275_s25 + $0x20] sm:$0xff]  ;;  %v455_v12 = vld [vmem:[%s7275_s25 + $0x28] sm:$0xff] }
  0x1c   : > { %397 = vst.msk [vmem:[#allocation2 + $0xb9] sm:$0x1] %vm374_vm2, %v7081_v0  ;;  %398 = vst.msk [vmem:[#allocation2 + $0xd1] sm:$0x1] %vm374_vm2, %v7081_v0  ;;  %v456_v13 = vld [vmem:[%s7275_s25 + $0x30] sm:$0xff]  ;;  %v457_v14 = vld [vmem:[%s7275_s25 + $0x38] sm:$0xff] }
  0x1d   : > { %399 = vst.msk [vmem:[#allocation2 + $0xe9] sm:$0x1] %vm374_vm2, %v7081_v0  ;;  %400 = vst.msk [vmem:[#allocation2 + $0x101] sm:$0x1] %vm374_vm2, %v7081_v0  ;;  %v458_v15 = vld [vmem:[%s7275_s25 + $0x40] sm:$0xff]  ;;  %v459_v16 = vld [vmem:[%s7275_s25 + $0x48] sm:$0xff] }
  0x1e   : > { %401 = vst.msk [vmem:[#allocation2 + $0x119] sm:$0x1] %vm374_vm2, %v7081_v0  ;;  %402 = vst.msk [vmem:[#allocation2 + $0x131] sm:$0x1] %vm374_vm2, %v7081_v0  ;;  %v460_v17 = vld [vmem:[%s7275_s25 + $0x50] sm:$0xff]  ;;  %v461_v18 = vld [vmem:[%s7275_s25 + $0x58] sm:$0xff] }
  0x1f   : > { %403 = vst.msk [vmem:[#allocation2 + $0x149] sm:$0x1] %vm374_vm2, %v7081_v0  ;;  %404 = vst.msk [vmem:[#allocation2 + $0x161] sm:$0x1] %vm374_vm2, %v7081_v0  ;;  %v462_v19 = vld [vmem:[%s7275_s25 + $0x60] sm:$0xff]  ;;  %v463_v20 = vld [vmem:[%s7275_s25 + $0x68] sm:$0xff] }
  0x20   : > { %405 = vst.msk [vmem:[#allocation2 + $0x179] sm:$0x1] %vm374_vm2, %v7081_v0  ;;  %406 = vst.msk [vmem:[#allocation2 + $0x191] sm:$0x1] %vm374_vm2, %v7081_v0  ;;  %v464_v21 = vld [vmem:[%s7275_s25 + $0x70] sm:$0xff]  ;;  %v465_v22 = vld [vmem:[%s7275_s25 + $0x78] sm:$0xff] }
  0x21   : > { %482 = vst.msk [vmem:[#allocation2 + $0x19] sm:$0xff] %vm364_vm0, %v450_v1  ;;  %483 = vst.msk [vmem:[#allocation2 + $0x21] sm:$0xff] %vm364_vm0, %v451_v2  ;;  %v466_v23 = vld [vmem:[%s7275_s25 + $0x80] sm:$0xff]  ;;  %v467_v24 = vld [vmem:[%s7275_s25 + $0x88] sm:$0xff]  ;;  %vm1544_vm9 = vcmask 228352   ;;  %vm1577_vm10 = vcmask 261120  }
  0x22   : > { %484 = vst.msk [vmem:[#allocation2 + $0x31] sm:$0xff] %vm364_vm0, %v452_v3  ;;  %485 = vst.msk [vmem:[#allocation2 + $0x39] sm:$0xff] %vm364_vm0, %v453_v9  ;;  %v468_v50 = vld [vmem:[%s7275_s25 + $0x90] sm:$0xff]  ;;  %v469_v51 = vld [vmem:[%s7275_s25 + $0x98] sm:$0xff]  ;;  %vm1637_vm11 = vcmask 293888   ;;  %vm407_vm12 = vcmask 523264  }
  0x23   : > { %486 = vst.msk [vmem:[#allocation2 + $0x49] sm:$0xff] %vm364_vm0, %v454_v10  ;;  %487 = vst.msk [vmem:[#allocation2 + $0x51] sm:$0xff] %vm364_vm0, %v455_v12  ;;  %v470_v55 = vld [vmem:[%s7275_s25 + $0xa0] sm:$0xff]  ;;  %v471_v57 = vld [vmem:[%s7275_s25 + $0xa8] sm:$0xff]  ;;  %vm410_vm13 = vcmask 517120   ;;  %vm417_vm14 = vcmask 516096  }
  0x24   : > { %488 = vst.msk [vmem:[#allocation2 + $0x61] sm:$0xff] %vm364_vm0, %v456_v13  ;;  %489 = vst.msk [vmem:[#allocation2 + $0x69] sm:$0xff] %vm364_vm0, %v457_v14  ;;  %v472_v62 = vld [vmem:[%s7275_s25 + $0xb0] sm:$0xff]  ;;  %v473_v63 = vld [vmem:[%s7275_s25 + $0xb8] sm:$0xff]  ;;  %s6125_s16 = sshll.u32 %s7164_s13, 4  ;;  %vm5871_vm15 = vcmask 130112  }
  0x25   : > { %490 = vst.msk [vmem:[#allocation2 + $0x79] sm:$0xff] %vm364_vm0, %v458_v15  ;;  %491 = vst.msk [vmem:[#allocation2 + $0x81] sm:$0xff] %vm364_vm0, %v459_v16  ;;  %v474_v7 = vld [vmem:[%s7275_s25 + $0xc0] sm:$0xff]  ;;  %v475_v10 = vld [vmem:[%s7275_s25 + $0xc8] sm:$0xff]  ;;  %vm5874_vm1 = vcmask 122880  }
  0x26   : > { %492 = vst.msk [vmem:[#allocation2 + $0x91] sm:$0xff] %vm364_vm0, %v460_v17  ;;  %493 = vst.msk [vmem:[#allocation2 + $0x99] sm:$0xff] %vm364_vm0, %v461_v18 }
  0x27   : > { %494 = vst.msk [vmem:[#allocation2 + $0xa9] sm:$0xff] %vm364_vm0, %v462_v19  ;;  %495 = vst.msk [vmem:[#allocation2 + $0xb1] sm:$0xff] %vm364_vm0, %v463_v20  ;;  %v476_v19 = vld [vmem:[%s7275_s25 + $0xd0] sm:$0xff]  ;;  %v477_v20 = vld [vmem:[%s7275_s25 + $0xd8] sm:$0xff] }
  0x28   : > { %496 = vst.msk [vmem:[#allocation2 + $0xc1] sm:$0xff] %vm364_vm0, %v464_v21  ;;  %497 = vst.msk [vmem:[#allocation2 + $0xc9] sm:$0xff] %vm364_vm0, %v465_v22  ;;  %v612_v25 = vld [vmem:[#allocation2 + $0x1a] sm:$0xff]  ;;  %v613_v26 = vld [vmem:[#allocation2 + $0x22] sm:$0xff] }
  0x29   : > { %v564_v27 = vld [vmem:[#allocation2 + $0x19] sm:$0xff]  ;;  %498 = vst.msk [vmem:[#allocation2 + $0xd9] sm:$0xff] %vm364_vm0, %v466_v23  ;;  %499 = vst.msk [vmem:[#allocation2 + $0xe1] sm:$0xff] %vm364_vm0, %v467_v24  ;;  %v643_v28 = vpack.c.bf16 %v613_v26, %v612_v25  ;;  %v565_v29 = vld [vmem:[#allocation2 + $0x21] sm:$0xff] }
  0x2a   : > { %v660_v30 = vld [vmem:[#allocation2 + $0x30] sm:$0xff]  ;;  %v658_v31 = vld [vmem:[#allocation2 + $0x18] sm:$0xff]  ;;  %v595_v32 = vpack.c.bf16 %v565_v29, %v564_v27  ;;  %v659_v34 = vld [vmem:[#allocation2 + $0x20] sm:$0xff]  ;;  %500 = vst.msk [vmem:[#allocation2 + $0xf1] sm:$0xff] %vm364_vm0, %v468_v50 }
  0x2b   : > { %v661_v33 = vld [vmem:[#allocation2 + $0x38] sm:$0xff]  ;;  %1013 = vrot.lane.b32.xlu1 %v643_v28, %s7082_s26  ;;  %v7319_v36 = vpack.c.bf16 %v659_v34, %v658_v31  ;;  %v805_v43 = vld [vmem:[#allocation2 + $0x48] sm:$0xff]  ;;  %v806_v44 = vld [vmem:[#allocation2 + $0x50] sm:$0xff]  ;;  %501 = vst.msk [vmem:[#allocation2 + $0xf9] sm:$0xff] %vm364_vm0, %v469_v51 }
  0x2c   : > { %v7316_v35 = vpack.c.bf16 %v661_v33, %v660_v30  ;;  %965 = vrot.lane.b32.xlu0 %v595_v32, %s7083_s27  ;;  %v708_v37 = vld [vmem:[#allocation2 + $0x31] sm:$0xff]  ;;  %v709_v38 = vld [vmem:[#allocation2 + $0x39] sm:$0xff]  ;;  %v7328_v45 = vpack.c.bf16 %v806_v44, %v805_v43  ;;  %v853_v46 = vld [vmem:[#allocation2 + $0x49] sm:$0xff]  ;;  %502 = vst.msk [vmem:[#allocation2 + $0x109] sm:$0xff] %vm364_vm0, %v470_v55 }
  0x2d   : > { %v739_v39 = vpack.c.bf16 %v709_v38, %v708_v37  ;;  %v756_v40 = vld [vmem:[#allocation2 + $0x32] sm:$0xff]  ;;  %v757_v41 = vld [vmem:[#allocation2 + $0x3a] sm:$0xff]  ;;  %v901_v48 = vld [vmem:[#allocation2 + $0x4a] sm:$0xff]  ;;  %503 = vst.msk [vmem:[#allocation2 + $0x111] sm:$0xff] %vm364_vm0, %v471_v57 }
  0x2e   : > { %v787_v42 = vpack.c.bf16 %v757_v41, %v756_v40  ;;  %v854_v47 = vld [vmem:[#allocation2 + $0x51] sm:$0xff]  ;;  %v664_v60 = vld [vmem:[#allocation2 + $0x60] sm:$0xff]  ;;  %v665_v61 = vld [vmem:[#allocation2 + $0x68] sm:$0xff]  ;;  %504 = vst.msk [vmem:[#allocation2 + $0x121] sm:$0xff] %vm364_vm0, %v472_v62 }
  0x2f   : > { %1061 = vrot.lane.b32.xlu1 %v7316_v35, %s7084_s28  ;;  %v884_v52 = vpack.c.bf16 %v854_v47, %v853_v46  ;;  %v902_v53 = vld [vmem:[#allocation2 + $0x52] sm:$0xff]  ;;  %505 = vst.msk [vmem:[#allocation2 + $0x129] sm:$0xff] %vm364_vm0, %v473_v63  ;;  %v712_v1 = vld [vmem:[#allocation2 + $0x61] sm:$0xff]  ;;  %v713_v2 = vld [vmem:[#allocation2 + $0x69] sm:$0xff]  ;;  %v7366_v3 = vpack.c.bf16 %v665_v61, %v664_v60 }
  0x30   : > { %1059 = vrot.lane.b32.xlu0 %v7319_v36, %s7084_s28  ;;  %v932_v58 = vpack.c.bf16 %v902_v53, %v901_v48  ;;  %v760_v4 = vld [vmem:[#allocation2 + $0x62] sm:$0xff]  ;;  %v761_v5 = vld [vmem:[#allocation2 + $0x6a] sm:$0xff]  ;;  %v741_v6 = vpack.c.bf16 %v713_v2, %v712_v1  ;;  %v809_v8 = vld [vmem:[#allocation2 + $0x78] sm:$0xff]  ;;  %506 = vst.msk [vmem:[#allocation2 + $0x139] sm:$0xff] %vm364_vm0, %v474_v7 }
  0x31   : > { %v810_v9 = vld [vmem:[#allocation2 + $0x80] sm:$0xff]  ;;  %v789_v11 = vpack.c.bf16 %v761_v5, %v760_v4  ;;  %507 = vst.msk [vmem:[#allocation2 + $0x141] sm:$0xff] %vm364_vm0, %v475_v10  ;;  %v668_v21 = vld [vmem:[#allocation2 + $0x90] sm:$0xff]  ;;  %v669_v22 = vld [vmem:[#allocation2 + $0x98] sm:$0xff] }
  0x32   : > { %v857_v12 = vld [vmem:[#allocation2 + $0x79] sm:$0xff]  ;;  %v858_v13 = vld [vmem:[#allocation2 + $0x81] sm:$0xff]  ;;  %v7380_v14 = vpack.c.bf16 %v810_v9, %v809_v8  ;;  %508 = vst.msk [vmem:[#allocation2 + $0x151] sm:$0xff] %vm364_vm0, %v476_v19  ;;  %509 = vst.msk [vmem:[#allocation2 + $0x159] sm:$0xff] %vm364_vm0, %v477_v20  ;;  %v7398_v25 = vpack.c.bf16 %v669_v22, %v668_v21 }
  0x33   : > { %1109 = vrot.lane.b32.xlu1 %v739_v39, %s7085_s29  ;;  %v905_v15 = vld [vmem:[#allocation2 + $0x7a] sm:$0xff]  ;;  %v906_v16 = vld [vmem:[#allocation2 + $0x82] sm:$0xff]  ;;  %v886_v17 = vpack.c.bf16 %v858_v13, %v857_v12  ;;  %v716_v23 = vld [vmem:[#allocation2 + $0x91] sm:$0xff]  ;;  %408 = vst.msk [vmem:[#allocation3] sm:$0xff] %vm407_vm12, %v7081_v0 }
  0x34   : > { %1107 = vrot.lane.b32.xlu0 %v595_v32, %s7085_s29  ;;  %v934_v18 = vpack.c.bf16 %v906_v16, %v905_v15  ;;  %v717_v24 = vld [vmem:[#allocation2 + $0x99] sm:$0xff]  ;;  %v813_v30 = vld [vmem:[#allocation2 + $0xa8] sm:$0xff]  ;;  %v814_v31 = vld [vmem:[#allocation2 + $0xb0] sm:$0xff]  ;;  %409 = vst.msk [vmem:[#allocation3 + $0x8] sm:$0xff] %vm407_vm12, %v7081_v0 }
  0x35   : > { %v764_v26 = vld [vmem:[#allocation2 + $0x92] sm:$0xff]  ;;  %v765_v27 = vld [vmem:[#allocation2 + $0x9a] sm:$0xff]  ;;  %v479_v32 = vld [vmem:[%s7275_s25 + $0xe8] sm:$0xff]  ;;  %v7412_v34 = vpack.c.bf16 %v814_v31, %v813_v30  ;;  %413 = vst.msk [vmem:[#allocation3 + $0x198] sm:$0xff] %vm407_vm12, %v7081_v0 }
  0x36   : > { %v478_v29 = vld [vmem:[%s7275_s25 + $0xe0] sm:$0xff]  ;;  %v791_v33 = vpack.c.bf16 %v765_v27, %v764_v26  ;;  %511 = vst.msk [vmem:[#allocation2 + $0x171] sm:$0xff] %vm364_vm0, %v479_v32  ;;  %v861_v37 = vld [vmem:[#allocation2 + $0xa9] sm:$0xff]  ;;  %v862_v38 = vld [vmem:[#allocation2 + $0xb1] sm:$0xff] }
  0x37   : > { %1157 = vrot.lane.b32.xlu1 %v787_v42, %s7086_s14  ;;  %510 = vst.msk [vmem:[#allocation2 + $0x169] sm:$0xff] %vm364_vm0, %v478_v29  ;;  %v909_v40 = vld [vmem:[#allocation2 + $0xaa] sm:$0xff]  ;;  %v910_v41 = vld [vmem:[#allocation2 + $0xb2] sm:$0xff]  ;;  %v672_v46 = vld [vmem:[#allocation2 + $0xc0] sm:$0xff] }
  0x38   : > { %1155 = vrot.lane.b32.xlu0 %v643_v28, %s7086_s14  ;;  %v743_v28 = vpack.c.bf16 %v717_v24, %v716_v23  ;;  %v480_v43 = vld [vmem:[%s7275_s25 + $0xf0] sm:$0xff]  ;;  %v481_v44 = vld [vmem:[%s7275_s25 + $0xf8] sm:$0xff]  ;;  %v673_v47 = vld [vmem:[#allocation2 + $0xc8] sm:$0xff]  ;;  %414 = vst.msk [vmem:[#allocation3 + $0x1a0] sm:$0xff] %vm407_vm12, %v7081_v0  ;;  %s7090_s25 = smov 64  }
  0x39   : > { %512 = vst.msk [vmem:[#allocation2 + $0x181] sm:$0xff] %vm364_vm0, %v480_v43  ;;  %513 = vst.msk [vmem:[#allocation2 + $0x189] sm:$0xff] %vm364_vm0, %v481_v44  ;;  %v7430_v48 = vpack.c.bf16 %v673_v47, %v672_v46  ;;  %v720_v49 = vld [vmem:[#allocation2 + $0xc1] sm:$0xff]  ;;  %v721_v50 = vld [vmem:[#allocation2 + $0xc9] sm:$0xff] }
  0x3a   : > { %v745_v51 = vpack.c.bf16 %v721_v50, %v720_v49  ;;  %v769_v53 = vld [vmem:[#allocation2 + $0xca] sm:$0xff]  ;;  %v817_v55 = vld [vmem:[#allocation2 + $0xd8] sm:$0xff]  ;;  %v818_v56 = vld [vmem:[#allocation2 + $0xe0] sm:$0xff]  ;;  %411 = vst.msk [vmem:[#allocation3 + $0x10] sm:$0x3] %vm410_vm13, %v7081_v0 }
  0x3b   : > { %1205 = vrot.lane.b32.xlu1 %v7328_v45, %s7087_s21  ;;  %v865_v60 = vld [vmem:[#allocation2 + $0xd9] sm:$0xff]  ;;  %v866_v61 = vld [vmem:[#allocation2 + $0xe1] sm:$0xff]  ;;  %v676_v12 = vld [vmem:[#allocation2 + $0xf0] sm:$0xff]  ;;  %415 = vst.msk [vmem:[#allocation3 + $0x1a8] sm:$0x3] %vm410_vm13, %v7081_v0 }
  0x3c   : > { %1203 = vrot.lane.b32.xlu0 %v7316_v35, %s7087_s21  ;;  %v890_v62 = vpack.c.bf16 %v866_v61, %v865_v60  ;;  %v913_v63 = vld [vmem:[#allocation2 + $0xda] sm:$0xff]  ;;  %v914_v1 = vld [vmem:[#allocation2 + $0xe2] sm:$0xff]  ;;  %v724_v19 = vld [vmem:[#allocation2 + $0xf1] sm:$0xff]  ;;  %418 = vst.msk [vmem:[#allocation3 + $0x18] sm:$0x1] %vm417_vm14, %v7081_v0 }
  0x3d   : > { %v7448_v5 = vpack.c.bf16 %v914_v1, %v913_v63  ;;  %v515_v10 = vld [vmem:[#allocation2 + $0x8] sm:$0xff]  ;;  %v677_v13 = vld [vmem:[#allocation2 + $0xf8] sm:$0xff]  ;;  %v822_v44 = vld [vmem:[#allocation2 + $0x110] sm:$0xff]  ;;  %419 = vst.msk [vmem:[#allocation3 + $0x30] sm:$0x1] %vm417_vm14, %v7081_v0 }
  0x3e   : > { %v725_v20 = vld [vmem:[#allocation2 + $0xf9] sm:$0xff]  ;;  %v821_v43 = vld [vmem:[#allocation2 + $0x108] sm:$0xff]  ;;  %420 = vst.msk [vmem:[#allocation3 + $0x48] sm:$0x1] %vm417_vm14, %v7081_v0  ;;  %421 = vst.msk [vmem:[#allocation3 + $0x60] sm:$0x1] %vm417_vm14, %v7081_v0 }
  0x3f   : > { %1253 = vrot.lane.b32.xlu1 %v884_v52, %s7088_s23  ;;  %v747_v26 = vpack.c.bf16 %v725_v20, %v724_v19  ;;  %v773_v29 = vld [vmem:[#allocation2 + $0xfa] sm:$0xff]  ;;  %v917_v61 = vld [vmem:[#allocation2 + $0x10a] sm:$0xff]  ;;  %422 = vst.msk [vmem:[#allocation3 + $0x78] sm:$0x1] %vm417_vm14, %v7081_v0  ;;  %423 = vst.msk [vmem:[#allocation3 + $0x90] sm:$0x1] %vm417_vm14, %v7081_v0 }
  0x40   : > { %1251 = vrot.lane.b32.xlu0 %v739_v39, %s7088_s23  ;;  %424 = vst.msk [vmem:[#allocation3 + $0xa8] sm:$0x1] %vm417_vm14, %v7081_v0  ;;  %425 = vst.msk [vmem:[#allocation3 + $0xc0] sm:$0x1] %vm417_vm14, %v7081_v0 }
  0x41   : > { %426 = vst.msk [vmem:[#allocation3 + $0xd8] sm:$0x1] %vm417_vm14, %v7081_v0  ;;  %427 = vst.msk [vmem:[#allocation3 + $0xf0] sm:$0x1] %vm417_vm14, %v7081_v0 }
  0x42   : > { %428 = vst.msk [vmem:[#allocation3 + $0x108] sm:$0x1] %vm417_vm14, %v7081_v0  ;;  %429 = vst.msk [vmem:[#allocation3 + $0x120] sm:$0x1] %vm417_vm14, %v7081_v0 }
  0x43   : > { %1301 = vrot.lane.b32.xlu1 %v932_v58, %s7089_s24  ;;  %430 = vst.msk [vmem:[#allocation3 + $0x138] sm:$0x1] %vm417_vm14, %v7081_v0  ;;  %431 = vst.msk [vmem:[#allocation3 + $0x150] sm:$0x1] %vm417_vm14, %v7081_v0 }
  0x44   : > { %1299 = vrot.lane.b32.xlu0 %v787_v42, %s7089_s24  ;;  %432 = vst.msk [vmem:[#allocation3 + $0x168] sm:$0x1] %vm417_vm14, %v7081_v0  ;;  %433 = vst.msk [vmem:[#allocation3 + $0x180] sm:$0x1] %vm417_vm14, %v7081_v0 }
  0x45   : > { %434 = vst.msk [vmem:[#allocation3 + $0x29] sm:$0x1] %vm417_vm14, %v7081_v0  ;;  %435 = vst.msk [vmem:[#allocation3 + $0x41] sm:$0x1] %vm417_vm14, %v7081_v0 }
  0x46   : > { %436 = vst.msk [vmem:[#allocation3 + $0x59] sm:$0x1] %vm417_vm14, %v7081_v0  ;;  %437 = vst.msk [vmem:[#allocation3 + $0x71] sm:$0x1] %vm417_vm14, %v7081_v0 }
  0x47   : > { %969 = vrot.lane.b32.xlu1 %v884_v52, %s7083_s27  ;;  %438 = vst.msk [vmem:[#allocation3 + $0x89] sm:$0x1] %vm417_vm14, %v7081_v0  ;;  %439 = vst.msk [vmem:[#allocation3 + $0xa1] sm:$0x1] %vm417_vm14, %v7081_v0 }
  0x48   : > { %967 = vrot.lane.b32.xlu0 %v739_v39, %s7083_s27  ;;  %v888_v39 = vpack.c.bf16 %v862_v38, %v861_v37  ;;  %440 = vst.msk [vmem:[#allocation3 + $0xb9] sm:$0x1] %vm417_vm14, %v7081_v0  ;;  %441 = vst.msk [vmem:[#allocation3 + $0xd1] sm:$0x1] %vm417_vm14, %v7081_v0 }
  0x49   : > { %442 = vst.msk [vmem:[#allocation3 + $0xe9] sm:$0x1] %vm417_vm14, %v7081_v0  ;;  %443 = vst.msk [vmem:[#allocation3 + $0x101] sm:$0x1] %vm417_vm14, %v7081_v0 }
  0x4a   : > { %444 = vst.msk [vmem:[#allocation3 + $0x119] sm:$0x1] %vm417_vm14, %v7081_v0  ;;  %445 = vst.msk [vmem:[#allocation3 + $0x131] sm:$0x1] %vm417_vm14, %v7081_v0 }
  0x4b   : > { %1017 = vrot.lane.b32.xlu1 %v932_v58, %s7082_s26  ;;  %446 = vst.msk [vmem:[#allocation3 + $0x149] sm:$0x1] %vm417_vm14, %v7081_v0  ;;  %447 = vst.msk [vmem:[#allocation3 + $0x161] sm:$0x1] %vm417_vm14, %v7081_v0 }
  0x4c   : > { %1015 = vrot.lane.b32.xlu0 %v787_v42, %s7082_s26  ;;  %v936_v42 = vpack.c.bf16 %v910_v41, %v909_v40  ;;  %448 = vst.msk [vmem:[#allocation3 + $0x179] sm:$0x1] %vm417_vm14, %v7081_v0  ;;  %449 = vst.msk [vmem:[#allocation3 + $0x191] sm:$0x1] %vm417_vm14, %v7081_v0 }
  0x4f   : > { %1065 = vrot.lane.b32.xlu1 %v7366_v3, %s7084_s28 }
  0x50   : > { %1063 = vrot.lane.b32.xlu0 %v7328_v45, %s7084_s28 }
  0x53   : > { %1113 = vrot.lane.b32.xlu1 %v741_v6, %s7085_s29 }
  0x54   : > { %1111 = vrot.lane.b32.xlu0 %v884_v52, %s7085_s29  ;;  %v768_v52 = vld [vmem:[#allocation2 + $0xc2] sm:$0xff] }
  0x55   : > { %v793_v54 = vpack.c.bf16 %v769_v53, %v768_v52 }
  0x57   : > { %1161 = vrot.lane.b32.xlu1 %v789_v11, %s7086_s14 }
  0x58   : > { %1159 = vrot.lane.b32.xlu0 %v932_v58, %s7086_s14  ;;  %v7440_v58 = vpack.c.bf16 %v818_v56, %v817_v55  ;;  %v869_v55 = vld [vmem:[#allocation2 + $0x109] sm:$0xff]  ;;  %v870_v56 = vld [vmem:[#allocation2 + $0x111] sm:$0xff] }
  0x59   : > { %v892_v60 = vpack.c.bf16 %v870_v56, %v869_v55  ;;  %v921_v55 = vld [vmem:[#allocation2 + $0x13a] sm:$0xff]  ;;  %v922_v56 = vld [vmem:[#allocation2 + $0x142] sm:$0xff] }
  0x5b   : > { %1209 = vrot.lane.b32.xlu1 %v7380_v14, %s7087_s21 }
  0x5c   : > { %1207 = vrot.lane.b32.xlu0 %v7366_v3, %s7087_s21 }
  0x5f   : > { %1257 = vrot.lane.b32.xlu1 %v886_v17, %s7088_s23 }
  0x60   : > { %1255 = vrot.lane.b32.xlu0 %v741_v6, %s7088_s23 }
  0x63   : > { %1305 = vrot.lane.b32.xlu1 %v934_v18, %s7089_s24 }
  0x64   : > { %1303 = vrot.lane.b32.xlu0 %v789_v11, %s7089_s24 }
  0x67   : > { %973 = vrot.lane.b32.xlu1 %v886_v17, %s7083_s27 }
  0x68   : > { %971 = vrot.lane.b32.xlu0 %v741_v6, %s7083_s27 }
  0x6b   : > { %1021 = vrot.lane.b32.xlu1 %v934_v18, %s7082_s26 }
  0x6c   : > { %1019 = vrot.lane.b32.xlu0 %v789_v11, %s7082_s26  ;;  %v514_v11 = vld [vmem:[#allocation2] sm:$0xff] }
  0x6d   : > { %v546_v16 = vpack.c.bf16 %v515_v10, %v514_v11 }
  0x6f   : > { %1069 = vrot.lane.b32.xlu1 %v7398_v25, %s7084_s28 }
  0x70   : > { %1067 = vrot.lane.b32.xlu0 %v7380_v14, %s7084_s28 }
  0x73   : > { %1117 = vrot.lane.b32.xlu1 %v743_v28, %s7085_s29 }
  0x74   : > { %1115 = vrot.lane.b32.xlu0 %v886_v17, %s7085_s29 }
  0x77   : > { %1165 = vrot.lane.b32.xlu1 %v791_v33, %s7086_s14 }
  0x78   : > { %1163 = vrot.lane.b32.xlu0 %v934_v18, %s7086_s14  ;;  %v7458_v18 = vpack.c.bf16 %v677_v13, %v676_v12  ;;  %v728_v13 = vld [vmem:[#allocation2 + $0x121] sm:$0xff] }
  0x7b   : > { %1213 = vrot.lane.b32.xlu1 %v7412_v34, %s7087_s21 }
  0x7c   : > { %1211 = vrot.lane.b32.xlu0 %v7398_v25, %s7087_s21 }
  0x7f   : > { %1261 = vrot.lane.b32.xlu1 %v888_v39, %s7088_s23 }
  0x80   : > { %1259 = vrot.lane.b32.xlu0 %v743_v28, %s7088_s23 }
  0x83   : > { %1309 = vrot.lane.b32.xlu1 %v936_v42, %s7089_s24 }
  0x84   : > { %1307 = vrot.lane.b32.xlu0 %v791_v33, %s7089_s24 }
  0x87   : > { %977 = vrot.lane.b32.xlu1 %v888_v39, %s7083_s27 }
  0x88   : > { %975 = vrot.lane.b32.xlu0 %v743_v28, %s7083_s27  ;;  %v772_v28 = vld [vmem:[#allocation2 + $0xf2] sm:$0xff] }
  0x89   : > { %v795_v40 = vpack.c.bf16 %v773_v29, %v772_v28 }
  0x8b   : > { %1025 = vrot.lane.b32.xlu1 %v936_v42, %s7082_s26  ;;  %v1012_v57 = vpop.permute.xlu1 %1011 }
  0x8c   : > { %1023 = vrot.lane.b32.xlu0 %v791_v33, %s7082_s26  ;;  %v964_v59 = vpop.permute.xlu0 %963 }
  0x8d   : > { %v1333_v23 = vsel %vm364_vm0, %v546_v16, %v964_v59 }
  0x8e   : > { %v1381_v30 = vsel %vm1379_vm4, %v1333_v23, %v1012_v57  ;;  %v776_v23 = vld [vmem:[#allocation2 + $0x122] sm:$0xff] }
  0x8f   : > { %1073 = vrot.lane.b32.xlu1 %v7430_v48, %s7084_s28 }
  0x90   : > { %1071 = vrot.lane.b32.xlu0 %v7412_v34, %s7084_s28 }
  0x93   : > { %1121 = vrot.lane.b32.xlu1 %v745_v51, %s7085_s29 }
  0x94   : > { %1119 = vrot.lane.b32.xlu0 %v888_v39, %s7085_s29 }
  0x97   : > { %1169 = vrot.lane.b32.xlu1 %v793_v54, %s7086_s14 }
  0x98   : > { %1167 = vrot.lane.b32.xlu0 %v936_v42, %s7086_s14 }
  0x9b   : > { %1217 = vrot.lane.b32.xlu1 %v7440_v58, %s7087_s21 }
  0x9c   : > { %1215 = vrot.lane.b32.xlu0 %v7430_v48, %s7087_s21 }
  0x9d   : > { %v1014_v2 = vpop.permute.xlu1 %1013 }
  0x9e   : > { %v966_v4 = vpop.permute.xlu0 %965 }
  0x9f   : > { %1265 = vrot.lane.b32.xlu1 %v890_v62, %s7088_s23  ;;  %v1336_v21 = vsel %vm364_vm0, %v7319_v36, %v966_v4 }
  0xa0   : > { %1263 = vrot.lane.b32.xlu0 %v745_v51, %s7088_s23  ;;  %v1383_v27 = vsel %vm1379_vm4, %v1336_v21, %v1014_v2 }
  0xa1   : > { %v1062_v6 = vpop.permute.xlu1 %1061 }
  0xa2   : > { %v1060_v7 = vpop.permute.xlu0 %1059  ;;  %v1416_v36 = vsel %vm1412_vm5, %v1383_v27, %v1062_v6 }
  0xa3   : > { %1313 = vrot.lane.b32.xlu1 %v7448_v5, %s7089_s24  ;;  %v1414_v32 = vsel %vm1412_vm5, %v1381_v30, %v1060_v7 }
  0xa4   : > { %1311 = vrot.lane.b32.xlu0 %v793_v54, %s7089_s24 }
  0xa5   : > { %v1110_v8 = vpop.permute.xlu1 %1109 }
  0xa6   : > { %v1108_v9 = vpop.permute.xlu0 %1107  ;;  %v1449_v33 = vsel %vm1445_vm6, %v1416_v36, %v1110_v8  ;;  %v680_v8 = vld [vmem:[#allocation2 + $0x120] sm:$0xff] }
  0xa7   : > { %981 = vrot.lane.b32.xlu1 %v890_v62, %s7083_s27  ;;  %v1447_v38 = vsel %vm1445_vm6, %v1414_v32, %v1108_v9  ;;  %v681_v9 = vld [vmem:[#allocation2 + $0x128] sm:$0xff] }
  0xa8   : > { %979 = vrot.lane.b32.xlu0 %v745_v51, %s7083_s27  ;;  %v7502_v12 = vpack.c.bf16 %v681_v9, %v680_v8  ;;  %v732_v8 = vld [vmem:[#allocation2 + $0x151] sm:$0xff]  ;;  %v733_v9 = vld [vmem:[#allocation2 + $0x159] sm:$0xff] }
  0xa9   : > { %v1158_v15 = vpop.permute.xlu1 %1157 }
  0xaa   : > { %v1156_v17 = vpop.permute.xlu0 %1155  ;;  %v1482_v39 = vsel %vm1478_vm7, %v1449_v33, %v1158_v15  ;;  %v729_v15 = vld [vmem:[#allocation2 + $0x129] sm:$0xff] }
  0xab   : > { %1029 = vrot.lane.b32.xlu1 %v7448_v5, %s7082_s26  ;;  %v1480_v41 = vsel %vm1478_vm7, %v1447_v38, %v1156_v17  ;;  %v749_v20 = vpack.c.bf16 %v729_v15, %v728_v13  ;;  %v826_v38 = vld [vmem:[#allocation2 + $0x140] sm:$0xff]  ;;  %v751_v15 = vpack.c.bf16 %v733_v9, %v732_v8 }
  0xac   : > { %1027 = vrot.lane.b32.xlu0 %v793_v54, %s7082_s26  ;;  %v7485_v54 = vpack.c.bf16 %v822_v44, %v821_v43 }
  0xad   : > { %v1206_v22 = vpop.permute.xlu1 %1205 }
  0xae   : > { %v1204_v24 = vpop.permute.xlu0 %1203  ;;  %v1515_v42 = vsel %vm1511_vm8, %v1482_v39, %v1206_v22 }
  0xaf   : > { %1077 = vrot.lane.b32.xlu1 %v7458_v18, %s7084_s28  ;;  %v1513_v46 = vsel %vm1511_vm8, %v1480_v41, %v1204_v24  ;;  %v777_v24 = vld [vmem:[#allocation2 + $0x12a] sm:$0xff] }
  0xb0   : > { %1075 = vrot.lane.b32.xlu0 %v7440_v58, %s7084_s28 }
  0xb1   : > { %v1254_v31 = vpop.permute.xlu1 %1253 }
  0xb2   : > { %v1252_v37 = vpop.permute.xlu0 %1251  ;;  %v1548_v47 = vsel %vm1544_vm9, %v1515_v42, %v1254_v31  ;;  %v797_v31 = vpack.c.bf16 %v777_v24, %v776_v23 }
  0xb3   : > { %1125 = vrot.lane.b32.xlu1 %v747_v26, %s7085_s29  ;;  %v1546_v50 = vsel %vm1544_vm9, %v1513_v46, %v1252_v37  ;;  %v825_v37 = vld [vmem:[#allocation2 + $0x138] sm:$0xff] }
  0xb4   : > { %1123 = vrot.lane.b32.xlu0 %v890_v62, %s7085_s29  ;;  %v918_v62 = vld [vmem:[#allocation2 + $0x112] sm:$0xff] }
  0xb5   : > { %v1302_v49 = vpop.permute.xlu1 %1301  ;;  %v940_v2 = vpack.c.bf16 %v918_v62, %v917_v61 }
  0xb6   : > { %v1581_v51 = vsel %vm1577_vm10, %v1548_v47, %v1302_v49  ;;  %v1300_v52 = vpop.permute.xlu0 %1299  ;;  %v7530_v47 = vpack.c.bf16 %v826_v38, %v825_v37  ;;  %v873_v49 = vld [vmem:[#allocation2 + $0x139] sm:$0xff] }
  0xb7   : > { %1173 = vrot.lane.b32.xlu1 %v795_v40, %s7086_s14  ;;  %v1579_v53 = vsel %vm1577_vm10, %v1546_v50, %v1300_v52  ;;  %v874_v50 = vld [vmem:[#allocation2 + $0x141] sm:$0xff] }
  0xb8   : > { %1171 = vrot.lane.b32.xlu0 %v7448_v5, %s7086_s14  ;;  %6644 = vmatprep.mubr.msk.bf16.mxu0 %vm1637_vm11, %v1579_v53  ;;  %v894_v53 = vpack.c.bf16 %v874_v50, %v873_v49  ;;  %v925_v49 = vld [vmem:[#allocation2 + $0x16a] sm:$0xff]  ;;  %v926_v50 = vld [vmem:[#allocation2 + $0x172] sm:$0xff] }
  0xb9   : > { %6645 = vmatmul.mubr.msk.bf16.vlgmr.msra.gmra.mrb[0].mxu0 %vm1637_vm11, %v1581_v51  ;;  %v970_v57 = vpop.permute.xlu1 %969 }
  0xba   : > { %v968_v59 = vpop.permute.xlu0 %967  ;;  %v1342_v19 = vsel %vm364_vm0, %v7328_v45, %v970_v57 }
  0xbb   : > { %1221 = vrot.lane.b32.xlu1 %v7485_v54, %s7087_s21  ;;  %v1339_v21 = vsel %vm364_vm0, %v7316_v35, %v968_v59 }
  0xbc   : > { %1219 = vrot.lane.b32.xlu0 %v7458_v18, %s7087_s21 }
  0xbd   : > { %v1018_v63 = vpop.permute.xlu1 %1017 }
  0xbe   : > { %v1016_v1 = vpop.permute.xlu0 %1015  ;;  %v1387_v22 = vsel %vm1379_vm4, %v1342_v19, %v1018_v63  ;;  %v780_v19 = vld [vmem:[#allocation2 + $0x152] sm:$0xff] }
  0xbf   : > { %1269 = vrot.lane.b32.xlu1 %v892_v60, %s7088_s23 }
  0xc0   : > { %1267 = vrot.lane.b32.xlu0 %v747_v26, %s7088_s23 }
  0xc1   : > { %v1066_v4 = vpop.permute.xlu1 %1065 }
  0xc2   : > { %v1064_v5 = vpop.permute.xlu0 %1063  ;;  %v1420_v27 = vsel %vm1412_vm5, %v1387_v22, %v1066_v4  ;;  %v685_v4 = vld [vmem:[#allocation2 + $0x158] sm:$0xff] }
  0xc3   : > { %1317 = vrot.lane.b32.xlu1 %v940_v2, %s7089_s24 }
  0xc4   : > { %1315 = vrot.lane.b32.xlu0 %v795_v40, %s7089_s24 }
  0xc5   : > { %v1114_v6 = vpop.permute.xlu1 %1113 }
  0xc6   : > { %v1112_v7 = vpop.permute.xlu0 %1111  ;;  %v1453_v29 = vsel %vm1445_vm6, %v1420_v27, %v1114_v6 }
  0xc7   : > { %985 = vrot.lane.b32.xlu1 %v892_v60, %s7083_s27 }
  0xc8   : > { %983 = vrot.lane.b32.xlu0 %v747_v26, %s7083_s27  ;;  %v1385_v26 = vsel %vm1379_vm4, %v1339_v21, %v1016_v1 }
  0xc9   : > { %v1162_v10 = vpop.permute.xlu1 %1161  ;;  %v1418_v45 = vsel %vm1412_vm5, %v1385_v26, %v1064_v5 }
  0xca   : > { %v1160_v11 = vpop.permute.xlu0 %1159  ;;  %v1451_v30 = vsel %vm1445_vm6, %v1418_v45, %v1112_v7  ;;  %v1486_v35 = vsel %vm1478_vm7, %v1453_v29, %v1162_v10 }
  0xcb   : > { %1033 = vrot.lane.b32.xlu1 %v940_v2, %s7082_s26  ;;  %v1484_v32 = vsel %vm1478_vm7, %v1451_v30, %v1160_v11  ;;  %v830_v30 = vld [vmem:[#allocation2 + $0x170] sm:$0xff] }
  0xcc   : > { %1031 = vrot.lane.b32.xlu0 %v795_v40, %s7082_s26 }
  0xcd   : > { %v1210_v16 = vpop.permute.xlu1 %1209 }
  0xce   : > { %v1208_v17 = vpop.permute.xlu0 %1207  ;;  %v1519_v33 = vsel %vm1511_vm8, %v1486_v35, %v1210_v16 }
  0xcf   : > { %1081 = vrot.lane.b32.xlu1 %v7502_v12, %s7084_s28  ;;  %v1517_v39 = vsel %vm1511_vm8, %v1484_v32, %v1208_v17 }
  0xd0   : > { %1079 = vrot.lane.b32.xlu0 %v7485_v54, %s7084_s28 }
  0xd1   : > { %v1258_v28 = vpop.permute.xlu1 %1257 }
  0xd2   : > { %v1256_v36 = vpop.permute.xlu0 %1255  ;;  %v1552_v40 = vsel %vm1544_vm9, %v1519_v33, %v1258_v28 }
  0xd3   : > { %1129 = vrot.lane.b32.xlu1 %v749_v20, %s7085_s29  ;;  %v1550_v42 = vsel %vm1544_vm9, %v1517_v39, %v1256_v36  ;;  %v829_v36 = vld [vmem:[#allocation2 + $0x168] sm:$0xff] }
  0xd4   : > { %1127 = vrot.lane.b32.xlu0 %v892_v60, %s7085_s29  ;;  %v942_v60 = vpack.c.bf16 %v922_v56, %v921_v55 }
  0xd5   : > { %v1306_v41 = vpop.permute.xlu1 %1305 }
  0xd6   : > { %v1585_v43 = vsel %vm1577_vm10, %v1552_v40, %v1306_v41  ;;  %v1304_v44 = vpop.permute.xlu0 %1303  ;;  %v7574_v40 = vpack.c.bf16 %v830_v30, %v829_v36  ;;  %v877_v41 = vld [vmem:[#allocation2 + $0x169] sm:$0xff] }
  0xd7   : > { %v1583_v46 = vsel %vm1577_vm10, %v1550_v42, %v1304_v44  ;;  %1177 = vrot.lane.b32.xlu1 %v797_v31, %s7086_s14  ;;  %v878_v42 = vld [vmem:[#allocation2 + $0x171] sm:$0xff] }
  0xd8   : > { %1175 = vrot.lane.b32.xlu0 %v940_v2, %s7086_s14  ;;  %6648 = vmatprep.mubr.msk.bf16.mxu0 %vm1637_vm11, %v1583_v46  ;;  %v684_v2 = vld [vmem:[#allocation2 + $0x150] sm:$0xff]  ;;  %v7581_v46 = vpack.c.bf16 %v878_v42, %v877_v41  ;;  %v930_v41 = vld [vmem:[#allocation2 + $0x1a2] sm:$0xff] }
  0xd9   : > { %6649 = vmatmul.mubr.msk.bf16.gmra.mrb[4].mxu0 %vm1637_vm11, %v1585_v43  ;;  %v974_v51 = vpop.permute.xlu1 %973  ;;  %v7546_v7 = vpack.c.bf16 %v685_v4, %v684_v2  ;;  %v736_v2 = vld [vmem:[#allocation2 + $0x181] sm:$0xff]  ;;  %v737_v4 = vld [vmem:[#allocation2 + $0x189] sm:$0xff] }
  0xda   : > { %v972_v52 = vpop.permute.xlu0 %971  ;;  %v1348_v13 = vsel %vm364_vm0, %v7380_v14, %v974_v51  ;;  %v7615_v9 = vpack.c.bf16 %v737_v4, %v736_v2 }
  0xdb   : > { %1225 = vrot.lane.b32.xlu1 %v7530_v47, %s7087_s21  ;;  %v1345_v16 = vsel %vm364_vm0, %v7366_v3, %v972_v52 }
  0xdc   : > { %1223 = vrot.lane.b32.xlu0 %v7502_v12, %s7087_s21 }
  0xdd   : > { %v1022_v57 = vpop.permute.xlu1 %1021 }
  0xde   : > { %v1020_v59 = vpop.permute.xlu0 %1019  ;;  %v1391_v17 = vsel %vm1379_vm4, %v1348_v13, %v1022_v57  ;;  %v784_v13 = vld [vmem:[#allocation2 + $0x182] sm:$0xff] }
  0xdf   : > { %1273 = vrot.lane.b32.xlu1 %v894_v53, %s7088_s23  ;;  %v1389_v21 = vsel %vm1379_vm4, %v1345_v16, %v1020_v59 }
  0xe0   : > { %1271 = vrot.lane.b32.xlu0 %v749_v20, %s7088_s23 }
  0xe1   : > { %v1070_v61 = vpop.permute.xlu1 %1069 }
  0xe2   : > { %v1068_v62 = vpop.permute.xlu0 %1067  ;;  %v1424_v22 = vsel %vm1412_vm5, %v1391_v17, %v1070_v61  ;;  %v689_v61 = vld [vmem:[#allocation2 + $0x188] sm:$0xff] }
  0xe3   : > { %1321 = vrot.lane.b32.xlu1 %v942_v60, %s7089_s24  ;;  %v1422_v14 = vsel %vm1412_vm5, %v1389_v21, %v1068_v62 }
  0xe4   : > { %1319 = vrot.lane.b32.xlu0 %v797_v31, %s7089_s24 }
  0xe5   : > { %v1118_v63 = vpop.permute.xlu1 %1117 }
  0xe6   : > { %v1116_v1 = vpop.permute.xlu0 %1115  ;;  %v1457_v24 = vsel %vm1445_vm6, %v1424_v22, %v1118_v63 }
  0xe7   : > { %989 = vrot.lane.b32.xlu1 %v894_v53, %s7083_s27  ;;  %v1455_v27 = vsel %vm1445_vm6, %v1422_v14, %v1116_v1 }
  0xe8   : > { %987 = vrot.lane.b32.xlu0 %v749_v20, %s7083_s27  ;;  %v781_v20 = vld [vmem:[#allocation2 + $0x15a] sm:$0xff] }
  0xe9   : > { %v1166_v5 = vpop.permute.xlu1 %1165  ;;  %v799_v28 = vpack.c.bf16 %v781_v20, %v780_v19 }
  0xea   : > { %v1164_v6 = vpop.permute.xlu0 %1163  ;;  %v1490_v3 = vsel %vm1478_vm7, %v1457_v24, %v1166_v5 }
  0xeb   : > { %1037 = vrot.lane.b32.xlu1 %v942_v60, %s7082_s26  ;;  %v1488_v45 = vsel %vm1478_vm7, %v1455_v27, %v1164_v6  ;;  %v834_v27 = vld [vmem:[#allocation2 + $0x1a0] sm:$0xff] }
  0xec   : > { %1035 = vrot.lane.b32.xlu0 %v797_v31, %s7082_s26 }
  0xed   : > { %v1214_v10 = vpop.permute.xlu1 %1213 }
  0xee   : > { %v1212_v11 = vpop.permute.xlu0 %1211  ;;  %v1523_v29 = vsel %vm1511_vm8, %v1490_v3, %v1214_v10 }
  0xef   : > { %1085 = vrot.lane.b32.xlu1 %v7546_v7, %s7084_s28  ;;  %v1521_v35 = vsel %vm1511_vm8, %v1488_v45, %v1212_v11 }
  0xf0   : > { %1083 = vrot.lane.b32.xlu0 %v7530_v47, %s7084_s28 }
  0xf1   : > { %v1262_v23 = vpop.permute.xlu1 %1261 }
  0xf2   : > { %v1260_v26 = vpop.permute.xlu0 %1259  ;;  %v1556_v31 = vsel %vm1544_vm9, %v1523_v29, %v1262_v23 }
  0xf3   : > { %1133 = vrot.lane.b32.xlu1 %v751_v15, %s7085_s29  ;;  %v1554_v33 = vsel %vm1544_vm9, %v1521_v35, %v1260_v26  ;;  %v833_v26 = vld [vmem:[#allocation2 + $0x198] sm:$0xff] }
  0xf4   : > { %1131 = vrot.lane.b32.xlu0 %v894_v53, %s7085_s29  ;;  %v7587_v53 = vpack.c.bf16 %v926_v50, %v925_v49  ;;  %v850_v35 = vpack.c.bf16 %v834_v27, %v833_v26  ;;  %v1980_v49 = vld [vmem:[#allocation3 + $0x9] sm:$0xff] }
  0xf5   : > { %v1310_v32 = vpop.permute.xlu1 %1309 }
  0xf6   : > { %v1589_v37 = vsel %vm1577_vm10, %v1556_v31, %v1310_v32  ;;  %v1308_v38 = vpop.permute.xlu0 %1307  ;;  %v881_v31 = vld [vmem:[#allocation2 + $0x199] sm:$0xff]  ;;  %v882_v32 = vld [vmem:[#allocation2 + $0x1a1] sm:$0xff] }
  0xf7   : > { %v1587_v39 = vsel %vm1577_vm10, %v1554_v33, %v1308_v38  ;;  %1181 = vrot.lane.b32.xlu1 %v799_v28, %s7086_s14  ;;  %v898_v38 = vpack.c.bf16 %v882_v32, %v881_v31 }
  0xf8   : > { %1179 = vrot.lane.b32.xlu0 %v942_v60, %s7086_s14  ;;  %6652 = vmatprep.mubr.msk.bf16.mxu0 %vm1637_vm11, %v1587_v39  ;;  %v688_v60 = vld [vmem:[#allocation2 + $0x180] sm:$0xff] }
  0xf9   : > { %6653 = vmatmul.mubr.msk.bf16.gmra.mrb[8].mxu0 %vm1637_vm11, %v1589_v37  ;;  %v978_v43 = vpop.permute.xlu1 %977  ;;  %v7600_v1 = vpack.c.bf16 %v689_v61, %v688_v60  ;;  %v929_v39 = vld [vmem:[#allocation2 + $0x19a] sm:$0xff] }
  0xfa   : > { %v976_v44 = vpop.permute.xlu0 %975  ;;  %v1354_v8 = vsel %vm364_vm0, %v7412_v34, %v978_v43 }
  0xfb   : > { %1229 = vrot.lane.b32.xlu1 %v7574_v40, %s7087_s21  ;;  %v1351_v10 = vsel %vm364_vm0, %v7398_v25, %v976_v44  ;;  %v946_v44 = vpack.c.bf16 %v930_v41, %v929_v39 }
  0xfc   : > { %1227 = vrot.lane.b32.xlu0 %v7546_v7, %s7087_s21 }
  0xfd   : > { %v1026_v51 = vpop.permute.xlu1 %1025 }
  0xfe   : > { %v1024_v52 = vpop.permute.xlu0 %1023  ;;  %v1395_v11 = vsel %vm1379_vm4, %v1354_v8, %v1026_v51 }
  0xff   : > { %1277 = vrot.lane.b32.xlu1 %v7581_v46, %s7088_s23  ;;  %v1393_v16 = vsel %vm1379_vm4, %v1351_v10, %v1024_v52 }
 0x100   : > { %1275 = vrot.lane.b32.xlu0 %v751_v15, %s7088_s23 }
 0x101   : > { %v1074_v55 = vpop.permute.xlu1 %1073 }
 0x102   : > { %v1072_v56 = vpop.permute.xlu0 %1071  ;;  %v1428_v17 = vsel %vm1412_vm5, %v1395_v11, %v1074_v55 }
 0x103   : > { %1325 = vrot.lane.b32.xlu1 %v7587_v53, %s7089_s24  ;;  %v1426_v19 = vsel %vm1412_vm5, %v1393_v16, %v1072_v56 }
 0x104   : > { %1323 = vrot.lane.b32.xlu0 %v799_v28, %s7089_s24 }
 0x105   : > { %v1122_v57 = vpop.permute.xlu1 %1121 }
 0x106   : > { %v1120_v59 = vpop.permute.xlu0 %1119  ;;  %v1461_v20 = vsel %vm1445_vm6, %v1428_v17, %v1122_v57 }
 0x107   : > { %993 = vrot.lane.b32.xlu1 %v7581_v46, %s7083_s27  ;;  %v1459_v25 = vsel %vm1445_vm6, %v1426_v19, %v1120_v59 }
 0x108   : > { %991 = vrot.lane.b32.xlu0 %v751_v15, %s7083_s27  ;;  %v785_v15 = vld [vmem:[#allocation2 + $0x18a] sm:$0xff] }
 0x109   : > { %v1170_v62 = vpop.permute.xlu1 %1169  ;;  %v7632_v23 = vpack.c.bf16 %v785_v15, %v784_v13 }
 0x10a   : > { %v7596_v63 = vpop.permute.xlu0 %1167  ;;  %v1494_v22 = vsel %vm1478_vm7, %v1461_v20, %v1170_v62 }
 0x10b   : > { %1041 = vrot.lane.b32.xlu1 %v7587_v53, %s7082_s26  ;;  %v1492_v14 = vsel %vm1478_vm7, %v1459_v25, %v7596_v63 }
 0x10c   : > { %1039 = vrot.lane.b32.xlu0 %v799_v28, %s7082_s26  ;;  %s9501_s26 = scalar_lea.hbm %s9555_s9, %s6125_s16 }
 0x10d   : > { %v1218_v5 = vpop.permute.xlu1 %1217 }
 0x10e   : > { %v1216_v6 = vpop.permute.xlu0 %1215  ;;  %v1527_v24 = vsel %vm1511_vm8, %v1494_v22, %v1218_v5 }
 0x10f   : > { %1089 = vrot.lane.b32.xlu1 %v7600_v1, %s7084_s28  ;;  %v1525_v3 = vsel %vm1511_vm8, %v1492_v14, %v1216_v6 }
 0x110   : > { %1087 = vrot.lane.b32.xlu0 %v7574_v40, %s7084_s28  ;;  %s9355_s28 = scalar_lea.vmem %s9546_s0, %s7269_s22 }
 0x111   : > { %v1266_v34 = vpop.permute.xlu1 %1265 }
 0x112   : > { %v1264_v21 = vpop.permute.xlu0 %1263  ;;  %v1560_v28 = vsel %vm1544_vm9, %v1527_v24, %v1266_v34 }
 0x113   : > { %1137 = vrot.lane.b32.xlu1 %v7615_v9, %s7085_s29  ;;  %v1558_v29 = vsel %vm1544_vm9, %v1525_v3, %v1264_v21 }
 0x114   : > { %1135 = vrot.lane.b32.xlu0 %v7581_v46, %s7085_s29  ;;  %v1979_v46 = vld [vmem:[#allocation3 + $0x1] sm:$0xff] }
 0x115   : > { %v1314_v45 = vpop.permute.xlu1 %1313  ;;  %v2011_v52 = vpack.c.bf16 %v1980_v49, %v1979_v46 }
 0x116   : > { %v1593_v36 = vsel %vm1577_vm10, %v1560_v28, %v1314_v45  ;;  %v1312_v0 = vpop.permute.xlu0 %1311 }
 0x117   : > { %v1591_v30 = vsel %vm1577_vm10, %v1558_v29, %v1312_v0  ;;  %1185 = vrot.lane.b32.xlu1 %v7632_v23, %s7086_s14 }
 0x118   : > { %1183 = vrot.lane.b32.xlu0 %v7587_v53, %s7086_s14  ;;  %6656 = vmatprep.mubr.msk.bf16.mxu0 %vm1637_vm11, %v1591_v30 }
 0x119   : > { %6657 = vmatmul.mubr.msk.bf16.gmra.mrb[12].mxu0 %vm1637_vm11, %v1593_v36  ;;  %v982_v33 = vpop.permute.xlu1 %981 }
 0x11a   : > { %v980_v37 = vpop.permute.xlu0 %979  ;;  %v1360_v61 = vsel %vm364_vm0, %v7440_v58, %v982_v33 }
 0x11b   : > { %1233 = vrot.lane.b32.xlu1 %v850_v35, %s7087_s21  ;;  %v1357_v62 = vsel %vm364_vm0, %v7430_v48, %v980_v37 }
 0x11c   : > { %1231 = vrot.lane.b32.xlu0 %v7600_v1, %s7087_s21  ;;  %s9380_s21 = scalar_lea.vmem %s9554_s8, %s7269_s22  ;;  %s346_s22 = sand.u32 1, %s7071_s10  }
 0x11d   : > { %v1030_v42 = vpop.permute.xlu1 %1029  ;;  %s347_s17 = scalar_lea.vmem [#allocation4], %s346_s22  ;;  %s5882_s13 = scalar_lea.sflag [#allocation5], %s346_s22 }
 0x11e   : > { %v1028_v43 = vpop.permute.xlu0 %1027  ;;  %v1399_v63 = vsel %vm1379_vm4, %v1360_v61, %v1030_v42 }
 0x11f   : > { %1281 = vrot.lane.b32.xlu1 %v898_v38, %s7088_s23  ;;  %v1397_v1 = vsel %vm1379_vm4, %v1357_v62, %v1028_v43 }
 0x120   : > { %1279 = vrot.lane.b32.xlu0 %v7615_v9, %s7088_s23 }
 0x121   : > { %v1078_v50 = vpop.permute.xlu1 %1077 }
 0x122   : > { %v1076_v51 = vpop.permute.xlu0 %1075  ;;  %v1432_v2 = vsel %vm1412_vm5, %v1399_v63, %v1078_v50 }
 0x123   : > { %1329 = vrot.lane.b32.xlu1 %v946_v44, %s7089_s24  ;;  %v1430_v5 = vsel %vm1412_vm5, %v1397_v1, %v1076_v51 }
 0x124   : > { %1327 = vrot.lane.b32.xlu0 %v7632_v23, %s7089_s24  ;;  %s7091_s24 = smov 124  }
 0x125   : > { %v1126_v53 = vpop.permute.xlu1 %1125 }
 0x126   : > { %v1124_v55 = vpop.permute.xlu0 %1123  ;;  %v1465_v6 = vsel %vm1445_vm6, %v1432_v2, %v1126_v53 }
 0x127   : > { %2380 = vrot.lane.b32.xlu1 %v2011_v52, %s7090_s25  ;;  %v1463_v9 = vsel %vm1445_vm6, %v1430_v5, %v1124_v55 }
 0x129   : > { %v1174_v56 = vpop.permute.xlu1 %1173 }
 0x12a   : > { %v1172_v57 = vpop.permute.xlu0 %1171  ;;  %v1498_v10 = vsel %vm1478_vm7, %v1465_v6, %v1174_v56 }
 0x12b   : > { %v1496_v58 = vsel %vm1478_vm7, %v1463_v9, %v1172_v57 }
 0x12d   : > { %v1222_v59 = vpop.permute.xlu1 %1221 }
 0x12e   : > { %v1220_v60 = vpop.permute.xlu0 %1219  ;;  %v1531_v48 = vsel %vm1511_vm8, %v1498_v10, %v1222_v59 }
 0x12f   : > { %v1529_v11 = vsel %vm1511_vm8, %v1496_v58, %v1220_v60 }
 0x131   : > { %v1270_v4 = vpop.permute.xlu1 %1269 }
 0x132   : > { %v1268_v8 = vpop.permute.xlu0 %1267  ;;  %v1564_v13 = vsel %vm1544_vm9, %v1531_v48, %v1270_v4 }
 0x133   : > { %v1562_v16 = vsel %vm1544_vm9, %v1529_v11, %v1268_v8 }
 0x135   : > { %v1318_v15 = vpop.permute.xlu1 %1317 }
 0x136   : > { %v1597_v17 = vsel %vm1577_vm10, %v1564_v13, %v1318_v15  ;;  %v1316_v34 = vpop.permute.xlu0 %1315 }
 0x137   : > { %v1595_v19 = vsel %vm1577_vm10, %v1562_v16, %v1316_v34  ;;  %v6818_v16 = vld [vmem:[%s9550_s4] sm:$0xff]  }
 0x138   : > { %6660 = vmatprep.mubr.msk.bf16.mxu1 %vm1637_vm11, %v1595_v19 }
 0x139   : > { %6661 = vmatmul.mubr.msk.bf16.vlgmr.msra.gmra.mrb[0].mxu1 %vm1637_vm11, %v1597_v17  ;;  %v986_v20 = vpop.permute.xlu1 %985 }
 0x13a   : > { %v984_v21 = vpop.permute.xlu0 %983  ;;  %v1366_v29 = vsel %vm364_vm0, %v7485_v54, %v986_v20 }
 0x13b   : > { %v1363_v36 = vsel %vm364_vm0, %v7458_v18, %v984_v21 }
 0x13d   : > { %v1034_v25 = vpop.permute.xlu1 %1033 }
 0x13e   : > { %v1032_v22 = vpop.permute.xlu0 %1031  ;;  %v1403_v0 = vsel %vm1379_vm4, %v1366_v29, %v1034_v25  ;;  %v6823_v29 = vld [vmem:[%s9550_s4 + $0x58] sm:$0xff]  }
 0x13f   : > { %v1401_v30 = vsel %vm1379_vm4, %v1363_v36, %v1032_v22  ;;  %v6819_v22 = vld [vmem:[%s9550_s4 + $0x48] sm:$0xff]   ;;  %v6824_v36 = vld [vmem:[%s9550_s4 + $0x18] sm:$0xff]  }
 0x141   : > { %v1082_v23 = vpop.permute.xlu1 %1081 }
 0x142   : > { %v1080_v14 = vpop.permute.xlu0 %1079  ;;  %v1436_v35 = vsel %vm1412_vm5, %v1403_v0, %v1082_v23  ;;  %v6820_v23 = vld [vmem:[%s9550_s4 + $0x8] sm:$0xff]  }
 0x143   : > { %v1434_v32 = vsel %vm1412_vm5, %v1401_v30, %v1080_v14 }
 0x145   : > { %v1130_v24 = vpop.permute.xlu1 %1129 }
 0x146   : > { %v1128_v26 = vpop.permute.xlu0 %1127  ;;  %v1469_v33 = vsel %vm1445_vm6, %v1436_v35, %v1130_v24  ;;  %v6821_v24 = vld [vmem:[%s9550_s4 + $0x50] sm:$0xff]   ;;  %v6825_v35 = vld [vmem:[%s9550_s4 + $0x60] sm:$0xff]  }
 0x147   : > { %v1467_v38 = vsel %vm1445_vm6, %v1434_v32, %v1128_v26  ;;  %v6827_v32 = vld [vmem:[%s9550_s4 + $0x68] sm:$0xff]  }
 0x149   : > { %v1178_v27 = vpop.permute.xlu1 %1177 }
 0x14a   : > { %v1176_v3 = vpop.permute.xlu0 %1175  ;;  %v1502_v39 = vsel %vm1478_vm7, %v1469_v33, %v1178_v27 }
 0x14b   : > { %v1500_v54 = vsel %vm1478_vm7, %v1467_v38, %v1176_v3  ;;  %v6822_v3 = vld [vmem:[%s9550_s4 + $0x10] sm:$0xff]   ;;  %v6828_v38 = vld [vmem:[%s9550_s4 + $0x28] sm:$0xff]  }
 0x14d   : > { %v1226_v28 = vpop.permute.xlu1 %1225 }
 0x14e   : > { %v1224_v45 = vpop.permute.xlu0 %1223  ;;  %v1535_v18 = vsel %vm1511_vm8, %v1502_v39, %v1226_v28 }
 0x14f   : > { %v1533_v41 = vsel %vm1511_vm8, %v1500_v54, %v1224_v45 }
 0x151   : > { %v1274_v31 = vpop.permute.xlu1 %1273 }
 0x152   : > { %v1272_v37 = vpop.permute.xlu0 %1271  ;;  %v1568_v42 = vsel %vm1544_vm9, %v1535_v18, %v1274_v31  ;;  %v6826_v31 = vld [vmem:[%s9550_s4 + $0x20] sm:$0xff]  }
 0x153   : > { %v1566_v44 = vsel %vm1544_vm9, %v1533_v41, %v1272_v37  ;;  %v7823_v18 = vld [vmem:[%s9549_s3] ss:$0 sm:$0xff]  ;;  %v6829_v41 = vld [vmem:[%s9550_s4 + $0x70] sm:$0xff]  }
 0x155   : > { %v1322_v43 = vpop.permute.xlu1 %1321 }
 0x156   : > { %v1601_v46 = vsel %vm1577_vm10, %v1568_v42, %v1322_v43  ;;  %v1320_v49 = vpop.permute.xlu0 %1319  ;;  %v6830_v43 = vld [vmem:[%s9550_s4 + $0x30] sm:$0xff]  }
 0x157   : > { %v1599_v50 = vsel %vm1577_vm10, %v1566_v44, %v1320_v49 }
 0x158   : > { %6664 = vmatprep.mubr.msk.bf16.mxu1 %vm1637_vm11, %v1599_v50 }
 0x159   : > { %6665 = vmatmul.mubr.msk.bf16.gmra.mrb[4].mxu1 %vm1637_vm11, %v1601_v46  ;;  %v990_v51 = vpop.permute.xlu1 %989 }
 0x15a   : > { %v988_v52 = vpop.permute.xlu0 %987  ;;  %v1372_v2 = vsel %vm364_vm0, %v7530_v47, %v990_v51 }
 0x15b   : > { %v1369_v4 = vsel %vm364_vm0, %v7502_v12, %v988_v52  ;;  %v6817_v12 = vld [vmem:[%s9550_s4 + $0x40] sm:$0xff]  }
 0x15c   : > { %6150 = vmatprep.subr.bf16.mxu1 %v6817_v12 }
 0x15d   : > { %v1038_v53 = vpop.permute.xlu1 %1037  ;;  %6151 = vmatpush3.bf16.msra.mxu1 %v6818_v16 }
 0x15e   : > { %v1036_v55 = vpop.permute.xlu0 %1035  ;;  %v1407_v5 = vsel %vm1379_vm4, %v1372_v2, %v1038_v53  ;;  %6152 = vmatprep.subr.bf16.mxu1 %v6819_v22 }
 0x15f   : > { %v1405_v6 = vsel %vm1379_vm4, %v1369_v4, %v1036_v55 }
 0x161   : > { %v1086_v56 = vpop.permute.xlu1 %1085  ;;  %6153 = vmatpush3.bf16.msra.mxu1 %v6820_v23 }
 0x162   : > { %v1084_v57 = vpop.permute.xlu0 %1083  ;;  %v1440_v8 = vsel %vm1412_vm5, %v1407_v5, %v1086_v56  ;;  %6154 = vmatprep.subr.bf16.mxu1 %v6821_v24 }
 0x163   : > { %v1438_v10 = vsel %vm1412_vm5, %v1405_v6, %v1084_v57 }
 0x165   : > { %v1134_v59 = vpop.permute.xlu1 %1133  ;;  %6155 = vmatpush3.bf16.msra.mxu1 %v6822_v3 }
 0x166   : > { %v1132_v60 = vpop.permute.xlu0 %1131  ;;  %v1473_v58 = vsel %vm1445_vm6, %v1440_v8, %v1134_v59  ;;  %6156 = vmatprep.subr.bf16.mxu1 %v6823_v29  ;;  %v6831_v59 = vld [vmem:[%s9550_s4 + $0x78] sm:$0xff]  }
 0x167   : > { %v1471_v11 = vsel %vm1445_vm6, %v1438_v10, %v1132_v60 }
 0x169   : > { %v1182_v61 = vpop.permute.xlu1 %1181  ;;  %6157 = vmatpush3.bf16.msra.mxu1 %v6824_v36 }
 0x16a   : > { %v1180_v62 = vpop.permute.xlu0 %1179  ;;  %v1506_v13 = vsel %vm1478_vm7, %v1473_v58, %v1182_v61  ;;  %6158 = vmatprep.subr.bf16.mxu1 %v6825_v35 }
 0x16b   : > { %v1504_v47 = vsel %vm1478_vm7, %v1471_v11, %v1180_v62 }
 0x16d   : > { %v1230_v63 = vpop.permute.xlu1 %1229  ;;  %6159 = vmatpush3.bf16.msra.mxu1 %v6826_v31 }
 0x16e   : > { %v1228_v1 = vpop.permute.xlu0 %1227  ;;  %v1539_v15 = vsel %vm1511_vm8, %v1506_v13, %v1230_v63  ;;  %6160 = vmatprep.subr.bf16.mxu1 %v6827_v32 }
 0x16f   : > { %v1537_v17 = vsel %vm1511_vm8, %v1504_v47, %v1228_v1 }
 0x171   : > { %v1278_v9 = vpop.permute.xlu1 %1277  ;;  %6161 = vmatpush3.bf16.msra.mxu1 %v6828_v38 }
 0x172   : > { %v1276_v48 = vpop.permute.xlu0 %1275  ;;  %v1572_v34 = vsel %vm1544_vm9, %v1539_v15, %v1278_v9  ;;  %6162 = vmatprep.subr.bf16.mxu1 %v6829_v41 }
 0x173   : > { %v1570_v20 = vsel %vm1544_vm9, %v1537_v17, %v1276_v48 }
 0x175   : > { %v1326_v19 = vpop.permute.xlu1 %1325  ;;  %6163 = vmatpush3.bf16.msra.mxu1 %v6830_v43 }
 0x176   : > { %v1605_v21 = vsel %vm1577_vm10, %v1572_v34, %v1326_v19  ;;  %v1324_v25 = vpop.permute.xlu0 %1323  ;;  %6164 = vmatprep.subr.bf16.mxu1 %v6831_v59 }
 0x177   : > { %v1603_v14 = vsel %vm1577_vm10, %v1570_v20, %v1324_v25 }
 0x178   : > { %6668 = vmatprep.mubr.msk.bf16.mxu1 %vm1637_vm11, %v1603_v14 }
 0x179   : > { %6669 = vmatmul.mubr.msk.bf16.gmra.mrb[8].mxu1 %vm1637_vm11, %v1605_v21  ;;  %v994_v26 = vpop.permute.xlu1 %993 }
 0x17a   : > { %v992_v27 = vpop.permute.xlu0 %991  ;;  %v1378_v53 = vsel %vm364_vm0, %v7574_v40, %v994_v26  ;;  %v6832_v40 = vld [vmem:[%s9550_s4 + $0x38] sm:$0xff]  }
 0x17b   : > { %v1375_v60 = vsel %vm364_vm0, %v7546_v7, %v992_v27  ;;  %6165 = vmatpush3.bf16.msra.mxu1 %v6832_v40 }
 0x17d   : > { %v1042_v28 = vpop.permute.xlu1 %1041 }
 0x17e   : > { %v1040_v45 = vpop.permute.xlu0 %1039  ;;  %v1411_v61 = vsel %vm1379_vm4, %v1378_v53, %v1042_v28 }
 0x17f   : > { %v1409_v1 = vsel %vm1379_vm4, %v1375_v60, %v1040_v45 }
 0x181   : > { %v1090_v0 = vpop.permute.xlu1 %1089 }
 0x182   : > { %v1088_v30 = vpop.permute.xlu0 %1087  ;;  %v1444_v2 = vsel %vm1412_vm5, %v1411_v61, %v1090_v0 }
 0x183   : > { %v1442_v8 = vsel %vm1412_vm5, %v1409_v1, %v1088_v30 }
 0x185   : > { %v1138_v33 = vpop.permute.xlu1 %1137 }
 0x186   : > { %v1136_v37 = vpop.permute.xlu0 %1135  ;;  %v1477_v7 = vsel %vm1445_vm6, %v1444_v2, %v1138_v33 }
 0x187   : > { %v1475_v48 = vsel %vm1445_vm6, %v1442_v8, %v1136_v37 }
 0x189   : > { %v1186_v39 = vpop.permute.xlu1 %1185 }
 0x18a   : > { %v1184_v54 = vpop.permute.xlu0 %1183  ;;  %v1510_v11 = vsel %vm1478_vm7, %v1477_v7, %v1186_v39 }
 0x18b   : > { %v1508_v12 = vsel %vm1478_vm7, %v1475_v48, %v1184_v54 }
 0x18c   : > { %v6646_v42 = vpop.f32.mrb[0].mxu0 }
 0x18d   : > { %v1717_v44 = vadd.f32 %v6646_v42, %v7823_v18  ;;  %v1708_v46 = vpop.f32.mrb[1].mxu0  ;;  %v1234_v49 = vpop.permute.xlu1 %1233 }
 0x18e   : > { %v1709_v50 = vadd.f32 %v7823_v18, %v1708_v46  ;;  %v1232_v51 = vpop.permute.xlu0 %1231  ;;  %v6647_v52 = vpop.f32.mrb[2].mxu0  ;;  %v1543_v47 = vsel %vm1511_vm8, %v1510_v11, %v1234_v49 }
 0x18f   : > { %v1837_v55 = vmul.f32 0.01, %v1717_v44  ;;  %v1720_v56 = vadd.f32 %v6647_v52, %v7823_v18  ;;  %v1711_v57 = vpop.f32.mrb[3].mxu0  ;;  %v1541_v16 = vsel %vm1511_vm8, %v1508_v12, %v1232_v51 }
 0x190   : > { %v1835_v62 = vmul.f32 0.01, %v1709_v50  ;;  %v1712_v63 = vadd.f32 %v7823_v18, %v1711_v57 }
 0x191   : > { %v1869_v4 = vmax.f32 %v1717_v44, %v1837_v55  ;;  %v1838_v5 = vmul.f32 0.01, %v1720_v56  ;;  %v1282_v6 = vpop.permute.xlu1 %1281 }
 0x192   : > { %v1867_v9 = vmax.f32 %v1709_v50, %v1835_v62  ;;  %v1836_v10 = vmul.f32 0.01, %v1712_v63  ;;  %v1280_v58 = vpop.permute.xlu0 %1279  ;;  %v1576_v17 = vsel %vm1544_vm9, %v1543_v47, %v1282_v6 }
 0x193   : > { %1901 = vst.msk [vmem:[#allocation3 + $0x31] sm:$0xff] %vm407_vm12, %v1869_v4  ;;  %v1870_v13 = vmax.f32 %v1720_v56, %v1838_v5  ;;  %v1574_v19 = vsel %vm1544_vm9, %v1541_v16, %v1280_v58 }
 0x194   : > { %1899 = vst.msk [vmem:[#allocation3 + $0x19] sm:$0xff] %vm407_vm12, %v1867_v9  ;;  %v1868_v15 = vmax.f32 %v1712_v63, %v1836_v10 }
 0x195   : > { %1902 = vst.msk [vmem:[#allocation3 + $0x39] sm:$0xff] %vm407_vm12, %v1870_v13  ;;  %v1330_v34 = vpop.permute.xlu1 %1329 }
 0x196   : > { %1900 = vst.msk [vmem:[#allocation3 + $0x21] sm:$0xff] %vm407_vm12, %v1868_v15  ;;  %v1609_v20 = vsel %vm1577_vm10, %v1576_v17, %v1330_v34  ;;  %v1328_v21 = vpop.permute.xlu0 %1327 }
 0x197   : > { %v1607_v25 = vsel %vm1577_vm10, %v1574_v19, %v1328_v21 }
 0x198   : > { %6672 = vmatprep.mubr.msk.bf16.mxu1 %vm1637_vm11, %v1607_v25 }
 0x199   : > { %6673 = vmatmul.mubr.msk.bf16.gmra.mrb[12].mxu1 %vm1637_vm11, %v1609_v20 }
 0x19a   : > { %v2077_v45 = vld [vmem:[#allocation3 + $0x30] sm:$0xff] }
 0x19b   : > { %v2075_v22 = vld [vmem:[#allocation3 + $0x18] sm:$0xff] }
 0x19c   : > { %v1981_v14 = vld [vmem:[#allocation3 + $0x19] sm:$0xff]  ;;  %v1983_v29 = vld [vmem:[#allocation3 + $0x31] sm:$0xff] }
 0x19d   : > { %v2076_v23 = vld [vmem:[#allocation3 + $0x20] sm:$0xff]  ;;  %v2078_v3 = vld [vmem:[#allocation3 + $0x38] sm:$0xff] }
 0x19e   : > { %v1982_v24 = vld [vmem:[#allocation3 + $0x21] sm:$0xff]  ;;  %v7865_v26 = vpack.c.bf16 %v2076_v23, %v2075_v22  ;;  %v1984_v28 = vld [vmem:[#allocation3 + $0x39] sm:$0xff]  ;;  %v7870_v36 = vpack.c.bf16 %v2078_v3, %v2077_v45 }
 0x19f   : > { %v2012_v27 = vpack.c.bf16 %v1982_v24, %v1981_v14  ;;  %v7872_v0 = vpack.c.bf16 %v1984_v28, %v1983_v29 }
 0x1a0   : > { %2428 = vrot.lane.b32.xlu0 %v7865_v26, %s7090_s25 }
 0x1a1   : > { %2382 = vrot.lane.b32.xlu1 %v2012_v27, %s7090_s25 }
 0x1a4   : > { %2430 = vrot.lane.b32.xlu0 %v7870_v36, %s7090_s25 }
 0x1a5   : > { %2384 = vrot.lane.b32.xlu1 %v7872_v0, %s7090_s25 }
 0x1ac   : > { %v6650_v30 = vpop.f32.mrb[4].mxu0 }
 0x1ad   : > { %v1733_v35 = vadd.f32 %v6650_v30, %v7823_v18  ;;  %v1724_v31 = vpop.f32.mrb[5].mxu0 }
 0x1ae   : > { %v1725_v32 = vadd.f32 %v7823_v18, %v1724_v31  ;;  %v6651_v33 = vpop.f32.mrb[6].mxu0 }
 0x1af   : > { %v1841_v37 = vmul.f32 0.01, %v1733_v35  ;;  %v1736_v38 = vadd.f32 %v6651_v33, %v7823_v18  ;;  %v1727_v39 = vpop.f32.mrb[7].mxu0 }
 0x1b0   : > { %v1839_v54 = vmul.f32 0.01, %v1725_v32  ;;  %v1728_v41 = vadd.f32 %v7823_v18, %v1727_v39 }
 0x1b1   : > { %v1873_v42 = vmax.f32 %v1733_v35, %v1841_v37  ;;  %v1842_v43 = vmul.f32 0.01, %v1736_v38 }
 0x1b2   : > { %v1871_v44 = vmax.f32 %v1725_v32, %v1839_v54  ;;  %v1840_v46 = vmul.f32 0.01, %v1728_v41 }
 0x1b3   : > { %1905 = vst.msk [vmem:[#allocation3 + $0x61] sm:$0xff] %vm407_vm12, %v1873_v42  ;;  %v1874_v49 = vmax.f32 %v1736_v38, %v1842_v43 }
 0x1b4   : > { %1903 = vst.msk [vmem:[#allocation3 + $0x49] sm:$0xff] %vm407_vm12, %v1871_v44  ;;  %v1872_v50 = vmax.f32 %v1728_v41, %v1840_v46 }
 0x1b5   : > { %1906 = vst.msk [vmem:[#allocation3 + $0x69] sm:$0xff] %vm407_vm12, %v1874_v49 }
 0x1b6   : > { %1904 = vst.msk [vmem:[#allocation3 + $0x51] sm:$0xff] %vm407_vm12, %v1872_v50 }
 0x1ba   : > { %v2081_v61 = vld [vmem:[#allocation3 + $0x60] sm:$0xff] }
 0x1bb   : > { %v2079_v51 = vld [vmem:[#allocation3 + $0x48] sm:$0xff] }
 0x1bc   : > { %v1985_v53 = vld [vmem:[#allocation3 + $0x49] sm:$0xff]  ;;  %v1987_v62 = vld [vmem:[#allocation3 + $0x61] sm:$0xff] }
 0x1bd   : > { %v2080_v52 = vld [vmem:[#allocation3 + $0x50] sm:$0xff]  ;;  %v2082_v59 = vld [vmem:[#allocation3 + $0x68] sm:$0xff] }
 0x1be   : > { %v1986_v55 = vld [vmem:[#allocation3 + $0x51] sm:$0xff]  ;;  %v7886_v56 = vpack.c.bf16 %v2080_v52, %v2079_v51  ;;  %v1988_v60 = vld [vmem:[#allocation3 + $0x69] sm:$0xff]  ;;  %v7894_v63 = vpack.c.bf16 %v2082_v59, %v2081_v61 }
 0x1bf   : > { %v7888_v57 = vpack.c.bf16 %v1986_v55, %v1985_v53  ;;  %v7896_v40 = vpack.c.bf16 %v1988_v60, %v1987_v62  ;;  %v6833_v59 = vld [vmem:[%s9550_s4 + $0x100] sm:$0xff]  }
 0x1c0   : > { %2432 = vrot.lane.b32.xlu0 %v7886_v56, %s7090_s25  ;;  %6676 = vmatprep.subr.bf16.mxu1 %v6833_v59 }
 0x1c1   : > { %2386 = vrot.lane.b32.xlu1 %v7888_v57, %s7090_s25 }
 0x1c4   : > { %2434 = vrot.lane.b32.xlu0 %v7894_v63, %s7090_s25 }
 0x1c5   : > { %2388 = vrot.lane.b32.xlu1 %v7896_v40, %s7090_s25 }
 0x1cc   : > { %v6654_v1 = vpop.f32.mrb[8].mxu0 }
 0x1cd   : > { %v1749_v2 = vadd.f32 %v6654_v1, %v7823_v18  ;;  %v1740_v4 = vpop.f32.mrb[9].mxu0 }
 0x1ce   : > { %v1741_v5 = vadd.f32 %v7823_v18, %v1740_v4  ;;  %v6655_v6 = vpop.f32.mrb[10].mxu0  ;;  %v1932_v4 = vld [vmem:[#allocation3 + $0x8] sm:$0xff] }
 0x1cf   : > { %v1845_v8 = vmul.f32 0.01, %v1749_v2  ;;  %v1752_v7 = vadd.f32 %v6655_v6, %v7823_v18  ;;  %v1743_v9 = vpop.f32.mrb[11].mxu0  ;;  %v2027_v6 = vld [vmem:[#allocation3 + $0x2] sm:$0xff] }
 0x1d0   : > { %v1843_v10 = vmul.f32 0.01, %v1741_v5  ;;  %v1744_v58 = vadd.f32 %v7823_v18, %v1743_v9 }
 0x1d1   : > { %v1877_v48 = vmax.f32 %v1749_v2, %v1845_v8  ;;  %v1846_v11 = vmul.f32 0.01, %v1752_v7  ;;  %v1931_v2 = vld [vmem:[#allocation3] sm:$0xff]  ;;  %v2028_v8 = vld [vmem:[#allocation3 + $0xa] sm:$0xff] }
 0x1d2   : > { %v1875_v13 = vmax.f32 %v1741_v5, %v1843_v10  ;;  %v1844_v12 = vmul.f32 0.01, %v1744_v58 }
 0x1d3   : > { %1909 = vst.msk [vmem:[#allocation3 + $0x91] sm:$0xff] %vm407_vm12, %v1877_v48  ;;  %v1878_v47 = vmax.f32 %v1752_v7, %v1846_v11 }
 0x1d4   : > { %1907 = vst.msk [vmem:[#allocation3 + $0x79] sm:$0xff] %vm407_vm12, %v1875_v13  ;;  %v1876_v15 = vmax.f32 %v1744_v58, %v1844_v12  ;;  %v1963_v58 = vpack.c.bf16 %v1932_v4, %v1931_v2 }
 0x1d5   : > { %1910 = vst.msk [vmem:[#allocation3 + $0x99] sm:$0xff] %vm407_vm12, %v1878_v47  ;;  %v2059_v47 = vpack.c.bf16 %v2028_v8, %v2027_v6  ;;  %v2032_v6 = vld [vmem:[#allocation3 + $0x3a] sm:$0xff] }
 0x1d6   : > { %1908 = vst.msk [vmem:[#allocation3 + $0x81] sm:$0xff] %vm407_vm12, %v1876_v15 }
 0x1da   : > { %v2085_v23 = vld [vmem:[#allocation3 + $0x90] sm:$0xff] }
 0x1db   : > { %v2083_v16 = vld [vmem:[#allocation3 + $0x78] sm:$0xff] }
 0x1dc   : > { %v1989_v34 = vld [vmem:[#allocation3 + $0x79] sm:$0xff]  ;;  %v1991_v14 = vld [vmem:[#allocation3 + $0x91] sm:$0xff] }
 0x1dd   : > { %v2084_v17 = vld [vmem:[#allocation3 + $0x80] sm:$0xff]  ;;  %v2086_v25 = vld [vmem:[#allocation3 + $0x98] sm:$0xff] }
 0x1de   : > { %v1990_v19 = vld [vmem:[#allocation3 + $0x81] sm:$0xff]  ;;  %v7910_v20 = vpack.c.bf16 %v2084_v17, %v2083_v16  ;;  %v1992_v22 = vld [vmem:[#allocation3 + $0x99] sm:$0xff]  ;;  %v7918_v24 = vpack.c.bf16 %v2086_v25, %v2085_v23 }
 0x1df   : > { %v7912_v21 = vpack.c.bf16 %v1990_v19, %v1989_v34  ;;  %v7920_v27 = vpack.c.bf16 %v1992_v22, %v1991_v14  ;;  %v2381_v34 = vpop.permute.xlu1 %2380 }
 0x1e0   : > { %2436 = vrot.lane.b32.xlu0 %v7910_v20, %s7090_s25  ;;  %v2558_v22 = vsel %vm407_vm12, %v1963_v58, %v2381_v34  ;;  %v2034_v34 = vld [vmem:[#allocation3 + $0x52] sm:$0xff] }
 0x1e1   : > { %2390 = vrot.lane.b32.xlu1 %v7912_v21, %s7090_s25 }
 0x1e4   : > { %2438 = vrot.lane.b32.xlu0 %v7918_v24, %s7090_s25 }
 0x1e5   : > { %2392 = vrot.lane.b32.xlu1 %v7920_v27, %s7090_s25 }
 0x1ec   : > { %v6658_v3 = vpop.f32.mrb[12].mxu0 }
 0x1ed   : > { %v1765_v28 = vadd.f32 %v6658_v3, %v7823_v18  ;;  %v1756_v45 = vpop.f32.mrb[13].mxu0  ;;  %v2029_v3 = vld [vmem:[#allocation3 + $0x1a] sm:$0xff] }
 0x1ee   : > { %v1757_v29 = vadd.f32 %v7823_v18, %v1756_v45  ;;  %v6659_v30 = vpop.f32.mrb[14].mxu0 }
 0x1ef   : > { %v1849_v35 = vmul.f32 0.01, %v1765_v28  ;;  %v1768_v31 = vadd.f32 %v6659_v30, %v7823_v18  ;;  %v1759_v32 = vpop.f32.mrb[15].mxu0 }
 0x1f0   : > { %v1847_v33 = vmul.f32 0.01, %v1757_v29  ;;  %v1760_v37 = vadd.f32 %v7823_v18, %v1759_v32 }
 0x1f1   : > { %v1881_v38 = vmax.f32 %v1765_v28, %v1849_v35  ;;  %v1850_v39 = vmul.f32 0.01, %v1768_v31  ;;  %v2030_v28 = vld [vmem:[#allocation3 + $0x22] sm:$0xff] }
 0x1f2   : > { %v1879_v54 = vmax.f32 %v1757_v29, %v1847_v33  ;;  %v1848_v41 = vmul.f32 0.01, %v1760_v37  ;;  %v7962_v35 = vpack.c.bf16 %v2030_v28, %v2029_v3 }
 0x1f3   : > { %1913 = vst.msk [vmem:[#allocation3 + $0xc1] sm:$0xff] %vm407_vm12, %v1881_v38  ;;  %v1882_v42 = vmax.f32 %v1768_v31, %v1850_v39 }
 0x1f4   : > { %1911 = vst.msk [vmem:[#allocation3 + $0xa9] sm:$0xff] %vm407_vm12, %v1879_v54  ;;  %v1880_v43 = vmax.f32 %v1760_v37, %v1848_v41 }
 0x1f5   : > { %1914 = vst.msk [vmem:[#allocation3 + $0xc9] sm:$0xff] %vm407_vm12, %v1882_v42 }
 0x1f6   : > { %1912 = vst.msk [vmem:[#allocation3 + $0xb1] sm:$0xff] %vm407_vm12, %v1880_v43 }
 0x1fa   : > { %v2089_v60 = vld [vmem:[#allocation3 + $0xc0] sm:$0xff] }
 0x1fb   : > { %v2087_v44 = vld [vmem:[#allocation3 + $0xa8] sm:$0xff] }
 0x1fc   : > { %v1993_v49 = vld [vmem:[#allocation3 + $0xa9] sm:$0xff]  ;;  %v1995_v61 = vld [vmem:[#allocation3 + $0xc1] sm:$0xff] }
 0x1fd   : > { %v2088_v46 = vld [vmem:[#allocation3 + $0xb0] sm:$0xff]  ;;  %v2090_v53 = vld [vmem:[#allocation3 + $0xc8] sm:$0xff] }
 0x1fe   : > { %v1994_v50 = vld [vmem:[#allocation3 + $0xb1] sm:$0xff]  ;;  %v7934_v51 = vpack.c.bf16 %v2088_v46, %v2087_v44  ;;  %v1996_v55 = vld [vmem:[#allocation3 + $0xc9] sm:$0xff]  ;;  %v7945_v62 = vpack.c.bf16 %v2090_v53, %v2089_v60 }
 0x1ff   : > { %v7936_v52 = vpack.c.bf16 %v1994_v50, %v1993_v49  ;;  %v7947_v1 = vpack.c.bf16 %v1996_v55, %v1995_v61  ;;  %v6834_v55 = vld [vmem:[%s9550_s4 + $0x108] sm:$0xff]  }
 0x200   : > { %2440 = vrot.lane.b32.xlu0 %v7934_v51, %s7090_s25 }
 0x201   : > { %2394 = vrot.lane.b32.xlu1 %v7936_v52, %s7090_s25 }
 0x204   : > { %2442 = vrot.lane.b32.xlu0 %v7945_v62, %s7090_s25 }
 0x205   : > { %2396 = vrot.lane.b32.xlu1 %v7947_v1, %s7090_s25 }
 0x20c   : > { %v6662_v5 = vpop.f32.mrb[0].mxu1 }
 0x20d   : > { %v1781_v7 = vadd.f32 %v6662_v5, %v7823_v18  ;;  %v1772_v9 = vpop.f32.mrb[1].mxu1  ;;  %v2031_v5 = vld [vmem:[#allocation3 + $0x32] sm:$0xff] }
 0x20e   : > { %v1773_v10 = vadd.f32 %v7823_v18, %v1772_v9  ;;  %v6663_v48 = vpop.f32.mrb[2].mxu1 }
 0x20f   : > { %v1853_v11 = vmul.f32 0.01, %v1781_v7  ;;  %v1784_v13 = vadd.f32 %v6663_v48, %v7823_v18  ;;  %v1775_v12 = vpop.f32.mrb[3].mxu1 }
 0x210   : > { %v1851_v15 = vmul.f32 0.01, %v1773_v10  ;;  %v1776_v16 = vadd.f32 %v7823_v18, %v1775_v12  ;;  %v7992_v12 = vpack.c.bf16 %v2032_v6, %v2031_v5 }
 0x211   : > { %v1885_v17 = vmax.f32 %v1781_v7, %v1853_v11  ;;  %v1854_v19 = vmul.f32 0.01, %v1784_v13 }
 0x212   : > { %v1883_v25 = vmax.f32 %v1773_v10, %v1851_v15  ;;  %v1852_v23 = vmul.f32 0.01, %v1776_v16  ;;  %v2429_v14 = vpop.permute.xlu0 %2428 }
 0x213   : > { %1917 = vst.msk [vmem:[#allocation3 + $0xf1] sm:$0xff] %vm407_vm12, %v1885_v17  ;;  %v1886_v45 = vmax.f32 %v1784_v13, %v1854_v19  ;;  %v2622_v29 = vsel %vm407_vm12, %v2059_v47, %v2429_v14  ;;  %v2383_v33 = vpop.permute.xlu1 %2382  ;;  %v2033_v17 = vld [vmem:[#allocation3 + $0x4a] sm:$0xff] }
 0x214   : > { %1915 = vst.msk [vmem:[#allocation3 + $0xd9] sm:$0xff] %vm407_vm12, %v1883_v25  ;;  %v1884_v30 = vmax.f32 %v1776_v16, %v1852_v23  ;;  %3187 = vmatprep.mubr.bf16.mxu1 %v2622_v29  ;;  %v2562_v37 = vsel %vm407_vm12, %v7865_v26, %v2383_v33  ;;  %v8001_v14 = vpack.c.bf16 %v2034_v34, %v2033_v17 }
 0x215   : > { %1918 = vst.msk [vmem:[#allocation3 + $0xf9] sm:$0xff] %vm407_vm12, %v1886_v45  ;;  %3188 = vmatmul.mubr.bf16.vlgmr.msra.gmra.mrb[16].mxu1 %v2558_v22 }
 0x216   : > { %1916 = vst.msk [vmem:[#allocation3 + $0xe1] sm:$0xff] %vm407_vm12, %v1884_v30  ;;  %v2431_v31 = vpop.permute.xlu0 %2430  ;;  %6677 = vmatpush3.bf16.msra.mxu1 %v6833_v59 }
 0x217   : > { %v2626_v32 = vsel %vm407_vm12, %v7962_v35, %v2431_v31  ;;  %6678 = vmatprep.subr.bf16.mxu1 %v6834_v55  ;;  %v2385_v48 = vpop.permute.xlu1 %2384 }
 0x218   : > { %3195 = vmatprep.mubr.bf16.mxu1 %v2626_v32  ;;  %v2566_v23 = vsel %vm407_vm12, %v7870_v36, %v2385_v48 }
 0x21a   : > { %v2093_v49 = vld [vmem:[#allocation3 + $0xf0] sm:$0xff]  ;;  %6679 = vmatpush3.bf16.msra.mxu1 %v6834_v55 }
 0x21b   : > { %v2091_v38 = vld [vmem:[#allocation3 + $0xd8] sm:$0xff] }
 0x21c   : > { %v1997_v54 = vld [vmem:[#allocation3 + $0xd9] sm:$0xff]  ;;  %v1999_v50 = vld [vmem:[#allocation3 + $0xf1] sm:$0xff] }
 0x21d   : > { %3196 = vmatmul.mubr.bf16.gmra.mrb[20].mxu1 %v2562_v37  ;;  %v2092_v39 = vld [vmem:[#allocation3 + $0xe0] sm:$0xff]  ;;  %v2094_v44 = vld [vmem:[#allocation3 + $0xf8] sm:$0xff] }
 0x21e   : > { %v1998_v41 = vld [vmem:[#allocation3 + $0xe1] sm:$0xff]  ;;  %v7969_v42 = vpack.c.bf16 %v2092_v39, %v2091_v38  ;;  %v2000_v46 = vld [vmem:[#allocation3 + $0xf9] sm:$0xff]  ;;  %v7977_v26 = vpack.c.bf16 %v2094_v44, %v2093_v49 }
 0x21f   : > { %v7971_v43 = vpack.c.bf16 %v1998_v41, %v1997_v54  ;;  %v7979_v53 = vpack.c.bf16 %v2000_v46, %v1999_v50 }
 0x220   : > { %2444 = vrot.lane.b32.xlu0 %v7969_v42, %s7090_s25 }
 0x221   : > { %2398 = vrot.lane.b32.xlu1 %v7971_v43, %s7090_s25 }
 0x224   : > { %2446 = vrot.lane.b32.xlu0 %v7977_v26, %s7090_s25 }
 0x225   : > { %2400 = vrot.lane.b32.xlu1 %v7979_v53, %s7090_s25 }
 0x22c   : > { %v6666_v59 = vpop.f32.mrb[4].mxu1 }
 0x22d   : > { %v1797_v60 = vadd.f32 %v6666_v59, %v7823_v18  ;;  %v1788_v61 = vpop.f32.mrb[5].mxu1 }
 0x22e   : > { %v1789_v2 = vadd.f32 %v7823_v18, %v1788_v61  ;;  %v6667_v4 = vpop.f32.mrb[6].mxu1  ;;  %v2035_v61 = vld [vmem:[#allocation3 + $0x62] sm:$0xff] }
 0x22f   : > { %v1857_v8 = vmul.f32 0.01, %v1797_v60  ;;  %v1800_v7 = vadd.f32 %v6667_v4, %v7823_v18  ;;  %v1791_v9 = vpop.f32.mrb[7].mxu1 }
 0x230   : > { %v1855_v10 = vmul.f32 0.01, %v1789_v2  ;;  %v1792_v58 = vadd.f32 %v7823_v18, %v1791_v9 }
 0x231   : > { %v1889_v11 = vmax.f32 %v1797_v60, %v1857_v8  ;;  %v1858_v13 = vmul.f32 0.01, %v1800_v7 }
 0x232   : > { %v1887_v47 = vmax.f32 %v1789_v2, %v1855_v10  ;;  %v1856_v15 = vmul.f32 0.01, %v1792_v58  ;;  %v2433_v16 = vpop.permute.xlu0 %2432  ;;  %v2036_v2 = vld [vmem:[#allocation3 + $0x6a] sm:$0xff] }
 0x233   : > { %1921 = vst.msk [vmem:[#allocation3 + $0x121] sm:$0xff] %vm407_vm12, %v1889_v11  ;;  %v1890_v19 = vmax.f32 %v1800_v7, %v1858_v13  ;;  %v2630_v25 = vsel %vm407_vm12, %v7992_v12, %v2433_v16  ;;  %v2387_v45 = vpop.permute.xlu1 %2386  ;;  %v8031_v48 = vpack.c.bf16 %v2036_v2, %v2035_v61  ;;  %v2038_v16 = vld [vmem:[#allocation3 + $0x82] sm:$0xff] }
 0x234   : > { %1919 = vst.msk [vmem:[#allocation3 + $0x109] sm:$0xff] %vm407_vm12, %v1887_v47  ;;  %v1888_v22 = vmax.f32 %v1792_v58, %v1856_v15  ;;  %3203 = vmatprep.mubr.bf16.mxu1 %v2630_v25  ;;  %v2570_v29 = vsel %vm407_vm12, %v7886_v56, %v2387_v45  ;;  %v6835_v56 = vld [vmem:[%s9550_s4 + $0x110] sm:$0xff]  }
 0x235   : > { %1922 = vst.msk [vmem:[#allocation3 + $0x129] sm:$0xff] %vm407_vm12, %v1890_v19  ;;  %3204 = vmatmul.mubr.bf16.gmra.mrb[24].mxu1 %v2566_v23  ;;  %6680 = vmatprep.subr.bf16.mxu1 %v6835_v56  ;;  %v2037_v15 = vld [vmem:[#allocation3 + $0x7a] sm:$0xff] }
 0x236   : > { %1920 = vst.msk [vmem:[#allocation3 + $0x111] sm:$0xff] %vm407_vm12, %v1888_v22  ;;  %v2435_v3 = vpop.permute.xlu0 %2434  ;;  %6681 = vmatpush3.bf16.msra.mxu1 %v6835_v56  ;;  %v8040_v22 = vpack.c.bf16 %v2038_v16, %v2037_v15  ;;  %v6841_v61 = vld [vmem:[%s9550_s4 + $0xd0] sm:$0xff]  }
 0x237   : > { %v2634_v28 = vsel %vm407_vm12, %v8001_v14, %v2435_v3  ;;  %v2389_v9 = vpop.permute.xlu1 %2388  ;;  %v6842_v2 = vld [vmem:[%s9550_s4 + $0x90] sm:$0xff]  }
 0x238   : > { %3211 = vmatprep.mubr.bf16.mxu1 %v2634_v28  ;;  %v2574_v25 = vsel %vm407_vm12, %v7894_v63, %v2389_v9 }
 0x23a   : > { %v2097_v54 = vld [vmem:[#allocation3 + $0x120] sm:$0xff] }
 0x23b   : > { %v2095_v30 = vld [vmem:[#allocation3 + $0x108] sm:$0xff] }
 0x23c   : > { %v2001_v36 = vld [vmem:[#allocation3 + $0x109] sm:$0xff]  ;;  %v2003_v41 = vld [vmem:[#allocation3 + $0x121] sm:$0xff] }
 0x23d   : > { %3212 = vmatmul.mubr.bf16.gmra.mrb[28].mxu1 %v2570_v29  ;;  %v2096_v31 = vld [vmem:[#allocation3 + $0x110] sm:$0xff]  ;;  %v2098_v38 = vld [vmem:[#allocation3 + $0x128] sm:$0xff] }
 0x23e   : > { %v2002_v32 = vld [vmem:[#allocation3 + $0x111] sm:$0xff]  ;;  %v8008_v33 = vpack.c.bf16 %v2096_v31, %v2095_v30  ;;  %v2004_v39 = vld [vmem:[#allocation3 + $0x129] sm:$0xff]  ;;  %v8019_v44 = vpack.c.bf16 %v2098_v38, %v2097_v54 }
 0x23f   : > { %v8010_v37 = vpack.c.bf16 %v2002_v32, %v2001_v36  ;;  %v8021_v46 = vpack.c.bf16 %v2004_v39, %v2003_v41  ;;  %v6836_v39 = vld [vmem:[%s9550_s4 + $0xc0] sm:$0xff]   ;;  %v6840_v41 = vld [vmem:[%s9550_s4 + $0x118] sm:$0xff]  }
 0x240   : > { %2448 = vrot.lane.b32.xlu0 %v8008_v33, %s7090_s25  ;;  %v6837_v54 = vld [vmem:[%s9550_s4 + $0x80] sm:$0xff]   ;;  %6262 = vmatprep.subr.bf16.mxu0 %v6836_v39  ;;  %v6848_v39 = vld [vmem:[%s9550_s4 + $0xa8] sm:$0xff]  }
 0x241   : > { %2402 = vrot.lane.b32.xlu1 %v8010_v37, %s7090_s25  ;;  %6263 = vmatpush3.bf16.msra.mxu0 %v6837_v54 }
 0x242   : > { %6682 = vmatprep.subr.bf16.mxu1 %v6840_v41 }
 0x243   : > { %6683 = vmatpush3.bf16.msra.mxu1 %v6840_v41 }
 0x244   : > { %2450 = vrot.lane.b32.xlu0 %v8019_v44, %s7090_s25 }
 0x245   : > { %2404 = vrot.lane.b32.xlu1 %v8021_v46, %s7090_s25 }
 0x24c   : > { %v6670_v49 = vpop.f32.mrb[8].mxu1 }
 0x24d   : > { %v1813_v50 = vadd.f32 %v6670_v49, %v7823_v18  ;;  %v1804_v55 = vpop.f32.mrb[9].mxu1 }
 0x24e   : > { %v1805_v59 = vadd.f32 %v7823_v18, %v1804_v55  ;;  %v6671_v60 = vpop.f32.mrb[10].mxu1 }
 0x24f   : > { %v1861_v4 = vmul.f32 0.01, %v1813_v50  ;;  %v1816_v5 = vadd.f32 %v6671_v60, %v7823_v18  ;;  %v1807_v6 = vpop.f32.mrb[11].mxu1  ;;  %v6839_v60 = vld [vmem:[%s9550_s4 + $0x88] sm:$0xff]  }
 0x250   : > { %v1859_v8 = vmul.f32 0.01, %v1805_v59  ;;  %v1808_v7 = vadd.f32 %v7823_v18, %v1807_v6 }
 0x251   : > { %v1893_v10 = vmax.f32 %v1813_v50, %v1861_v4  ;;  %v1862_v58 = vmul.f32 0.01, %v1816_v5  ;;  %v6843_v4 = vld [vmem:[%s9550_s4 + $0xd8] sm:$0xff]  }
 0x252   : > { %v1891_v11 = vmax.f32 %v1805_v59, %v1859_v8  ;;  %v1860_v13 = vmul.f32 0.01, %v1808_v7  ;;  %v2437_v47 = vpop.permute.xlu0 %2436  ;;  %v6845_v8 = vld [vmem:[%s9550_s4 + $0xe0] sm:$0xff]  }
 0x253   : > { %1925 = vst.msk [vmem:[#allocation3 + $0x151] sm:$0xff] %vm407_vm12, %v1893_v10  ;;  %v1894_v17 = vmax.f32 %v1816_v5, %v1862_v58  ;;  %v2638_v34 = vsel %vm407_vm12, %v8031_v48, %v2437_v47  ;;  %v2391_v28 = vpop.permute.xlu1 %2390  ;;  %v6844_v5 = vld [vmem:[%s9550_s4 + $0x98] sm:$0xff]   ;;  %v6846_v47 = vld [vmem:[%s9550_s4 + $0xa0] sm:$0xff]  }
 0x254   : > { %1923 = vst.msk [vmem:[#allocation3 + $0x139] sm:$0xff] %vm407_vm12, %v1891_v11  ;;  %v1892_v19 = vmax.f32 %v1808_v7, %v1860_v13  ;;  %3219 = vmatprep.mubr.bf16.mxu1 %v2638_v34  ;;  %v2578_v45 = vsel %vm407_vm12, %v7910_v20, %v2391_v28  ;;  %v6838_v20 = vld [vmem:[%s9550_s4 + $0xc8] sm:$0xff]  }
 0x255   : > { %1926 = vst.msk [vmem:[#allocation3 + $0x159] sm:$0xff] %vm407_vm12, %v1894_v17  ;;  %3220 = vmatmul.mubr.bf16.gmra.mrb[32].mxu1 %v2574_v25  ;;  %6264 = vmatprep.subr.bf16.mxu0 %v6838_v20  ;;  %v2039_v11 = vld [vmem:[#allocation3 + $0x92] sm:$0xff]  ;;  %v2040_v13 = vld [vmem:[#allocation3 + $0x9a] sm:$0xff] }
 0x256   : > { %1924 = vst.msk [vmem:[#allocation3 + $0x141] sm:$0xff] %vm407_vm12, %v1892_v19  ;;  %v2439_v23 = vpop.permute.xlu0 %2438  ;;  %6265 = vmatpush3.bf16.msra.mxu0 %v6839_v60  ;;  %v8100_v28 = vpack.c.bf16 %v2040_v13, %v2039_v11  ;;  %v6850_v60 = vld [vmem:[%s9550_s4 + $0xb0] sm:$0xff]  }
 0x257   : > { %v2642_v3 = vsel %vm407_vm12, %v8040_v22, %v2439_v23  ;;  %6266 = vmatprep.subr.bf16.mxu0 %v6841_v61  ;;  %v2393_v25 = vpop.permute.xlu1 %2392  ;;  %v6851_v61 = vld [vmem:[%s9550_s4 + $0xf8] sm:$0xff]  }
 0x258   : > { %3227 = vmatprep.mubr.bf16.mxu1 %v2642_v3  ;;  %v2582_v20 = vsel %vm407_vm12, %v7918_v24, %v2393_v25 }
 0x25a   : > { %v2101_v49 = vld [vmem:[#allocation3 + $0x150] sm:$0xff]  ;;  %6267 = vmatpush3.bf16.msra.mxu0 %v6842_v2 }
 0x25b   : > { %v2099_v29 = vld [vmem:[#allocation3 + $0x138] sm:$0xff]  ;;  %6268 = vmatprep.subr.bf16.mxu0 %v6843_v4  ;;  %v6852_v4 = vld [vmem:[%s9550_s4 + $0xb8] sm:$0xff]  }
 0x25c   : > { %v2005_v63 = vld [vmem:[#allocation3 + $0x139] sm:$0xff]  ;;  %v2007_v50 = vld [vmem:[#allocation3 + $0x151] sm:$0xff] }
 0x25d   : > { %3228 = vmatmul.mubr.bf16.gmra.mrb[36].mxu1 %v2578_v45  ;;  %v2100_v30 = vld [vmem:[#allocation3 + $0x140] sm:$0xff]  ;;  %v2102_v38 = vld [vmem:[#allocation3 + $0x158] sm:$0xff] }
 0x25e   : > { %v2006_v31 = vld [vmem:[#allocation3 + $0x141] sm:$0xff]  ;;  %v8047_v36 = vpack.c.bf16 %v2100_v30, %v2099_v29  ;;  %v2008_v56 = vld [vmem:[#allocation3 + $0x159] sm:$0xff]  ;;  %v8067_v55 = vpack.c.bf16 %v2102_v38, %v2101_v49  ;;  %6269 = vmatpush3.bf16.msra.mxu0 %v6844_v5 }
 0x25f   : > { %v8049_v32 = vpack.c.bf16 %v2006_v31, %v2005_v63  ;;  %v8069_v59 = vpack.c.bf16 %v2008_v56, %v2007_v50  ;;  %6270 = vmatprep.subr.bf16.mxu0 %v6845_v8  ;;  %v6847_v45 = vld [vmem:[%s9550_s4 + $0xe8] sm:$0xff]   ;;  %v2041_v31 = vld [vmem:[#allocation3 + $0xaa] sm:$0xff]  ;;  %v6849_v49 = vld [vmem:[%s9550_s4 + $0xf0] sm:$0xff]  }
 0x260   : > { %2452 = vrot.lane.b32.xlu0 %v8047_v36, %s7090_s25  ;;  %v2042_v38 = vld [vmem:[#allocation3 + $0xb2] sm:$0xff] }
 0x261   : > { %2406 = vrot.lane.b32.xlu1 %v8049_v32, %s7090_s25  ;;  %v8115_v41 = vpack.c.bf16 %v2042_v38, %v2041_v31  ;;  %v2196_v31 = vld [vmem:[#allocation3 + $0x142] sm:$0xff] }
 0x262   : > { %6271 = vmatpush3.bf16.msra.mxu0 %v6846_v47 }
 0x263   : > { %6272 = vmatprep.subr.bf16.mxu0 %v6847_v45  ;;  %v2191_v45 = vld [vmem:[#allocation3 + $0x10a] sm:$0xff] }
 0x264   : > { %2454 = vrot.lane.b32.xlu0 %v8067_v55, %s7090_s25 }
 0x265   : > { %2408 = vrot.lane.b32.xlu1 %v8069_v59, %s7090_s25 }
 0x266   : > { %6273 = vmatpush3.bf16.msra.mxu0 %v6848_v39 }
 0x267   : > { %6274 = vmatprep.subr.bf16.mxu0 %v6849_v49 }
 0x26a   : > { %6275 = vmatpush3.bf16.msra.mxu0 %v6850_v60 }
 0x26b   : > { %6276 = vmatprep.subr.bf16.mxu0 %v6851_v61 }
 0x26c   : > { %v6674_v6 = vpop.f32.mrb[12].mxu1 }
 0x26d   : > { %v1829_v7 = vadd.f32 %v6674_v6, %v7823_v18  ;;  %v1820_v9 = vpop.f32.mrb[13].mxu1 }
 0x26e   : > { %v1821_v10 = vadd.f32 %v7823_v18, %v1820_v9  ;;  %v6675_v58 = vpop.f32.mrb[14].mxu1  ;;  %6277 = vmatpush3.bf16.msra.mxu0 %v6852_v4 }
 0x26f   : > { %v1865_v15 = vmul.f32 0.01, %v1829_v7  ;;  %v1832_v16 = vadd.f32 %v6675_v58, %v7823_v18  ;;  %v1823_v17 = vpop.f32.mrb[15].mxu1 }
 0x270   : > { %v1863_v34 = vmul.f32 0.01, %v1821_v10  ;;  %v1824_v19 = vadd.f32 %v7823_v18, %v1823_v17  ;;  %v2045_v17 = vld [vmem:[#allocation3 + $0xda] sm:$0xff] }
 0x271   : > { %v1897_v23 = vmax.f32 %v1829_v7, %v1865_v15  ;;  %v1866_v3 = vmul.f32 0.01, %v1832_v16  ;;  %v2044_v15 = vld [vmem:[#allocation3 + $0xca] sm:$0xff] }
 0x272   : > { %v1895_v29 = vmax.f32 %v1821_v10, %v1863_v34  ;;  %v1864_v30 = vmul.f32 0.01, %v1824_v19  ;;  %v2441_v63 = vpop.permute.xlu0 %2440  ;;  %v2046_v34 = vld [vmem:[#allocation3 + $0xe2] sm:$0xff] }
 0x273   : > { %1929 = vst.msk [vmem:[#allocation3 + $0x181] sm:$0xff] %vm407_vm12, %v1897_v23  ;;  %v1898_v18 = vmax.f32 %v1832_v16, %v1866_v3  ;;  %v2646_v56 = vsel %vm407_vm12, %v8100_v28, %v2441_v63  ;;  %v2395_v2 = vpop.permute.xlu1 %2394  ;;  %v2190_v3 = vld [vmem:[#allocation3 + $0xfa] sm:$0xff] }
 0x274   : > { %1927 = vst.msk [vmem:[#allocation3 + $0x169] sm:$0xff] %vm407_vm12, %v1895_v29  ;;  %v1896_v54 = vmax.f32 %v1824_v19, %v1864_v30  ;;  %3235 = vmatprep.mubr.bf16.mxu1 %v2646_v56  ;;  %v2586_v5 = vsel %vm407_vm12, %v7934_v51, %v2395_v2  ;;  %v2043_v51 = vld [vmem:[#allocation3 + $0xc2] sm:$0xff]  ;;  %v8167_v19 = vpack.c.bf16 %v2046_v34, %v2045_v17  ;;  %v2192_v29 = vld [vmem:[#allocation3 + $0x112] sm:$0xff]  ;;  %v2194_v30 = vld [vmem:[#allocation3 + $0x12a] sm:$0xff] }
 0x275   : > { %1930 = vst.msk [vmem:[#allocation3 + $0x189] sm:$0xff] %vm407_vm12, %v1898_v18  ;;  %3236 = vmatmul.mubr.bf16.gmra.mrb[40].mxu1 %v2582_v20  ;;  %v2195_v63 = vld [vmem:[#allocation3 + $0x13a] sm:$0xff]  ;;  %v2197_v18 = vld [vmem:[#allocation3 + $0x152] sm:$0xff] }
 0x276   : > { %1928 = vst.msk [vmem:[#allocation3 + $0x171] sm:$0xff] %vm407_vm12, %v1896_v54  ;;  %v2443_v50 = vpop.permute.xlu0 %2442  ;;  %v8207_v39 = vpack.c.bf16 %v2196_v31, %v2195_v63  ;;  %v2198_v56 = vld [vmem:[#allocation3 + $0x15a] sm:$0xff] }
 0x277   : > { %v2650_v24 = vsel %vm407_vm12, %v8115_v41, %v2443_v50  ;;  %v8217_v20 = vpack.c.bf16 %v2198_v56, %v2197_v18  ;;  %v2221_v31 = vld [vmem:[#allocation3 + $0x38] sm:$0xff] }
 0x278   : > { %3243 = vmatprep.mubr.bf16.mxu1 %v2650_v24  ;;  %v2123_v18 = vld [vmem:[#allocation3 + $0x19] sm:$0xff] }
 0x27a   : > { %v2105_v13 = vld [vmem:[#allocation3 + $0x180] sm:$0xff] }
 0x27b   : > { %v2103_v6 = vld [vmem:[#allocation3 + $0x168] sm:$0xff] }
 0x27c   : > { %v2009_v7 = vld [vmem:[#allocation3 + $0x169] sm:$0xff] }
 0x27d   : > { %3244 = vmatmul.mubr.bf16.gmra.mrb[44].mxu1 %v2586_v5  ;;  %v2104_v8 = vld [vmem:[#allocation3 + $0x170] sm:$0xff]  ;;  %v2106_v11 = vld [vmem:[#allocation3 + $0x188] sm:$0xff]  ;;  %v2298_v5 = vld [vmem:[#allocation3 + $0x199] sm:$0xff] }
 0x27e   : > { %v2010_v9 = vld [vmem:[#allocation3 + $0x171] sm:$0xff]  ;;  %v8134_v10 = vpack.c.bf16 %v2104_v8, %v2103_v6  ;;  %v2122_v47 = vpack.c.bf16 %v2106_v11, %v2105_v13  ;;  %v2201_v61 = vld [vmem:[#allocation3 + $0x182] sm:$0xff] }
 0x27f   : > { %v8136_v58 = vpack.c.bf16 %v2010_v9, %v2009_v7  ;;  %v2199_v50 = vld [vmem:[#allocation3 + $0x16a] sm:$0xff]  ;;  %v2200_v60 = vld [vmem:[#allocation3 + $0x172] sm:$0xff]  ;;  %v2299_v6 = vld [vmem:[#allocation3 + $0x1a1] sm:$0xff] }
 0x280   : > { %2456 = vrot.lane.b32.xlu0 %v8134_v10, %s7090_s25  ;;  %v8225_v24 = vpack.c.bf16 %v2200_v60, %v2199_v50  ;;  %v2202_v2 = vld [vmem:[#allocation3 + $0x18a] sm:$0xff]  ;;  %v2315_v9 = vpack.c.bf16 %v2299_v6, %v2298_v5 }
 0x281   : > { %2410 = vrot.lane.b32.xlu1 %v8136_v58, %s7090_s25  ;;  %v8235_v7 = vpack.c.bf16 %v2202_v2, %v2201_v61  ;;  %v2223_v50 = vld [vmem:[#allocation3 + $0x50] sm:$0xff]  ;;  %v2225_v5 = vld [vmem:[#allocation3 + $0x68] sm:$0xff] }
 0x284   : > { %2458 = vrot.lane.b32.xlu0 %v2122_v47, %s7090_s25 }
 0x285   : > { %2476 = vrot.lane.b32.xlu1 %v7962_v35, %s7090_s25  ;;  %v8157_v35 = vpack.c.bf16 %v2044_v15, %v2043_v51 }
 0x288   : > { %2524 = vrot.lane.b32.xlu0 %v7872_v0, %s7090_s25  ;;  %v2397_v0 = vpop.permute.xlu1 %2396 }
 0x289   : > { %2478 = vrot.lane.b32.xlu1 %v7992_v12, %s7090_s25 }
 0x28c   : > { %2526 = vrot.lane.b32.xlu0 %v7888_v57, %s7090_s25 }
 0x28d   : > { %2480 = vrot.lane.b32.xlu1 %v8001_v14, %s7090_s25 }
 0x290   : > { %2528 = vrot.lane.b32.xlu0 %v7896_v40, %s7090_s25  ;;  %v2590_v40 = vsel %vm407_vm12, %v7945_v62, %v2397_v0 }
 0x291   : > { %2482 = vrot.lane.b32.xlu1 %v8031_v48, %s7090_s25 }
 0x292   : > { %v2445_v16 = vpop.permute.xlu0 %2444 }
 0x293   : > { %v2654_v57 = vsel %vm407_vm12, %v8157_v35, %v2445_v16 }
 0x294   : > { %2530 = vrot.lane.b32.xlu0 %v7912_v21, %s7090_s25  ;;  %3251 = vmatprep.mubr.bf16.mxu1 %v2654_v57  ;;  %v2399_v21 = vpop.permute.xlu1 %2398 }
 0x295   : > { %2484 = vrot.lane.b32.xlu1 %v8040_v22, %s7090_s25  ;;  %3252 = vmatmul.mubr.bf16.gmra.mrb[48].mxu1 %v2590_v40  ;;  %v2594_v62 = vsel %vm407_vm12, %v7969_v42, %v2399_v21  ;;  %v2193_v42 = vld [vmem:[#allocation3 + $0x122] sm:$0xff] }
 0x296   : > { %v2447_v25 = vpop.permute.xlu0 %2446 }
 0x297   : > { %v2658_v23 = vsel %vm407_vm12, %v8167_v19, %v2447_v25 }
 0x298   : > { %2532 = vrot.lane.b32.xlu0 %v7920_v27, %s7090_s25  ;;  %3259 = vmatprep.mubr.bf16.mxu1 %v2658_v23  ;;  %v2189_v27 = vld [vmem:[#allocation3 + $0xf2] sm:$0xff] }
 0x299   : > { %2486 = vrot.lane.b32.xlu1 %v8100_v28, %s7090_s25 }
 0x29c   : > { %2534 = vrot.lane.b32.xlu0 %v7936_v52, %s7090_s25  ;;  %v8189_v52 = vpack.c.bf16 %v2190_v3, %v2189_v27 }
 0x29d   : > { %2488 = vrot.lane.b32.xlu1 %v8115_v41, %s7090_s25  ;;  %3260 = vmatmul.mubr.bf16.gmra.mrb[52].mxu1 %v2594_v62 }
 0x2a0   : > { %2536 = vrot.lane.b32.xlu0 %v7947_v1, %s7090_s25  ;;  %v8195_v1 = vpack.c.bf16 %v2192_v29, %v2191_v45 }
 0x2a1   : > { %2490 = vrot.lane.b32.xlu1 %v8157_v35, %s7090_s25 }
 0x2a4   : > { %2538 = vrot.lane.b32.xlu0 %v7971_v43, %s7090_s25  ;;  %v8201_v43 = vpack.c.bf16 %v2194_v30, %v2193_v42 }
 0x2a5   : > { %2492 = vrot.lane.b32.xlu1 %v8167_v19, %s7090_s25 }
 0x2a8   : > { %2540 = vrot.lane.b32.xlu0 %v7979_v53, %s7090_s25  ;;  %v2401_v53 = vpop.permute.xlu1 %2400 }
 0x2a9   : > { %2494 = vrot.lane.b32.xlu1 %v8189_v52, %s7090_s25 }
 0x2ac   : > { %2542 = vrot.lane.b32.xlu0 %v8010_v37, %s7090_s25 }
 0x2ad   : > { %2496 = vrot.lane.b32.xlu1 %v8195_v1, %s7090_s25 }
 0x2b0   : > { %2544 = vrot.lane.b32.xlu0 %v8021_v46, %s7090_s25  ;;  %v2598_v46 = vsel %vm407_vm12, %v7977_v26, %v2401_v53  ;;  %v2297_v26 = vld [vmem:[#allocation3 + $0x189] sm:$0xff]  ;;  %v2124_v53 = vld [vmem:[#allocation3 + $0x21] sm:$0xff] }
 0x2b1   : > { %2498 = vrot.lane.b32.xlu1 %v8201_v43, %s7090_s25 }
 0x2b2   : > { %v2449_v38 = vpop.permute.xlu0 %2448 }
 0x2b3   : > { %v2662_v37 = vsel %vm407_vm12, %v8189_v52, %v2449_v38 }
 0x2b4   : > { %2546 = vrot.lane.b32.xlu0 %v8049_v32, %s7090_s25  ;;  %3267 = vmatprep.mubr.bf16.mxu1 %v2662_v37  ;;  %v2403_v32 = vpop.permute.xlu1 %2402  ;;  %v2220_v37 = vld [vmem:[#allocation3 + $0x30] sm:$0xff] }
 0x2b5   : > { %2500 = vrot.lane.b32.xlu1 %v8207_v39, %s7090_s25  ;;  %3268 = vmatmul.mubr.bf16.gmra.mrb[56].mxu1 %v2598_v46  ;;  %v2602_v4 = vsel %vm407_vm12, %v8008_v33, %v2403_v32  ;;  %v2252_v46 = vpack.c.bf16 %v2221_v31, %v2220_v37 }
 0x2b6   : > { %v2451_v54 = vpop.permute.xlu0 %2450 }
 0x2b7   : > { %v2666_v49 = vsel %vm407_vm12, %v8195_v1, %v2451_v54  ;;  %v2155_v54 = vpack.c.bf16 %v2124_v53, %v2123_v18  ;;  %v2129_v53 = vld [vmem:[#allocation3 + $0x61] sm:$0xff] }
 0x2b8   : > { %2548 = vrot.lane.b32.xlu0 %v8069_v59, %s7090_s25  ;;  %3275 = vmatprep.mubr.bf16.mxu1 %v2666_v49  ;;  %v2296_v59 = vld [vmem:[#allocation3 + $0x181] sm:$0xff] }
 0x2b9   : > { %2502 = vrot.lane.b32.xlu1 %v8217_v20, %s7090_s25  ;;  %v8233_v8 = vpack.c.bf16 %v2297_v26, %v2296_v59  ;;  %v2222_v26 = vld [vmem:[#allocation3 + $0x48] sm:$0xff]  ;;  %v2126_v59 = vld [vmem:[#allocation3 + $0x39] sm:$0xff] }
 0x2ba   : > { %v2253_v61 = vpack.c.bf16 %v2223_v50, %v2222_v26  ;;  %v2131_v26 = vld [vmem:[#allocation3 + $0x79] sm:$0xff] }
 0x2bc   : > { %2550 = vrot.lane.b32.xlu0 %v8136_v58, %s7090_s25  ;;  %v2405_v58 = vpop.permute.xlu1 %2404 }
 0x2bd   : > { %2504 = vrot.lane.b32.xlu1 %v8225_v24, %s7090_s25  ;;  %3276 = vmatmul.mubr.bf16.gmra.mrb[60].mxu1 %v2602_v4  ;;  %v2606_v13 = vsel %vm407_vm12, %v8019_v44, %v2405_v58 }
 0x2c0   : > { %2552 = vrot.lane.b32.xlu0 %v8233_v8, %s7090_s25 }
 0x2c1   : > { %2506 = vrot.lane.b32.xlu1 %v8235_v7, %s7090_s25 }
 0x2c4   : > { %2554 = vrot.lane.b32.xlu0 %v2315_v9, %s7090_s25  ;;  %v2125_v9 = vld [vmem:[#allocation3 + $0x31] sm:$0xff] }
 0x2d2   : > { %v2453_v11 = vpop.permute.xlu0 %2452 }
 0x2d3   : > { %v2670_v33 = vsel %vm407_vm12, %v8201_v43, %v2453_v11  ;;  %v2407_v15 = vpop.permute.xlu1 %2406  ;;  %v2156_v11 = vpack.c.bf16 %v2126_v59, %v2125_v9 }
 0x2d4   : > { %3283 = vmatprep.mubr.bf16.mxu1 %v2670_v33  ;;  %v2610_v0 = vsel %vm407_vm12, %v8047_v36, %v2407_v15  ;;  %v2224_v33 = vld [vmem:[#allocation3 + $0x60] sm:$0xff] }
 0x2d5   : > { %3284 = vmatmul.mubr.bf16.gmra.mrb[64].mxu1 %v2606_v13  ;;  %v2254_v13 = vpack.c.bf16 %v2225_v5, %v2224_v33  ;;  %v2227_v15 = vld [vmem:[#allocation3 + $0x80] sm:$0xff] }
 0x2d6   : > { %v2455_v47 = vpop.permute.xlu0 %2454 }
 0x2d7   : > { %v2674_v51 = vsel %vm407_vm12, %v8207_v39, %v2455_v47  ;;  %v2409_v44 = vpop.permute.xlu1 %2408 }
 0x2d8   : > { %3291 = vmatprep.mubr.bf16.mxu1 %v2674_v51  ;;  %v2614_v42 = vsel %vm407_vm12, %v8067_v55, %v2409_v44 }
 0x2dd   : > { %3292 = vmatmul.mubr.bf16.gmra.mrb[68].mxu1 %v2610_v0 }
 0x2e8   : > { %v6166_v16 = vpop.f32.mrb[16].mxu1 }
 0x2e9   : > { %v6167_v17 = vpop.f32.mrb[17].mxu1 }
 0x2ea   : > { %v8250_v34 = vadd.f32 %v6167_v17, %v6166_v16  ;;  %v6169_v57 = vpop.f32.mrb[18].mxu1  ;;  %v2127_v17 = vld [vmem:[#allocation3 + $0x49] sm:$0xff] }
 0x2eb   : > { %v6170_v40 = vpop.f32.mrb[19].mxu1 }
 0x2ec   : > { %v8252_v25 = vadd.f32 %v6170_v40, %v6169_v57 }
 0x2f0   : > { %v6172_v23 = vpop.f32.mrb[20].mxu1 }
 0x2f1   : > { %v6173_v21 = vpop.f32.mrb[21].mxu1 }
 0x2f2   : > { %v8254_v62 = vadd.f32 %v6173_v21, %v6172_v23  ;;  %v2457_v27 = vpop.permute.xlu0 %2456  ;;  %v6175_v45 = vpop.f32.mrb[22].mxu1  ;;  %v2226_v23 = vld [vmem:[#allocation3 + $0x78] sm:$0xff] }
 0x2f3   : > { %v2411_v3 = vpop.permute.xlu1 %2410  ;;  %v2678_v36 = vsel %vm407_vm12, %v8217_v20, %v2457_v27  ;;  %v6176_v29 = vpop.f32.mrb[23].mxu1  ;;  %v2255_v27 = vpack.c.bf16 %v2227_v15, %v2226_v23  ;;  %v2234_v23 = vld [vmem:[#allocation3 + $0xd8] sm:$0xff] }
 0x2f4   : > { %3299 = vmatprep.mubr.bf16.mxu1 %v2678_v36  ;;  %v8260_v30 = vadd.f32 %v6176_v29, %v6175_v45  ;;  %v2618_v32 = vsel %vm407_vm12, %v8134_v10, %v2411_v3  ;;  %v2130_v36 = vld [vmem:[#allocation3 + $0x69] sm:$0xff] }
 0x2f5   : > { %3300 = vmatmul.mubr.bf16.gmra.mrb[72].mxu1 %v2614_v42  ;;  %v2229_v42 = vld [vmem:[#allocation3 + $0x98] sm:$0xff]  ;;  %v2158_v18 = vpack.c.bf16 %v2130_v36, %v2129_v53 }
 0x2f6   : > { %v2459_v63 = vpop.permute.xlu0 %2458 }
 0x2f7   : > { %v2682_v38 = vsel %vm407_vm12, %v8225_v24, %v2459_v63  ;;  %v2477_v56 = vpop.permute.xlu1 %2476 }
 0x2f8   : > { %3307 = vmatprep.mubr.bf16.mxu1 %v2682_v38  ;;  %v2686_v55 = vsel %vm407_vm12, %v2155_v54, %v2477_v56  ;;  %v2228_v56 = vld [vmem:[#allocation3 + $0x90] sm:$0xff] }
 0x2f9   : > { %v2256_v54 = vpack.c.bf16 %v2229_v42, %v2228_v56  ;;  %v2236_v56 = vld [vmem:[#allocation3 + $0xf0] sm:$0xff] }
 0x2fa   : > { %v2525_v49 = vpop.permute.xlu0 %2524 }
 0x2fb   : > { %v2750_v60 = vsel %vm407_vm12, %v2252_v46, %v2525_v49  ;;  %v2479_v6 = vpop.permute.xlu1 %2478 }
 0x2fc   : > { %3348 = vmatprep.mubr.bf16.mxu0 %v2750_v60  ;;  %v2690_v10 = vsel %vm407_vm12, %v2156_v11, %v2479_v6  ;;  %v2132_v60 = vld [vmem:[#allocation3 + $0x81] sm:$0xff] }
 0x2fd   : > { %3308 = vmatmul.mubr.bf16.gmra.mrb[76].mxu1 %v2618_v32  ;;  %3349 = vmatmul.mubr.bf16.vlgmr.msra.gmra.mrb[16].mxu0 %v2686_v55  ;;  %v2231_v55 = vld [vmem:[#allocation3 + $0xb0] sm:$0xff]  ;;  %v2233_v6 = vld [vmem:[#allocation3 + $0xc8] sm:$0xff] }
 0x2fe   : > { %v2527_v2 = vpop.permute.xlu0 %2526  ;;  %6684 = vmatprep.mubr.msk.bf16.mxu1 %vm407_vm12, %v7992_v12  ;;  %v2128_v12 = vld [vmem:[#allocation3 + $0x51] sm:$0xff] }
 0x2ff   : > { %v2754_v4 = vsel %vm407_vm12, %v2253_v61, %v2527_v2  ;;  %v2481_v0 = vpop.permute.xlu1 %2480  ;;  %v2157_v44 = vpack.c.bf16 %v2128_v12, %v2127_v17  ;;  %v2159_v2 = vpack.c.bf16 %v2132_v60, %v2131_v26  ;;  %v2347_v60 = vld [vmem:[#allocation3 + $0x1a2] sm:$0xff] }
 0x300   : > { %3356 = vmatprep.mubr.bf16.mxu0 %v2754_v4  ;;  %v2230_v4 = vld [vmem:[#allocation3 + $0xa8] sm:$0xff] }
 0x301   : > { %v2694_v3 = vsel %vm407_vm12, %v2157_v44, %v2481_v0  ;;  %v2257_v59 = vpack.c.bf16 %v2231_v55, %v2230_v4  ;;  %v2140_v55 = vld [vmem:[#allocation3 + $0xe1] sm:$0xff] }
 0x302   : > { %v2529_v58 = vpop.permute.xlu0 %2528 }
 0x303   : > { %v2758_v47 = vsel %vm407_vm12, %v2254_v13, %v2529_v58  ;;  %v2483_v63 = vpop.permute.xlu1 %2482  ;;  %v2133_v58 = vld [vmem:[#allocation3 + $0x91] sm:$0xff]  ;;  %v2232_v13 = vld [vmem:[#allocation3 + $0xc0] sm:$0xff] }
 0x304   : > { %v2698_v49 = vsel %vm407_vm12, %v2158_v18, %v2483_v63 }
 0x305   : > { %3357 = vmatmul.mubr.bf16.gmra.mrb[20].mxu0 %v2690_v10  ;;  %6685 = vmatmul.mubr.msk.bf16.vlgmr.msra.gmra.mrb[80].mxu1 %vm407_vm12, %v8001_v14  ;;  %v2258_v10 = vpack.c.bf16 %v2233_v6, %v2232_v13  ;;  %v2241_v6 = vld [vmem:[#allocation3 + $0x128] sm:$0xff]  ;;  %v2240_v13 = vld [vmem:[#allocation3 + $0x120] sm:$0xff] }
 0x306   : > { %3364 = vmatprep.mubr.bf16.mxu0 %v2758_v47  ;;  %6688 = vmatprep.mubr.msk.bf16.mxu1 %vm407_vm12, %v8031_v48  ;;  %v2531_v57 = vpop.permute.xlu0 %2530 }
 0x307   : > { %v2762_v48 = vsel %vm407_vm12, %v2255_v27, %v2531_v57  ;;  %v2485_v32 = vpop.permute.xlu1 %2484 }
 0x308   : > { %v6178_v51 = vpop.f32.mrb[24].mxu1  ;;  %v2702_v5 = vsel %vm407_vm12, %v2159_v2, %v2485_v32  ;;  %v2239_v32 = vld [vmem:[#allocation3 + $0x110] sm:$0xff] }
 0x309   : > { %v6179_v16 = vpop.f32.mrb[25].mxu1 }
 0x30a   : > { %v8277_v40 = vadd.f32 %v6179_v16, %v6178_v51  ;;  %v6181_v21 = vpop.f32.mrb[26].mxu1  ;;  %v2533_v38 = vpop.permute.xlu0 %2532  ;;  %v2235_v51 = vld [vmem:[#allocation3 + $0xe0] sm:$0xff]  ;;  %v2135_v16 = vld [vmem:[#allocation3 + $0xa9] sm:$0xff] }
 0x30b   : > { %v6182_v14 = vpop.f32.mrb[27].mxu1  ;;  %v2487_v9 = vpop.permute.xlu1 %2486  ;;  %v2259_v27 = vpack.c.bf16 %v2235_v51, %v2234_v23  ;;  %v2243_v51 = vld [vmem:[#allocation3 + $0x140] sm:$0xff] }
 0x30c   : > { %v8280_v45 = vadd.f32 %v6182_v14, %v6181_v21 }
 0x30d   : > { %3365 = vmatmul.mubr.bf16.gmra.mrb[24].mxu0 %v2694_v3  ;;  %6689 = vmatmul.mubr.msk.bf16.gmra.mrb[84].mxu1 %vm407_vm12, %v8040_v22 }
 0x30e   : > { %3372 = vmatprep.mubr.bf16.mxu0 %v2762_v48  ;;  %6692 = vmatprep.mubr.msk.bf16.mxu1 %vm407_vm12, %v8100_v28  ;;  %v2766_v28 = vsel %vm407_vm12, %v2256_v54, %v2533_v38  ;;  %v2535_v61 = vpop.permute.xlu0 %2534  ;;  %v2138_v48 = vld [vmem:[#allocation3 + $0xc9] sm:$0xff] }
 0x30f   : > { %v2489_v15 = vpop.permute.xlu1 %2488 }
 0x310   : > { %v6184_v29 = vpop.f32.mrb[28].mxu1 }
 0x311   : > { %v6185_v31 = vpop.f32.mrb[29].mxu1 }
 0x312   : > { %v8287_v37 = vadd.f32 %v6185_v31, %v6184_v29  ;;  %v6187_v46 = vpop.f32.mrb[30].mxu1  ;;  %v2537_v11 = vpop.permute.xlu0 %2536  ;;  %v2237_v29 = vld [vmem:[#allocation3 + $0xf8] sm:$0xff]  ;;  %v2137_v31 = vld [vmem:[#allocation3 + $0xc1] sm:$0xff] }
 0x313   : > { %v6188_v22 = vpop.f32.mrb[31].mxu1  ;;  %v2491_v42 = vpop.permute.xlu1 %2490  ;;  %v2162_v18 = vpack.c.bf16 %v2138_v48, %v2137_v31  ;;  %v2260_v54 = vpack.c.bf16 %v2237_v29, %v2236_v56  ;;  %v2146_v29 = vld [vmem:[#allocation3 + $0x129] sm:$0xff] }
 0x314   : > { %v8290_v50 = vadd.f32 %v6188_v22, %v6187_v46 }
 0x315   : > { %3373 = vmatmul.mubr.bf16.gmra.mrb[28].mxu0 %v2698_v49  ;;  %6693 = vmatmul.mubr.msk.bf16.gmra.mrb[88].mxu1 %vm407_vm12, %v8115_v41  ;;  %v2770_v41 = vsel %vm407_vm12, %v2257_v59, %v2535_v61  ;;  %v2714_v22 = vsel %vm407_vm12, %v2162_v18, %v2491_v42  ;;  %v2139_v61 = vld [vmem:[#allocation3 + $0xd9] sm:$0xff]  ;;  %v2145_v18 = vld [vmem:[#allocation3 + $0x121] sm:$0xff] }
 0x316   : > { %3380 = vmatprep.mubr.bf16.mxu0 %v2766_v28  ;;  %6696 = vmatprep.mubr.msk.bf16.mxu1 %vm407_vm12, %v8157_v35  ;;  %v2134_v35 = vld [vmem:[#allocation3 + $0x99] sm:$0xff]  ;;  %v2539_v17 = vpop.permute.xlu0 %2538  ;;  %v2163_v59 = vpack.c.bf16 %v2140_v55, %v2139_v61  ;;  %v2247_v61 = vld [vmem:[#allocation3 + $0x170] sm:$0xff] }
 0x317   : > { %v2160_v33 = vpack.c.bf16 %v2134_v35, %v2133_v58  ;;  %v2346_v28 = vld [vmem:[#allocation3 + $0x19a] sm:$0xff]  ;;  %v2493_v26 = vpop.permute.xlu1 %2492  ;;  %v2141_v58 = vld [vmem:[#allocation3 + $0xf1] sm:$0xff] }
 0x318   : > { %v2363_v2 = vpack.c.bf16 %v2347_v60, %v2346_v28  ;;  %v2718_v35 = vsel %vm407_vm12, %v2163_v59, %v2493_v26  ;;  %v2148_v26 = vld [vmem:[#allocation3 + $0x141] sm:$0xff] }
 0x319   : > { %v2706_v47 = vsel %vm407_vm12, %v2160_v33, %v2487_v9 }
 0x31a   : > { %v2541_v53 = vpop.permute.xlu0 %2540 }
 0x31b   : > { %v2495_v9 = vpop.permute.xlu1 %2494 }
 0x31d   : > { %3381 = vmatmul.mubr.bf16.gmra.mrb[32].mxu0 %v2702_v5  ;;  %6697 = vmatmul.mubr.msk.bf16.gmra.mrb[92].mxu1 %vm407_vm12, %v8167_v19  ;;  %v2774_v19 = vsel %vm407_vm12, %v2258_v10, %v2537_v11  ;;  %v2238_v5 = vld [vmem:[#allocation3 + $0x108] sm:$0xff]  ;;  %v2262_v10 = vpack.c.bf16 %v2241_v6, %v2240_v13  ;;  %v2150_v6 = vld [vmem:[#allocation3 + $0x159] sm:$0xff] }
 0x31e   : > { %3388 = vmatprep.mubr.bf16.mxu0 %v2770_v41  ;;  %6700 = vmatprep.mubr.msk.bf16.mxu1 %vm407_vm12, %v8189_v52  ;;  %v2136_v52 = vld [vmem:[#allocation3 + $0xb1] sm:$0xff]  ;;  %v2543_v4 = vpop.permute.xlu0 %2542  ;;  %v2261_v41 = vpack.c.bf16 %v2239_v32, %v2238_v5 }
 0x31f   : > { %v2161_v44 = vpack.c.bf16 %v2136_v52, %v2135_v16  ;;  %v2144_v52 = vld [vmem:[#allocation3 + $0x111] sm:$0xff]  ;;  %v2143_v16 = vld [vmem:[#allocation3 + $0x109] sm:$0xff] }
 0x321   : > { %v2710_v14 = vsel %vm407_vm12, %v2161_v44, %v2489_v15  ;;  %v2497_v15 = vpop.permute.xlu1 %2496 }
 0x322   : > { %v2545_v11 = vpop.permute.xlu0 %2544 }
 0x325   : > { %3389 = vmatmul.mubr.bf16.gmra.mrb[36].mxu0 %v2706_v47  ;;  %6701 = vmatmul.mubr.msk.bf16.gmra.mrb[96].mxu1 %vm407_vm12, %v8195_v1  ;;  %v2499_v31 = vpop.permute.xlu1 %2498 }
 0x326   : > { %3396 = vmatprep.mubr.bf16.mxu0 %v2774_v19  ;;  %6704 = vmatprep.mubr.msk.bf16.mxu1 %vm407_vm12, %v8201_v43  ;;  %v2778_v43 = vsel %vm407_vm12, %v2259_v27, %v2539_v17  ;;  %v2790_v19 = vsel %vm407_vm12, %v2262_v10, %v2545_v11  ;;  %v2547_v17 = vpop.permute.xlu0 %2546  ;;  %v2242_v27 = vld [vmem:[#allocation3 + $0x138] sm:$0xff]  ;;  %v2248_v10 = vld [vmem:[#allocation3 + $0x180] sm:$0xff] }
 0x327   : > { %v2149_v11 = vld [vmem:[#allocation3 + $0x151] sm:$0xff] }
 0x328   : > { %v6190_v12 = vpop.f32.mrb[32].mxu1  ;;  %v2168_v13 = vpack.c.bf16 %v2150_v6, %v2149_v11 }
 0x329   : > { %v6191_v0 = vpop.f32.mrb[33].mxu1 }
 0x32a   : > { %v8309_v57 = vadd.f32 %v6191_v0, %v6190_v12  ;;  %v6193_v21 = vpop.f32.mrb[34].mxu1  ;;  %v2549_v56 = vpop.permute.xlu0 %2548 }
 0x32b   : > { %v6194_v1 = vpop.f32.mrb[35].mxu1 }
 0x32c   : > { %v8312_v3 = vadd.f32 %v6194_v1, %v6193_v21  ;;  %v2165_v21 = vpack.c.bf16 %v2144_v52, %v2143_v16  ;;  %v2250_v52 = vld [vmem:[#allocation3 + $0x198] sm:$0xff] }
 0x32d   : > { %3397 = vmatmul.mubr.bf16.gmra.mrb[40].mxu0 %v2710_v14  ;;  %6705 = vmatmul.mubr.msk.bf16.gmra.mrb[100].mxu1 %vm407_vm12, %v8207_v39  ;;  %v2263_v14 = vpack.c.bf16 %v2243_v51, %v2242_v27  ;;  %v2151_v27 = vld [vmem:[#allocation3 + $0x169] sm:$0xff] }
 0x32e   : > { %3404 = vmatprep.mubr.bf16.mxu0 %v2778_v43  ;;  %6708 = vmatprep.mubr.msk.bf16.mxu1 %vm407_vm12, %v8217_v20  ;;  %v2782_v20 = vsel %vm407_vm12, %v2260_v54, %v2541_v53  ;;  %v2726_v48 = vsel %vm407_vm12, %v2165_v21, %v2497_v15  ;;  %v2551_v59 = vpop.permute.xlu0 %2550  ;;  %v6853_v15 = vld [vmem:[%s9552_s6 + $0x40] sm:$0xff]  }
 0x32f   : > { %6394 = vmatprep.subr.bf16.mxu0 %v6853_v15 }
 0x330   : > { %v6196_v36 = vpop.f32.mrb[36].mxu1 }
 0x331   : > { %v6197_v63 = vpop.f32.mrb[37].mxu1 }
 0x332   : > { %v8319_v38 = vadd.f32 %v6197_v63, %v6196_v36  ;;  %v6199_v46 = vpop.f32.mrb[38].mxu1  ;;  %v2794_v36 = vsel %vm407_vm12, %v2263_v14, %v2547_v17  ;;  %v2245_v63 = vld [vmem:[#allocation3 + $0x158] sm:$0xff] }
 0x333   : > { %v6200_v39 = vpop.f32.mrb[39].mxu1 }
 0x334   : > { %v8322_v49 = vadd.f32 %v6200_v39, %v6199_v46  ;;  %v2166_v39 = vpack.c.bf16 %v2146_v29, %v2145_v18  ;;  %v3782_v18 = vld [vmem:[#allocation3 + $0x1] sm:$0xff] }
 0x335   : > { %3405 = vmatmul.mubr.bf16.gmra.mrb[44].mxu0 %v2714_v22  ;;  %6709 = vmatmul.mubr.msk.bf16.gmra.mrb[104].mxu1 %vm407_vm12, %v8225_v24  ;;  %v2786_v24 = vsel %vm407_vm12, %v2261_v41, %v2543_v4  ;;  %v2244_v22 = vld [vmem:[#allocation3 + $0x150] sm:$0xff]  ;;  %v2147_v4 = vld [vmem:[#allocation3 + $0x139] sm:$0xff]  ;;  %v2246_v41 = vld [vmem:[#allocation3 + $0x168] sm:$0xff] }
 0x336   : > { %3412 = vmatprep.mubr.bf16.mxu0 %v2782_v20  ;;  %6712 = vmatprep.mubr.msk.bf16.mxu1 %vm407_vm12, %v8235_v7  ;;  %v2142_v7 = vld [vmem:[#allocation3 + $0xf9] sm:$0xff]  ;;  %v2264_v28 = vpack.c.bf16 %v2245_v63, %v2244_v22  ;;  %v2730_v55 = vsel %vm407_vm12, %v2166_v39, %v2499_v31  ;;  %v2167_v5 = vpack.c.bf16 %v2148_v26, %v2147_v4  ;;  %v6854_v31 = vld [vmem:[%s9552_s6] sm:$0xff]  }
 0x337   : > { %v2164_v33 = vpack.c.bf16 %v2142_v7, %v2141_v58  ;;  %6395 = vmatpush3.bf16.msra.mxu0 %v6854_v31  ;;  %v6856_v4 = vld [vmem:[%s9552_s6 + $0x8] sm:$0xff]   ;;  %v6865_v31 = vld [vmem:[%s9552_s6 + $0x70] sm:$0xff]  }
 0x338   : > { %v2798_v32 = vsel %vm407_vm12, %v2264_v28, %v2549_v56  ;;  %v3783_v56 = vld [vmem:[#allocation3 + $0x9] sm:$0xff] }
 0x339   : > { %v2722_v47 = vsel %vm407_vm12, %v2164_v33, %v2495_v9  ;;  %v2249_v9 = vld [vmem:[#allocation3 + $0x188] sm:$0xff]  ;;  %v2553_v33 = vpop.permute.xlu0 %2552 }
 0x33d   : > { %3413 = vmatmul.mubr.bf16.gmra.mrb[48].mxu0 %v2718_v35  ;;  %6713 = vmatmul.mubr.msk.bf16.gmra.mrb[108].mxu1 %vm407_vm12, %v2363_v2  ;;  %v2501_v2 = vpop.permute.xlu1 %2500  ;;  %v2265_v35 = vpack.c.bf16 %v2247_v61, %v2246_v41  ;;  %v2555_v17 = vpop.permute.xlu0 %2554 }
 0x33e   : > { %3420 = vmatprep.mubr.bf16.mxu0 %v2786_v24  ;;  %v2734_v24 = vsel %vm407_vm12, %v2167_v5, %v2501_v2  ;;  %v6855_v2 = vld [vmem:[%s9552_s6 + $0x48] sm:$0xff]  }
 0x33f   : > { %v2802_v7 = vsel %vm407_vm12, %v2265_v35, %v2551_v59  ;;  %6396 = vmatprep.subr.bf16.mxu0 %v6855_v2  ;;  %v6857_v59 = vld [vmem:[%s9552_s6 + $0x50] sm:$0xff]   ;;  %v8428_v2 = vld [vmem:[%s9551_s5] ss:$0 sm:$0xff] }
 0x340   : > { %6397 = vmatpush3.bf16.msra.mxu0 %v6856_v4 }
 0x341   : > { %v2503_v58 = vpop.permute.xlu1 %2502  ;;  %6398 = vmatprep.subr.bf16.mxu0 %v6857_v59 }
 0x345   : > { %3421 = vmatmul.mubr.bf16.gmra.mrb[52].mxu0 %v2722_v47  ;;  %v2266_v47 = vpack.c.bf16 %v2249_v9, %v2248_v10 }
 0x346   : > { %3428 = vmatprep.mubr.bf16.mxu0 %v2790_v19  ;;  %v2738_v19 = vsel %vm407_vm12, %v2168_v13, %v2503_v58 }
 0x347   : > { %v2806_v51 = vsel %vm407_vm12, %v2266_v47, %v2553_v33  ;;  %v6859_v47 = vld [vmem:[%s9552_s6 + $0x58] sm:$0xff]  }
 0x348   : > { %v6202_v12 = vpop.f32.mrb[40].mxu1 }
 0x349   : > { %v6203_v0 = vpop.f32.mrb[41].mxu1 }
 0x34a   : > { %v8334_v44 = vadd.f32 %v6203_v0, %v6202_v12  ;;  %v6205_v23 = vpop.f32.mrb[42].mxu1  ;;  %v2251_v12 = vld [vmem:[#allocation3 + $0x1a0] sm:$0xff]  ;;  %v2152_v0 = vld [vmem:[#allocation3 + $0x171] sm:$0xff] }
 0x34b   : > { %v6206_v1 = vpop.f32.mrb[43].mxu1  ;;  %v2267_v16 = vpack.c.bf16 %v2251_v12, %v2250_v52  ;;  %v2169_v14 = vpack.c.bf16 %v2152_v0, %v2151_v27  ;;  %v6861_v52 = vld [vmem:[%s9552_s6 + $0x60] sm:$0xff]  }
 0x34c   : > { %v8336_v43 = vadd.f32 %v6206_v1, %v6205_v23  ;;  %v2505_v23 = vpop.permute.xlu1 %2504 }
 0x34d   : > { %3429 = vmatmul.mubr.bf16.gmra.mrb[56].mxu0 %v2726_v48  ;;  %v2810_v29 = vsel %vm407_vm12, %v2267_v16, %v2555_v17  ;;  %v2742_v63 = vsel %vm407_vm12, %v2169_v14, %v2505_v23  ;;  %v6862_v23 = vld [vmem:[%s9552_s6 + $0x20] sm:$0xff]  }
 0x34e   : > { %3436 = vmatprep.mubr.bf16.mxu0 %v2794_v36 }
 0x350   : > { %v6208_v42 = vpop.f32.mrb[44].mxu1  ;;  %v2507_v39 = vpop.permute.xlu1 %2506 }
 0x351   : > { %v6209_v53 = vpop.f32.mrb[45].mxu1  ;;  %v2746_v26 = vsel %vm407_vm12, %v8233_v8, %v2507_v39 }
 0x352   : > { %v8340_v46 = vadd.f32 %v6209_v53, %v6208_v42  ;;  %v6211_v54 = vpop.f32.mrb[46].mxu1 }
 0x353   : > { %v6212_v20 = vpop.f32.mrb[47].mxu1 }
 0x354   : > { %v8342_v60 = vadd.f32 %v6212_v20, %v6211_v54  ;;  %v3814_v54 = vpack.c.bf16 %v3783_v56, %v3782_v18  ;;  %v6866_v18 = vld [vmem:[%s9552_s6 + $0x30] sm:$0xff]  }
 0x355   : > { %3437 = vmatmul.mubr.bf16.gmra.mrb[60].mxu0 %v2730_v55 }
 0x356   : > { %3444 = vmatprep.mubr.bf16.mxu0 %v2798_v32  ;;  %4182 = vrot.lane.b32.xlu1 %v3814_v54, %s7090_s25 }
 0x35d   : > { %3445 = vmatmul.mubr.bf16.gmra.mrb[64].mxu0 %v2734_v24 }
 0x35e   : > { %3452 = vmatprep.mubr.bf16.mxu0 %v2802_v7  ;;  %v6858_v7 = vld [vmem:[%s9552_s6 + $0x10] sm:$0xff]  }
 0x35f   : > { %6399 = vmatpush3.bf16.msra.mxu0 %v6858_v7 }
 0x360   : > { %6400 = vmatprep.subr.bf16.mxu0 %v6859_v47 }
 0x365   : > { %3453 = vmatmul.mubr.bf16.gmra.mrb[68].mxu0 %v2738_v19  ;;  %v6860_v19 = vld [vmem:[%s9552_s6 + $0x18] sm:$0xff]  }
 0x366   : > { %3460 = vmatprep.mubr.bf16.mxu0 %v2806_v51  ;;  %6401 = vmatpush3.bf16.msra.mxu0 %v6860_v19 }
 0x367   : > { %6402 = vmatprep.subr.bf16.mxu0 %v6861_v52 }
 0x368   : > { %v6214_v21 = vpop.f32.mrb[48].mxu1 }
 0x369   : > { %v6215_v1 = vpop.f32.mrb[49].mxu1 }
 0x36a   : > { %v8353_v48 = vadd.f32 %v6215_v1, %v6214_v21  ;;  %v6217_v36 = vpop.f32.mrb[50].mxu1  ;;  %6403 = vmatpush3.bf16.msra.mxu0 %v6862_v23 }
 0x36b   : > { %v6218_v42 = vpop.f32.mrb[51].mxu1 }
 0x36c   : > { %v8360_v53 = vadd.f32 %v6218_v42, %v6217_v36  ;;  %v6863_v42 = vld [vmem:[%s9552_s6 + $0x68] sm:$0xff]  }
 0x36d   : > { %3461 = vmatmul.mubr.bf16.gmra.mrb[72].mxu0 %v2742_v63  ;;  %6404 = vmatprep.subr.bf16.mxu0 %v6863_v42  ;;  %v6864_v63 = vld [vmem:[%s9552_s6 + $0x28] sm:$0xff]   ;;  %v3201_v42 = vadd.f32 %v8260_v30, %v8428_v2  ;;  %v8452_v30 = vld [vmem:[%s9552_s6 + $0x100] sm:$0xff]  }
 0x36e   : > { %3468 = vmatprep.mubr.bf16.mxu0 %v2810_v29  ;;  %6405 = vmatpush3.bf16.msra.mxu0 %v6864_v63 }
 0x36f   : > { %6406 = vmatprep.subr.bf16.mxu0 %v6865_v31 }
 0x370   : > { %v6220_v22 = vpop.f32.mrb[52].mxu1 }
 0x371   : > { %v6221_v20 = vpop.f32.mrb[53].mxu1 }
 0x372   : > { %v8363_v28 = vadd.f32 %v6221_v20, %v6220_v22  ;;  %v6223_v55 = vpop.f32.mrb[54].mxu1  ;;  %6407 = vmatpush3.bf16.msra.mxu0 %v6866_v18 }
 0x373   : > { %v6224_v32 = vpop.f32.mrb[55].mxu1 }
 0x374   : > { %v8367_v61 = vadd.f32 %v6224_v32, %v6223_v55 }
 0x375   : > { %3469 = vmatmul.mubr.bf16.gmra.mrb[76].mxu0 %v2746_v26 }
 0x388   : > { %v6226_v5 = vpop.f32.mrb[56].mxu1 }
 0x389   : > { %v6227_v8 = vpop.f32.mrb[57].mxu1 }
 0x38a   : > { %v8378_v41 = vadd.f32 %v6227_v8, %v6226_v5  ;;  %v6229_v35 = vpop.f32.mrb[58].mxu1  ;;  %v3190_v5 = vadd.f32 %v8250_v34, %v8428_v2  ;;  %v6868_v34 = vld [vmem:[%s9552_s6 + $0x38] sm:$0xff]  }
 0x38b   : > { %v6230_v24 = vpop.f32.mrb[59].mxu1 }
 0x38c   : > { %v8383_v6 = vadd.f32 %v6230_v24, %v6229_v35 }
 0x390   : > { %v6232_v9 = vpop.f32.mrb[60].mxu1 }
 0x391   : > { %v6233_v58 = vpop.f32.mrb[61].mxu1 }
 0x392   : > { %v8385_v11 = vadd.f32 %v6233_v58, %v6232_v9  ;;  %v6235_v33 = vpop.f32.mrb[62].mxu1 }
 0x393   : > { %v6236_v13 = vpop.f32.mrb[63].mxu1 }
 0x394   : > { %v8387_v10 = vadd.f32 %v6236_v13, %v6235_v33  ;;  %v3193_v33 = vadd.f32 %v8252_v25, %v8428_v2  ;;  %v3198_v25 = vadd.f32 %v8254_v62, %v8428_v2 }
 0x3a8   : > { %v6238_v12 = vpop.f32.mrb[64].mxu1 }
 0x3a9   : > { %v6239_v51 = vpop.f32.mrb[65].mxu1 }
 0x3aa   : > { %v8398_v15 = vadd.f32 %v6239_v51, %v6238_v12  ;;  %v6241_v0 = vpop.f32.mrb[66].mxu1  ;;  %v6867_v12 = vld [vmem:[%s9552_s6 + $0x78] sm:$0xff]  }
 0x3ab   : > { %v6242_v16 = vpop.f32.mrb[67].mxu1  ;;  %6408 = vmatprep.subr.bf16.mxu0 %v6867_v12 }
 0x3ac   : > { %v8400_v17 = vadd.f32 %v6242_v16, %v6241_v0  ;;  %6409 = vmatpush3.bf16.msra.mxu0 %v6868_v34 }
 0x3ad   : > { %6716 = vmatprep.subr.bf16.mxu0 %v8452_v30 }
 0x3b0   : > { %v6244_v21 = vpop.f32.mrb[68].mxu1 }
 0x3b1   : > { %v6245_v27 = vpop.f32.mrb[69].mxu1 }
 0x3b2   : > { %v8405_v1 = vadd.f32 %v6245_v27, %v6244_v21  ;;  %v6247_v14 = vpop.f32.mrb[70].mxu1 }
 0x3b3   : > { %v6248_v36 = vpop.f32.mrb[71].mxu1 }
 0x3b4   : > { %v8407_v29 = vadd.f32 %v6248_v36, %v6247_v14 }
 0x3c8   : > { %v6250_v56 = vpop.f32.mrb[72].mxu1 }
 0x3c9   : > { %v6251_v54 = vpop.f32.mrb[73].mxu1 }
 0x3ca   : > { %v8421_v39 = vadd.f32 %v6251_v54, %v6250_v56  ;;  %v6253_v22 = vpop.f32.mrb[74].mxu1 }
 0x3cb   : > { %v6254_v20 = vpop.f32.mrb[75].mxu1 }
 0x3cc   : > { %v8423_v55 = vadd.f32 %v6254_v20, %v6253_v22 }
 0x3d0   : > { %v6256_v32 = vpop.f32.mrb[76].mxu1  ;;  %v6278_v26 = vpop.f32.mrb[16].mxu0 }
 0x3d1   : > { %v6257_v4 = vpop.f32.mrb[77].mxu1  ;;  %v6279_v59 = vpop.f32.mrb[17].mxu0 }
 0x3d2   : > { %v8432_v8 = vadd.f32 %v6257_v4, %v6256_v32  ;;  %v6280_v35 = vadd.f32 %v6279_v59, %v6278_v26  ;;  %v6259_v24 = vpop.f32.mrb[78].mxu1  ;;  %v6281_v7 = vpop.f32.mrb[18].mxu0 }
 0x3d3   : > { %v6260_v9 = vpop.f32.mrb[79].mxu1  ;;  %v6282_v58 = vpop.f32.mrb[19].mxu0 }
 0x3d4   : > { %v8436_v13 = vadd.f32 %v6260_v9, %v6259_v24  ;;  %v6283_v47 = vadd.f32 %v6282_v58, %v6281_v7  ;;  %v3351_v19 = vadd.f32 %v6280_v35, %v3190_v5  ;;  %v3206_v58 = vadd.f32 %v8277_v40, %v8428_v2  ;;  %v6870_v40 = vld [vmem:[%s9552_s6 + $0xc0] sm:$0xff]  }
 0x3d5   : > { %6506 = vmatprep.subr.bf16.mxu1 %v6870_v40 }
 0x3d6   : > { %v3354_v52 = vadd.f32 %v6283_v47, %v3193_v33 }
 0x3d8   : > { %v6284_v51 = vpop.f32.mrb[20].mxu0  ;;  %v6686_v0 = vpop.f32.mrb[80].mxu1 }
 0x3d9   : > { %v6285_v16 = vpop.f32.mrb[21].mxu0  ;;  %v3511_v23 = vpop.f32.mrb[81].mxu1 }
 0x3da   : > { %v6286_v21 = vadd.f32 %v6285_v16, %v6284_v51  ;;  %v3512_v27 = vadd.f32 %v3511_v23, %v3351_v19  ;;  %v6287_v14 = vpop.f32.mrb[22].mxu0  ;;  %v6687_v36 = vpop.f32.mrb[82].mxu1 }
 0x3db   : > { %v6288_v63 = vpop.f32.mrb[23].mxu0  ;;  %v3514_v31 = vpop.f32.mrb[83].mxu1 }
 0x3dc   : > { %v3359_v18 = vadd.f32 %v6286_v21, %v3198_v25  ;;  %v3638_v56 = vmul.f32 0.01, %v3512_v27  ;;  %v6289_v54 = vadd.f32 %v6288_v63, %v6287_v14  ;;  %v3515_v22 = vadd.f32 %v3514_v31, %v3354_v52  ;;  %v6871_v21 = vld [vmem:[%s9552_s6 + $0x80] sm:$0xff]  }
 0x3dd   : > { %6507 = vmatpush3.bf16.msra.mxu1 %v6871_v21  ;;  %v3214_v31 = vadd.f32 %v8287_v37, %v8428_v2  ;;  %v6873_v21 = vld [vmem:[%s9552_s6 + $0x88] sm:$0xff]  }
 0x3de   : > { %v3520_v20 = vadd.f32 %v6686_v0, %v3359_v18  ;;  %v3670_v32 = vmax.f32 %v3512_v27, %v3638_v56  ;;  %v3362_v26 = vadd.f32 %v6289_v54, %v3201_v42  ;;  %v3639_v4 = vmul.f32 0.01, %v3515_v22 }
 0x3df   : > { %v3209_v0 = vadd.f32 %v8280_v45, %v8428_v2 }
 0x3e0   : > { %v3640_v59 = vmul.f32 0.01, %v3520_v20  ;;  %3702 = vst.msk [vmem:[#allocation3 + $0x19] sm:$0xff] %vm407_vm12, %v3670_v32  ;;  %v3523_v62 = vadd.f32 %v6687_v36, %v3362_v26  ;;  %v3671_v5 = vmax.f32 %v3515_v22, %v3639_v4  ;;  %v6290_v35 = vpop.f32.mrb[24].mxu0  ;;  %v6690_v24 = vpop.f32.mrb[84].mxu1 }
 0x3e1   : > { %v6291_v7 = vpop.f32.mrb[25].mxu0  ;;  %v3527_v9 = vpop.f32.mrb[85].mxu1 }
 0x3e2   : > { %v3672_v33 = vmax.f32 %v3520_v20, %v3640_v59  ;;  %v3641_v47 = vmul.f32 0.01, %v3523_v62  ;;  %3703 = vst.msk [vmem:[#allocation3 + $0x21] sm:$0xff] %vm407_vm12, %v3671_v5  ;;  %v6292_v19 = vadd.f32 %v6291_v7, %v6290_v35  ;;  %v6293_v52 = vpop.f32.mrb[26].mxu0  ;;  %v6691_v12 = vpop.f32.mrb[86].mxu1 }
 0x3e3   : > { %v6294_v34 = vpop.f32.mrb[27].mxu0  ;;  %v3530_v51 = vpop.f32.mrb[87].mxu1 }
 0x3e4   : > { %3704 = vst.msk [vmem:[#allocation3 + $0x31] sm:$0xff] %vm407_vm12, %v3672_v33  ;;  %v3673_v16 = vmax.f32 %v3523_v62, %v3641_v47  ;;  %v3367_v23 = vadd.f32 %v6292_v19, %v3206_v58  ;;  %v6295_v25 = vadd.f32 %v6294_v34, %v6293_v52  ;;  %v3217_v33 = vadd.f32 %v8290_v50, %v8428_v2  ;;  %v6872_v50 = vld [vmem:[%s9552_s6 + $0xc8] sm:$0xff]  }
 0x3e5   : > { %6508 = vmatprep.subr.bf16.mxu1 %v6872_v50  ;;  %v3230_v50 = vadd.f32 %v8319_v38, %v8428_v2  ;;  %v6876_v38 = vld [vmem:[%s9552_s6 + $0xd8] sm:$0xff]  }
 0x3e6   : > { %3705 = vst.msk [vmem:[#allocation3 + $0x39] sm:$0xff] %vm407_vm12, %v3673_v16  ;;  %v3528_v27 = vadd.f32 %v3527_v9, %v3367_v23  ;;  %v3370_v14 = vadd.f32 %v6295_v25, %v3209_v0  ;;  %6509 = vmatpush3.bf16.msra.mxu1 %v6873_v21 }
 0x3e7   : > { %v3878_v54 = vld [vmem:[#allocation3 + $0x18] sm:$0xff] }
 0x3e8   : > { %v3642_v36 = vmul.f32 0.01, %v3528_v27  ;;  %v3531_v45 = vadd.f32 %v3530_v51, %v3370_v14  ;;  %v6296_v42 = vpop.f32.mrb[28].mxu0  ;;  %v8468_v63 = vpop.f32.mrb[88].mxu1  ;;  %v3784_v35 = vld [vmem:[#allocation3 + $0x19] sm:$0xff] }
 0x3e9   : > { %v6297_v18 = vpop.f32.mrb[29].mxu0  ;;  %v3543_v56 = vpop.f32.mrb[89].mxu1  ;;  %v3879_v22 = vld [vmem:[#allocation3 + $0x20] sm:$0xff] }
 0x3ea   : > { %v3785_v20 = vld [vmem:[#allocation3 + $0x21] sm:$0xff]  ;;  %v3674_v32 = vmax.f32 %v3528_v27, %v3642_v36  ;;  %v3643_v26 = vmul.f32 0.01, %v3531_v45  ;;  %v6298_v4 = vadd.f32 %v6297_v18, %v6296_v42  ;;  %v6299_v59 = vpop.f32.mrb[30].mxu0  ;;  %v8472_v62 = vpop.f32.mrb[90].mxu1  ;;  %v3910_v5 = vpack.c.bf16 %v3879_v22, %v3878_v54 }
 0x3eb   : > { %v6300_v7 = vpop.f32.mrb[31].mxu0  ;;  %v3546_v9 = vpop.f32.mrb[91].mxu1  ;;  %v3815_v58 = vpack.c.bf16 %v3785_v20, %v3784_v35  ;;  %v3880_v52 = vld [vmem:[#allocation3 + $0x30] sm:$0xff] }
 0x3ec   : > { %3706 = vst.msk [vmem:[#allocation3 + $0x49] sm:$0xff] %vm407_vm12, %v3674_v32  ;;  %v3675_v37 = vmax.f32 %v3531_v45, %v3643_v26  ;;  %v3375_v47 = vadd.f32 %v6298_v4, %v3214_v31  ;;  %v6301_v19 = vadd.f32 %v6300_v7, %v6299_v59  ;;  %4230 = vrot.lane.b32.xlu0 %v3910_v5, %s7090_s25  ;;  %v3786_v51 = vld [vmem:[#allocation3 + $0x31] sm:$0xff] }
 0x3ed   : > { %4184 = vrot.lane.b32.xlu1 %v3815_v58, %s7090_s25  ;;  %v3881_v34 = vld [vmem:[#allocation3 + $0x38] sm:$0xff]  ;;  %v3222_v31 = vadd.f32 %v8309_v57, %v8428_v2  ;;  %v3225_v4 = vadd.f32 %v8312_v3, %v8428_v2  ;;  %v6874_v3 = vld [vmem:[%s9552_s6 + $0xd0] sm:$0xff]  }
 0x3ee   : > { %v3787_v0 = vld [vmem:[#allocation3 + $0x39] sm:$0xff]  ;;  %3707 = vst.msk [vmem:[#allocation3 + $0x51] sm:$0xff] %vm407_vm12, %v3675_v37  ;;  %v3536_v16 = vadd.f32 %v6690_v24, %v3375_v47  ;;  %v3378_v23 = vadd.f32 %v6301_v19, %v3217_v33  ;;  %v3911_v25 = vpack.c.bf16 %v3881_v34, %v3880_v52  ;;  %6510 = vmatprep.subr.bf16.mxu1 %v6874_v3 }
 0x3ef   : > { %v8480_v40 = vpack.c.bf16 %v3787_v0, %v3786_v51  ;;  %v6875_v34 = vld [vmem:[%s9552_s6 + $0x90] sm:$0xff]  }
 0x3f0   : > { %v3644_v27 = vmul.f32 0.01, %v3536_v16  ;;  %v3539_v14 = vadd.f32 %v6691_v12, %v3378_v23  ;;  %v6302_v36 = vpop.f32.mrb[32].mxu0  ;;  %v8488_v45 = vpop.f32.mrb[92].mxu1  ;;  %4232 = vrot.lane.b32.xlu0 %v3911_v25, %s7090_s25  ;;  %6511 = vmatpush3.bf16.msra.mxu1 %v6875_v34 }
 0x3f1   : > { %4186 = vrot.lane.b32.xlu1 %v8480_v40, %s7090_s25  ;;  %v6303_v24 = vpop.f32.mrb[33].mxu0  ;;  %v8493_v42 = vpop.f32.mrb[93].mxu1  ;;  %6512 = vmatprep.subr.bf16.mxu1 %v6876_v38 }
 0x3f2   : > { %v3676_v18 = vmax.f32 %v3536_v16, %v3644_v27  ;;  %v3645_v54 = vmul.f32 0.01, %v3539_v14  ;;  %v6304_v22 = vadd.f32 %v6303_v24, %v6302_v36  ;;  %v6305_v12 = vpop.f32.mrb[34].mxu0  ;;  %v8497_v20 = vpop.f32.mrb[94].mxu1 }
 0x3f3   : > { %v6306_v32 = vpop.f32.mrb[35].mxu0  ;;  %v8499_v26 = vpop.f32.mrb[95].mxu1  ;;  %v3882_v7 = vld [vmem:[#allocation3 + $0x48] sm:$0xff] }
 0x3f4   : > { %3708 = vst.msk [vmem:[#allocation3 + $0x61] sm:$0xff] %vm407_vm12, %v3676_v18  ;;  %v3677_v59 = vmax.f32 %v3539_v14, %v3645_v54  ;;  %v3383_v5 = vadd.f32 %v6304_v22, %v3222_v31  ;;  %v6307_v35 = vadd.f32 %v6306_v32, %v6305_v12  ;;  %v3788_v57 = vld [vmem:[#allocation3 + $0x49] sm:$0xff]  ;;  %v3233_v18 = vadd.f32 %v8322_v49, %v8428_v2 }
 0x3f5   : > { %v3883_v58 = vld [vmem:[#allocation3 + $0x50] sm:$0xff] }
 0x3f6   : > { %v3789_v33 = vld [vmem:[#allocation3 + $0x51] sm:$0xff]  ;;  %3709 = vst.msk [vmem:[#allocation3 + $0x69] sm:$0xff] %vm407_vm12, %v3677_v59  ;;  %v3544_v37 = vadd.f32 %v3543_v56, %v3383_v5  ;;  %v3386_v47 = vadd.f32 %v6307_v35, %v3225_v4  ;;  %v3912_v19 = vpack.c.bf16 %v3883_v58, %v3882_v7  ;;  %v6877_v4 = vld [vmem:[%s9552_s6 + $0x98] sm:$0xff]  }
 0x3f7   : > { %v8505_v52 = vpack.c.bf16 %v3789_v33, %v3788_v57  ;;  %6513 = vmatpush3.bf16.msra.mxu1 %v6877_v4 }
 0x3f8   : > { %v3646_v51 = vmul.f32 0.01, %v3544_v37  ;;  %v3547_v0 = vadd.f32 %v3546_v9, %v3386_v47  ;;  %v6308_v16 = vpop.f32.mrb[36].mxu0  ;;  %v8513_v23 = vpop.f32.mrb[96].mxu1  ;;  %4234 = vrot.lane.b32.xlu0 %v3912_v19, %s7090_s25 }
 0x3f9   : > { %4188 = vrot.lane.b32.xlu1 %v8505_v52, %s7090_s25  ;;  %v6309_v56 = vpop.f32.mrb[37].mxu0  ;;  %v8518_v25 = vpop.f32.mrb[97].mxu1 }
 0x3fa   : > { %v3678_v21 = vmax.f32 %v3544_v37, %v3646_v51  ;;  %v3647_v27 = vmul.f32 0.01, %v3547_v0  ;;  %v6310_v14 = vadd.f32 %v6309_v56, %v6308_v16  ;;  %v6311_v36 = vpop.f32.mrb[38].mxu0  ;;  %v8522_v9 = vpop.f32.mrb[98].mxu1 }
 0x3fb   : > { %v6312_v24 = vpop.f32.mrb[39].mxu0  ;;  %v8524_v31 = vpop.f32.mrb[99].mxu1  ;;  %v3884_v32 = vld [vmem:[#allocation3 + $0x60] sm:$0xff] }
 0x3fc   : > { %3710 = vst.msk [vmem:[#allocation3 + $0x79] sm:$0xff] %vm407_vm12, %v3678_v21  ;;  %v3679_v54 = vmax.f32 %v3547_v0, %v3647_v27  ;;  %v3391_v22 = vadd.f32 %v6310_v14, %v3230_v50  ;;  %v6313_v12 = vadd.f32 %v6312_v24, %v6311_v36  ;;  %v3790_v5 = vld [vmem:[#allocation3 + $0x61] sm:$0xff]  ;;  %v3241_v27 = vadd.f32 %v8336_v43, %v8428_v2 }
 0x3fd   : > { %v3885_v59 = vld [vmem:[#allocation3 + $0x68] sm:$0xff] }
 0x3fe   : > { %v3791_v35 = vld [vmem:[#allocation3 + $0x69] sm:$0xff]  ;;  %3711 = vst.msk [vmem:[#allocation3 + $0x81] sm:$0xff] %vm407_vm12, %v3679_v54  ;;  %v3552_v49 = vadd.f32 %v8468_v63, %v3391_v22  ;;  %v3394_v7 = vadd.f32 %v6313_v12, %v3233_v18  ;;  %v3913_v58 = vpack.c.bf16 %v3885_v59, %v3884_v32  ;;  %v3238_v63 = vadd.f32 %v8334_v44, %v8428_v2 }
 0x3ff   : > { %v8537_v57 = vpack.c.bf16 %v3791_v35, %v3790_v5  ;;  %v6879_v44 = vld [vmem:[%s9552_s6 + $0xe0] sm:$0xff]  }
 0x400   : > { %v3648_v33 = vmul.f32 0.01, %v3552_v49  ;;  %v3555_v37 = vadd.f32 %v8472_v62, %v3394_v7  ;;  %v6314_v47 = vpop.f32.mrb[40].mxu0  ;;  %v8540_v19 = vpop.f32.mrb[100].mxu1  ;;  %4236 = vrot.lane.b32.xlu0 %v3913_v58, %s7090_s25  ;;  %v6880_v54 = vld [vmem:[%s9552_s6 + $0xa0] sm:$0xff]   ;;  %6514 = vmatprep.subr.bf16.mxu1 %v6879_v44 }
 0x401   : > { %4190 = vrot.lane.b32.xlu1 %v8537_v57, %s7090_s25  ;;  %v6315_v3 = vpop.f32.mrb[41].mxu0  ;;  %v8545_v34 = vpop.f32.mrb[101].mxu1  ;;  %6515 = vmatpush3.bf16.msra.mxu1 %v6880_v54 }
 0x402   : > { %v3680_v51 = vmax.f32 %v3552_v49, %v3648_v33  ;;  %v3649_v0 = vmul.f32 0.01, %v3555_v37  ;;  %v6316_v16 = vadd.f32 %v6315_v3, %v6314_v47  ;;  %v6317_v56 = vpop.f32.mrb[42].mxu0  ;;  %v8549_v50 = vpop.f32.mrb[102].mxu1 }
 0x403   : > { %v6318_v62 = vpop.f32.mrb[43].mxu0  ;;  %v8551_v21 = vpop.f32.mrb[103].mxu1  ;;  %v3886_v18 = vld [vmem:[#allocation3 + $0x78] sm:$0xff] }
 0x404   : > { %3712 = vst.msk [vmem:[#allocation3 + $0x91] sm:$0xff] %vm407_vm12, %v3680_v51  ;;  %v3681_v14 = vmax.f32 %v3555_v37, %v3649_v0  ;;  %v3399_v36 = vadd.f32 %v6316_v16, %v3238_v63  ;;  %v6319_v24 = vadd.f32 %v6318_v62, %v6317_v56  ;;  %v3792_v12 = vld [vmem:[#allocation3 + $0x79] sm:$0xff]  ;;  %v3249_v16 = vadd.f32 %v8342_v60, %v8428_v2 }
 0x405   : > { %v3887_v22 = vld [vmem:[#allocation3 + $0x80] sm:$0xff] }
 0x406   : > { %v3793_v32 = vld [vmem:[#allocation3 + $0x81] sm:$0xff]  ;;  %3713 = vst.msk [vmem:[#allocation3 + $0x99] sm:$0xff] %vm407_vm12, %v3681_v14  ;;  %v3560_v43 = vadd.f32 %v8493_v42, %v3399_v36  ;;  %v3402_v38 = vadd.f32 %v6319_v24, %v3241_v27  ;;  %v3914_v4 = vpack.c.bf16 %v3887_v22, %v3886_v18  ;;  %v3246_v42 = vadd.f32 %v8340_v46, %v8428_v2  ;;  %v6881_v46 = vld [vmem:[%s9552_s6 + $0xe8] sm:$0xff]  }
 0x407   : > { %v8564_v59 = vpack.c.bf16 %v3793_v32, %v3792_v12  ;;  %v6882_v36 = vld [vmem:[%s9552_s6 + $0xa8] sm:$0xff]   ;;  %6516 = vmatprep.subr.bf16.mxu1 %v6881_v46  ;;  %v6885_v46 = vld [vmem:[%s9552_s6 + $0xf8] sm:$0xff]  }
 0x408   : > { %v3650_v5 = vmul.f32 0.01, %v3560_v43  ;;  %v3563_v35 = vadd.f32 %v8499_v26, %v3402_v38  ;;  %v6320_v49 = vpop.f32.mrb[44].mxu0  ;;  %v8567_v7 = vpop.f32.mrb[104].mxu1  ;;  %4238 = vrot.lane.b32.xlu0 %v3914_v4, %s7090_s25  ;;  %6517 = vmatpush3.bf16.msra.mxu1 %v6882_v36 }
 0x409   : > { %4192 = vrot.lane.b32.xlu1 %v8564_v59, %s7090_s25  ;;  %v6321_v58 = vpop.f32.mrb[45].mxu0  ;;  %v8572_v33 = vpop.f32.mrb[105].mxu1 }
 0x40a   : > { %v3682_v37 = vmax.f32 %v3560_v43, %v3650_v5  ;;  %v3651_v47 = vmul.f32 0.01, %v3563_v35  ;;  %v6322_v3 = vadd.f32 %v6321_v58, %v6320_v49  ;;  %v6323_v63 = vpop.f32.mrb[46].mxu0  ;;  %v8576_v51 = vpop.f32.mrb[106].mxu1  ;;  %v6884_v49 = vld [vmem:[%s9552_s6 + $0xb0] sm:$0xff]  }
 0x40b   : > { %v6324_v26 = vpop.f32.mrb[47].mxu0  ;;  %v8578_v0 = vpop.f32.mrb[107].mxu1  ;;  %v3888_v14 = vld [vmem:[#allocation3 + $0x90] sm:$0xff] }
 0x40c   : > { %3714 = vst.msk [vmem:[#allocation3 + $0xa9] sm:$0xff] %vm407_vm12, %v3682_v37  ;;  %v3683_v56 = vmax.f32 %v3563_v35, %v3651_v47  ;;  %v3407_v62 = vadd.f32 %v6322_v3, %v3246_v42  ;;  %v6325_v27 = vadd.f32 %v6324_v26, %v6323_v63  ;;  %v3794_v18 = vld [vmem:[#allocation3 + $0x91] sm:$0xff] }
 0x40d   : > { %v3889_v24 = vld [vmem:[#allocation3 + $0x98] sm:$0xff] }
 0x40e   : > { %v3795_v44 = vld [vmem:[#allocation3 + $0x99] sm:$0xff]  ;;  %3715 = vst.msk [vmem:[#allocation3 + $0xb1] sm:$0xff] %vm407_vm12, %v3683_v56  ;;  %v3568_v60 = vadd.f32 %v8488_v45, %v3407_v62  ;;  %v3410_v54 = vadd.f32 %v6325_v27, %v3249_v16  ;;  %v3915_v22 = vpack.c.bf16 %v3889_v24, %v3888_v14  ;;  %v3257_v16 = vadd.f32 %v8360_v53, %v8428_v2 }
 0x40f   : > { %v8591_v12 = vpack.c.bf16 %v3795_v44, %v3794_v18  ;;  %v6883_v45 = vld [vmem:[%s9552_s6 + $0xf0] sm:$0xff]   ;;  %v6886_v18 = vld [vmem:[%s9552_s6 + $0xb8] sm:$0xff]  }
 0x410   : > { %v3652_v32 = vmul.f32 0.01, %v3568_v60  ;;  %v3571_v43 = vadd.f32 %v8497_v20, %v3410_v54  ;;  %v6326_v38 = vpop.f32.mrb[48].mxu0  ;;  %4240 = vrot.lane.b32.xlu0 %v3915_v22, %s7090_s25  ;;  %v8597_v4 = vpop.f32.mrb[108].mxu1  ;;  %v3254_v20 = vadd.f32 %v8353_v48, %v8428_v2  ;;  %6518 = vmatprep.subr.bf16.mxu1 %v6883_v45  ;;  %v3974_v22 = vld [vmem:[#allocation3 + $0x1a] sm:$0xff]  ;;  %v3262_v45 = vadd.f32 %v8363_v28, %v8428_v2 }
 0x411   : > { %4194 = vrot.lane.b32.xlu1 %v8591_v12, %s7090_s25  ;;  %v6327_v5 = vpop.f32.mrb[49].mxu0  ;;  %v8599_v35 = vpop.f32.mrb[109].mxu1  ;;  %6519 = vmatpush3.bf16.msra.mxu1 %v6884_v49 }
 0x412   : > { %v3684_v58 = vmax.f32 %v3568_v60, %v3652_v32  ;;  %v3653_v42 = vmul.f32 0.01, %v3571_v43  ;;  %v6328_v37 = vadd.f32 %v6327_v5, %v6326_v38  ;;  %v6329_v47 = vpop.f32.mrb[50].mxu0  ;;  %v8609_v3 = vpop.f32.mrb[110].mxu1  ;;  %6520 = vmatprep.subr.bf16.mxu1 %v6885_v46  ;;  %v3975_v32 = vld [vmem:[#allocation3 + $0x22] sm:$0xff] }
 0x413   : > { %v6330_v63 = vpop.f32.mrb[51].mxu0  ;;  %v8611_v26 = vpop.f32.mrb[111].mxu1  ;;  %v3890_v14 = vld [vmem:[#allocation3 + $0xa8] sm:$0xff] }
 0x414   : > { %3716 = vst.msk [vmem:[#allocation3 + $0xc1] sm:$0xff] %vm407_vm12, %v3684_v58  ;;  %v3685_v56 = vmax.f32 %v3571_v43, %v3653_v42  ;;  %v3415_v62 = vadd.f32 %v6328_v37, %v3254_v20  ;;  %v6331_v27 = vadd.f32 %v6330_v63, %v6329_v47  ;;  %v3796_v48 = vld [vmem:[#allocation3 + $0xa9] sm:$0xff]  ;;  %v8632_v37 = vpack.c.bf16 %v3975_v32, %v3974_v22 }
 0x415   : > { %v3891_v36 = vld [vmem:[#allocation3 + $0xb0] sm:$0xff]  ;;  %6521 = vmatpush3.bf16.msra.mxu1 %v6886_v18  ;;  %v3977_v18 = vld [vmem:[#allocation3 + $0x3a] sm:$0xff]  ;;  %v3270_v22 = vadd.f32 %v8378_v41, %v8428_v2 }
 0x416   : > { %v3797_v24 = vld [vmem:[#allocation3 + $0xb1] sm:$0xff]  ;;  %3717 = vst.msk [vmem:[#allocation3 + $0xc9] sm:$0xff] %vm407_vm12, %v3685_v56  ;;  %v3576_v53 = vadd.f32 %v8518_v25, %v3415_v62  ;;  %v3418_v44 = vadd.f32 %v6331_v27, %v3257_v16  ;;  %v3916_v60 = vpack.c.bf16 %v3891_v36, %v3890_v14 }
 0x417   : > { %v8624_v54 = vpack.c.bf16 %v3797_v24, %v3796_v48 }
 0x418   : > { %v3654_v43 = vmul.f32 0.01, %v3576_v53  ;;  %v3579_v38 = vadd.f32 %v8524_v31, %v3418_v44  ;;  %v6332_v5 = vpop.f32.mrb[52].mxu0  ;;  %4242 = vrot.lane.b32.xlu0 %v3916_v60, %s7090_s25  ;;  %v3265_v31 = vadd.f32 %v8367_v61, %v8428_v2  ;;  %v3976_v61 = vld [vmem:[#allocation3 + $0x32] sm:$0xff] }
 0x419   : > { %4196 = vrot.lane.b32.xlu1 %v8624_v54, %s7090_s25  ;;  %v6333_v25 = vpop.f32.mrb[53].mxu0 }
 0x41a   : > { %v3686_v49 = vmax.f32 %v3576_v53, %v3654_v43  ;;  %v3655_v20 = vmul.f32 0.01, %v3579_v38  ;;  %v6334_v58 = vadd.f32 %v6333_v25, %v6332_v5  ;;  %v6335_v42 = vpop.f32.mrb[54].mxu0  ;;  %v3273_v25 = vadd.f32 %v8383_v6, %v8428_v2 }
 0x41b   : > { %v6336_v47 = vpop.f32.mrb[55].mxu0  ;;  %v3892_v28 = vld [vmem:[#allocation3 + $0xc0] sm:$0xff] }
 0x41c   : > { %3718 = vst.msk [vmem:[#allocation3 + $0xd9] sm:$0xff] %vm407_vm12, %v3686_v49  ;;  %v3687_v63 = vmax.f32 %v3579_v38, %v3655_v20  ;;  %v3423_v16 = vadd.f32 %v6334_v58, %v3262_v45  ;;  %v6337_v56 = vadd.f32 %v6336_v47, %v6335_v42  ;;  %v3798_v27 = vld [vmem:[#allocation3 + $0xc1] sm:$0xff]  ;;  %v8649_v45 = vpack.c.bf16 %v3977_v18, %v3976_v61 }
 0x41d   : > { %4278 = vrot.lane.b32.xlu1 %v8632_v37, %s7090_s25  ;;  %v3893_v62 = vld [vmem:[#allocation3 + $0xc8] sm:$0xff] }
 0x41e   : > { %v3799_v14 = vld [vmem:[#allocation3 + $0xc9] sm:$0xff]  ;;  %3719 = vst.msk [vmem:[#allocation3 + $0xe1] sm:$0xff] %vm407_vm12, %v3687_v63  ;;  %v3584_v48 = vadd.f32 %v8513_v23, %v3423_v16  ;;  %v3426_v46 = vadd.f32 %v6337_v56, %v3265_v31  ;;  %v3917_v36 = vpack.c.bf16 %v3893_v62, %v3892_v28  ;;  %v3979_v62 = vld [vmem:[#allocation3 + $0x52] sm:$0xff] }
 0x41f   : > { %v8641_v24 = vpack.c.bf16 %v3799_v14, %v3798_v27  ;;  %v3978_v28 = vld [vmem:[#allocation3 + $0x4a] sm:$0xff] }
 0x420   : > { %v3656_v53 = vmul.f32 0.01, %v3584_v48  ;;  %v3587_v44 = vadd.f32 %v8522_v9, %v3426_v46  ;;  %v6338_v60 = vpop.f32.mrb[56].mxu0  ;;  %4244 = vrot.lane.b32.xlu0 %v3917_v36, %s7090_s25 }
 0x421   : > { %4198 = vrot.lane.b32.xlu1 %v8641_v24, %s7090_s25  ;;  %v6339_v32 = vpop.f32.mrb[57].mxu0 }
 0x422   : > { %v3688_v23 = vmax.f32 %v3584_v48, %v3656_v53  ;;  %v3657_v43 = vmul.f32 0.01, %v3587_v44  ;;  %v6340_v38 = vadd.f32 %v6339_v32, %v6338_v60  ;;  %v6341_v5 = vpop.f32.mrb[58].mxu0  ;;  %v8671_v53 = vpack.c.bf16 %v3979_v62, %v3978_v28 }
 0x423   : > { %v6342_v9 = vpop.f32.mrb[59].mxu0  ;;  %v3894_v41 = vld [vmem:[#allocation3 + $0xd8] sm:$0xff] }
 0x424   : > { %3720 = vst.msk [vmem:[#allocation3 + $0xf1] sm:$0xff] %vm407_vm12, %v3688_v23  ;;  %v3689_v49 = vmax.f32 %v3587_v44, %v3657_v43  ;;  %v3431_v20 = vadd.f32 %v6340_v38, %v3270_v22  ;;  %v6343_v58 = vadd.f32 %v6342_v9, %v6341_v5  ;;  %4326 = vrot.lane.b32.xlu0 %v8480_v40, %s7090_s25  ;;  %v3800_v47 = vld [vmem:[#allocation3 + $0xd9] sm:$0xff] }
 0x425   : > { %4280 = vrot.lane.b32.xlu1 %v8649_v45, %s7090_s25  ;;  %v3895_v42 = vld [vmem:[#allocation3 + $0xe0] sm:$0xff] }
 0x426   : > { %v3801_v31 = vld [vmem:[#allocation3 + $0xe1] sm:$0xff]  ;;  %3721 = vst.msk [vmem:[#allocation3 + $0xf9] sm:$0xff] %vm407_vm12, %v3689_v49  ;;  %v3592_v6 = vadd.f32 %v8545_v34, %v3431_v20  ;;  %v3434_v63 = vadd.f32 %v6343_v58, %v3273_v25  ;;  %v8660_v16 = vpack.c.bf16 %v3895_v42, %v3894_v41  ;;  %v3278_v34 = vadd.f32 %v8385_v11, %v8428_v2  ;;  %v3981_v20 = vld [vmem:[#allocation3 + $0x6a] sm:$0xff] }
 0x427   : > { %v8662_v56 = vpack.c.bf16 %v3801_v31, %v3800_v47  ;;  %v3980_v49 = vld [vmem:[#allocation3 + $0x62] sm:$0xff] }
 0x428   : > { %v3658_v27 = vmul.f32 0.01, %v3592_v6  ;;  %v3595_v40 = vadd.f32 %v8551_v21, %v3434_v63  ;;  %v6344_v14 = vpop.f32.mrb[60].mxu0  ;;  %4246 = vrot.lane.b32.xlu0 %v8660_v16, %s7090_s25  ;;  %v3281_v21 = vadd.f32 %v8387_v10, %v8428_v2  ;;  %v8693_v28 = vpack.c.bf16 %v3981_v20, %v3980_v49 }
 0x429   : > { %4200 = vrot.lane.b32.xlu1 %v8662_v56, %s7090_s25  ;;  %v6345_v48 = vpop.f32.mrb[61].mxu0 }
 0x42a   : > { %v3690_v46 = vmax.f32 %v3592_v6, %v3658_v27  ;;  %v3659_v36 = vmul.f32 0.01, %v3595_v40  ;;  %v6346_v61 = vadd.f32 %v6345_v48, %v6344_v14  ;;  %v6347_v18 = vpop.f32.mrb[62].mxu0 }
 0x42b   : > { %v6348_v44 = vpop.f32.mrb[63].mxu0  ;;  %v3896_v11 = vld [vmem:[#allocation3 + $0xf0] sm:$0xff] }
 0x42c   : > { %3722 = vst.msk [vmem:[#allocation3 + $0x109] sm:$0xff] %vm407_vm12, %v3690_v46  ;;  %v3691_v60 = vmax.f32 %v3595_v40, %v3659_v36  ;;  %v3439_v22 = vadd.f32 %v6346_v61, %v3278_v34  ;;  %v6349_v32 = vadd.f32 %v6348_v44, %v6347_v18  ;;  %4328 = vrot.lane.b32.xlu0 %v8505_v52, %s7090_s25  ;;  %v3802_v43 = vld [vmem:[#allocation3 + $0xf1] sm:$0xff]  ;;  %v3983_v44 = vld [vmem:[#allocation3 + $0x82] sm:$0xff] }
 0x42d   : > { %4282 = vrot.lane.b32.xlu1 %v8671_v53, %s7090_s25  ;;  %v3897_v23 = vld [vmem:[#allocation3 + $0xf8] sm:$0xff] }
 0x42e   : > { %v3803_v38 = vld [vmem:[#allocation3 + $0xf9] sm:$0xff]  ;;  %3723 = vst.msk [vmem:[#allocation3 + $0x111] sm:$0xff] %vm407_vm12, %v3691_v60  ;;  %v3600_v10 = vadd.f32 %v8540_v19, %v3439_v22  ;;  %v3442_v5 = vadd.f32 %v6349_v32, %v3281_v21  ;;  %v8682_v25 = vpack.c.bf16 %v3897_v23, %v3896_v11  ;;  %v3286_v19 = vadd.f32 %v8398_v15, %v8428_v2 }
 0x42f   : > { %v8684_v9 = vpack.c.bf16 %v3803_v38, %v3802_v43  ;;  %v3982_v21 = vld [vmem:[#allocation3 + $0x7a] sm:$0xff] }
 0x430   : > { %v3660_v58 = vmul.f32 0.01, %v3600_v10  ;;  %v3603_v52 = vadd.f32 %v8549_v50, %v3442_v5  ;;  %v6350_v41 = vpop.f32.mrb[64].mxu0  ;;  %4248 = vrot.lane.b32.xlu0 %v8682_v25, %s7090_s25  ;;  %v3289_v50 = vadd.f32 %v8400_v17, %v8428_v2 }
 0x431   : > { %4202 = vrot.lane.b32.xlu1 %v8684_v9, %s7090_s25  ;;  %v6351_v42 = vpop.f32.mrb[65].mxu0 }
 0x432   : > { %v3692_v47 = vmax.f32 %v3600_v10, %v3660_v58  ;;  %v3661_v31 = vmul.f32 0.01, %v3603_v52  ;;  %v6352_v6 = vadd.f32 %v6351_v42, %v6350_v41  ;;  %v6353_v63 = vpop.f32.mrb[66].mxu0  ;;  %v8715_v10 = vpack.c.bf16 %v3983_v44, %v3982_v21 }
 0x433   : > { %v6354_v62 = vpop.f32.mrb[67].mxu0  ;;  %v3898_v15 = vld [vmem:[#allocation3 + $0x108] sm:$0xff] }
 0x434   : > { %3724 = vst.msk [vmem:[#allocation3 + $0x121] sm:$0xff] %vm407_vm12, %v3692_v47  ;;  %v3693_v27 = vmax.f32 %v3603_v52, %v3661_v31  ;;  %v3447_v40 = vadd.f32 %v6352_v6, %v3286_v19  ;;  %v6355_v14 = vadd.f32 %v6354_v62, %v6353_v63  ;;  %4330 = vrot.lane.b32.xlu0 %v8537_v57, %s7090_s25  ;;  %v3804_v48 = vld [vmem:[#allocation3 + $0x109] sm:$0xff]  ;;  %v3984_v6 = vld [vmem:[#allocation3 + $0x92] sm:$0xff]  ;;  %v3985_v63 = vld [vmem:[#allocation3 + $0x9a] sm:$0xff] }
 0x435   : > { %4284 = vrot.lane.b32.xlu1 %v8693_v28, %s7090_s25  ;;  %v3899_v34 = vld [vmem:[#allocation3 + $0x110] sm:$0xff] }
 0x436   : > { %v3805_v46 = vld [vmem:[#allocation3 + $0x111] sm:$0xff]  ;;  %3725 = vst.msk [vmem:[#allocation3 + $0x129] sm:$0xff] %vm407_vm12, %v3693_v27  ;;  %v3608_v17 = vadd.f32 %v8572_v33, %v3447_v40  ;;  %v3450_v36 = vadd.f32 %v6355_v14, %v3289_v50  ;;  %v8704_v61 = vpack.c.bf16 %v3899_v34, %v3898_v15  ;;  %v3294_v33 = vadd.f32 %v8405_v1, %v8428_v2 }
 0x437   : > { %v8706_v18 = vpack.c.bf16 %v3805_v46, %v3804_v48  ;;  %v8737_v48 = vpack.c.bf16 %v3985_v63, %v3984_v6 }
 0x438   : > { %v3662_v60 = vmul.f32 0.01, %v3608_v17  ;;  %v3611_v57 = vadd.f32 %v8578_v0, %v3450_v36  ;;  %v6356_v22 = vpop.f32.mrb[68].mxu0  ;;  %4250 = vrot.lane.b32.xlu0 %v8704_v61, %s7090_s25  ;;  %v3297_v0 = vadd.f32 %v8407_v29, %v8428_v2 }
 0x439   : > { %4204 = vrot.lane.b32.xlu1 %v8706_v18, %s7090_s25  ;;  %v6357_v32 = vpop.f32.mrb[69].mxu0 }
 0x43a   : > { %v3694_v11 = vmax.f32 %v3608_v17, %v3662_v60  ;;  %v3663_v23 = vmul.f32 0.01, %v3611_v57  ;;  %v6358_v43 = vadd.f32 %v6357_v32, %v6356_v22  ;;  %v6359_v38 = vpop.f32.mrb[70].mxu0 }
 0x43b   : > { %v6360_v5 = vpop.f32.mrb[71].mxu0  ;;  %v3900_v1 = vld [vmem:[#allocation3 + $0x120] sm:$0xff] }
 0x43c   : > { %3726 = vst.msk [vmem:[#allocation3 + $0x139] sm:$0xff] %vm407_vm12, %v3694_v11  ;;  %v3695_v49 = vmax.f32 %v3611_v57, %v3663_v23  ;;  %v3455_v20 = vadd.f32 %v6358_v43, %v3294_v33  ;;  %v6361_v58 = vadd.f32 %v6360_v5, %v6359_v38  ;;  %4332 = vrot.lane.b32.xlu0 %v8564_v59, %s7090_s25  ;;  %v3806_v41 = vld [vmem:[#allocation3 + $0x121] sm:$0xff]  ;;  %v3986_v11 = vld [vmem:[#allocation3 + $0xaa] sm:$0xff]  ;;  %v3987_v23 = vld [vmem:[#allocation3 + $0xb2] sm:$0xff] }
 0x43d   : > { %4286 = vrot.lane.b32.xlu1 %v8715_v10, %s7090_s25  ;;  %v3901_v52 = vld [vmem:[#allocation3 + $0x128] sm:$0xff] }
 0x43e   : > { %v3807_v19 = vld [vmem:[#allocation3 + $0x129] sm:$0xff]  ;;  %3727 = vst.msk [vmem:[#allocation3 + $0x141] sm:$0xff] %vm407_vm12, %v3695_v49  ;;  %v3616_v29 = vadd.f32 %v8567_v7, %v3455_v20  ;;  %v3458_v42 = vadd.f32 %v6361_v58, %v3297_v0  ;;  %v8726_v47 = vpack.c.bf16 %v3901_v52, %v3900_v1  ;;  %v3302_v7 = vadd.f32 %v8421_v39, %v8428_v2 }
 0x43f   : > { %v8728_v31 = vpack.c.bf16 %v3807_v19, %v3806_v41  ;;  %v8759_v1 = vpack.c.bf16 %v3987_v23, %v3986_v11  ;;  %v3992_v23 = vld [vmem:[#allocation3 + $0xf2] sm:$0xff] }
 0x440   : > { %v3664_v50 = vmul.f32 0.01, %v3616_v29  ;;  %v3619_v59 = vadd.f32 %v8576_v51, %v3458_v42  ;;  %v6362_v62 = vpop.f32.mrb[72].mxu0  ;;  %4252 = vrot.lane.b32.xlu0 %v8726_v47, %s7090_s25  ;;  %v3305_v51 = vadd.f32 %v8423_v55, %v8428_v2 }
 0x441   : > { %4206 = vrot.lane.b32.xlu1 %v8728_v31, %s7090_s25  ;;  %v6363_v27 = vpop.f32.mrb[73].mxu0 }
 0x442   : > { %v3696_v40 = vmax.f32 %v3616_v29, %v3664_v50  ;;  %v3665_v14 = vmul.f32 0.01, %v3619_v59  ;;  %v6364_v15 = vadd.f32 %v6363_v27, %v6362_v62  ;;  %v6365_v34 = vpop.f32.mrb[74].mxu0  ;;  %v3988_v62 = vld [vmem:[#allocation3 + $0xc2] sm:$0xff] }
 0x443   : > { %v6366_v46 = vpop.f32.mrb[75].mxu0  ;;  %v3902_v21 = vld [vmem:[#allocation3 + $0x138] sm:$0xff] }
 0x444   : > { %3728 = vst.msk [vmem:[#allocation3 + $0x151] sm:$0xff] %vm407_vm12, %v3696_v40  ;;  %v3697_v17 = vmax.f32 %v3619_v59, %v3665_v14  ;;  %v6367_v36 = vadd.f32 %v6366_v46, %v6365_v34  ;;  %4334 = vrot.lane.b32.xlu0 %v8591_v12, %s7090_s25  ;;  %v3463_v39 = vadd.f32 %v6364_v15, %v3302_v7  ;;  %v3808_v60 = vld [vmem:[#allocation3 + $0x139] sm:$0xff]  ;;  %v3989_v7 = vld [vmem:[#allocation3 + $0xca] sm:$0xff] }
 0x445   : > { %4288 = vrot.lane.b32.xlu1 %v8737_v48, %s7090_s25  ;;  %v3903_v44 = vld [vmem:[#allocation3 + $0x140] sm:$0xff]  ;;  %v8779_v15 = vpack.c.bf16 %v3989_v7, %v3988_v62  ;;  %v6888_v62 = vld [vmem:[%s9552_s6 + $0x118] sm:$0xff]  }
 0x446   : > { %v3809_v57 = vld [vmem:[#allocation3 + $0x141] sm:$0xff]  ;;  %3729 = vst.msk [vmem:[#allocation3 + $0x159] sm:$0xff] %vm407_vm12, %v3697_v17  ;;  %v3624_v55 = vadd.f32 %v8599_v35, %v3463_v39  ;;  %v3466_v22 = vadd.f32 %v6367_v36, %v3305_v51  ;;  %v8748_v33 = vpack.c.bf16 %v3903_v44, %v3902_v21  ;;  %v3310_v35 = vadd.f32 %v8432_v8, %v8428_v2 }
 0x447   : > { %v8750_v32 = vpack.c.bf16 %v3809_v57, %v3808_v60  ;;  %v3734_v39 = vld [vmem:[#allocation3] sm:$0xff]  ;;  %v3735_v21 = vld [vmem:[#allocation3 + $0x8] sm:$0xff] }
 0x448   : > { %v3666_v12 = vmul.f32 0.01, %v3624_v55  ;;  %v3627_v43 = vadd.f32 %v8611_v26, %v3466_v22  ;;  %v6368_v38 = vpop.f32.mrb[76].mxu0  ;;  %4254 = vrot.lane.b32.xlu0 %v8748_v33, %s7090_s25  ;;  %v3313_v26 = vadd.f32 %v8436_v13, %v8428_v2  ;;  %v3990_v44 = vld [vmem:[#allocation3 + $0xda] sm:$0xff]  ;;  %v3991_v60 = vld [vmem:[#allocation3 + $0xe2] sm:$0xff]  ;;  %v3831_v57 = vld [vmem:[#allocation3 + $0xa] sm:$0xff] }
 0x449   : > { %4208 = vrot.lane.b32.xlu1 %v8750_v32, %s7090_s25  ;;  %v6369_v0 = vpop.f32.mrb[77].mxu0  ;;  %v8795_v22 = vpack.c.bf16 %v3991_v60, %v3990_v44  ;;  %v3998_v7 = vld [vmem:[#allocation3 + $0x13a] sm:$0xff] }
 0x44a   : > { %v3698_v5 = vmax.f32 %v3624_v55, %v3666_v12  ;;  %v3667_v49 = vmul.f32 0.01, %v3627_v43  ;;  %v6370_v20 = vadd.f32 %v6369_v0, %v6368_v38  ;;  %v6371_v58 = vpop.f32.mrb[78].mxu0  ;;  %v3766_v55 = vpack.c.bf16 %v3735_v21, %v3734_v39  ;;  %v3993_v12 = vld [vmem:[#allocation3 + $0xfa] sm:$0xff] }
 0x44b   : > { %v6372_v52 = vpop.f32.mrb[79].mxu0  ;;  %v3904_v8 = vld [vmem:[#allocation3 + $0x150] sm:$0xff] }
 0x44c   : > { %3730 = vst.msk [vmem:[#allocation3 + $0x169] sm:$0xff] %vm407_vm12, %v3698_v5  ;;  %v3699_v41 = vmax.f32 %v3627_v43, %v3667_v49  ;;  %v3471_v19 = vadd.f32 %v6370_v20, %v3310_v35  ;;  %v6373_v29 = vadd.f32 %v6372_v52, %v6371_v58  ;;  %4336 = vrot.lane.b32.xlu0 %v8624_v54, %s7090_s25  ;;  %v3810_v6 = vld [vmem:[#allocation3 + $0x151] sm:$0xff]  ;;  %v4183_v43 = vpop.permute.xlu1 %4182 }
 0x44d   : > { %4290 = vrot.lane.b32.xlu1 %v8759_v1, %s7090_s25  ;;  %v3905_v42 = vld [vmem:[#allocation3 + $0x158] sm:$0xff]  ;;  %v4360_v0 = vsel %vm407_vm12, %v3766_v55, %v4183_v43  ;;  %v8803_v58 = vpack.c.bf16 %v3993_v12, %v3992_v23  ;;  %v3740_v23 = vld [vmem:[#allocation3 + $0x48] sm:$0xff] }
 0x44e   : > { %v3811_v63 = vld [vmem:[#allocation3 + $0x159] sm:$0xff]  ;;  %3731 = vst.msk [vmem:[#allocation3 + $0x171] sm:$0xff] %vm407_vm12, %v3699_v41  ;;  %v3632_v2 = vadd.f32 %v8597_v4, %v3471_v19  ;;  %v3474_v13 = vadd.f32 %v6373_v29, %v3313_v26  ;;  %v8770_v50 = vpack.c.bf16 %v3905_v42, %v3904_v8  ;;  %v3994_v26 = vld [vmem:[#allocation3 + $0x10a] sm:$0xff] }
 0x44f   : > { %v8772_v59 = vpack.c.bf16 %v3811_v63, %v3810_v6  ;;  %v3995_v52 = vld [vmem:[#allocation3 + $0x112] sm:$0xff]  ;;  %v3737_v8 = vld [vmem:[#allocation3 + $0x20] sm:$0xff]  ;;  %v3997_v63 = vld [vmem:[#allocation3 + $0x12a] sm:$0xff] }
 0x450   : > { %v3668_v27 = vmul.f32 0.01, %v3632_v2  ;;  %v3635_v54 = vadd.f32 %v8609_v3, %v3474_v13  ;;  %4256 = vrot.lane.b32.xlu0 %v8770_v50, %s7090_s25  ;;  %v8814_v29 = vpack.c.bf16 %v3995_v52, %v3994_v26  ;;  %v6887_v42 = vld [vmem:[%s9552_s6 + $0x110] sm:$0xff]  }
 0x451   : > { %4210 = vrot.lane.b32.xlu1 %v8772_v59, %s7090_s25  ;;  %v3996_v6 = vld [vmem:[#allocation3 + $0x122] sm:$0xff] }
 0x452   : > { %v3700_v40 = vmax.f32 %v3632_v2, %v3668_v27  ;;  %v3669_v14 = vmul.f32 0.01, %v3635_v54  ;;  %v8823_v13 = vpack.c.bf16 %v3997_v63, %v3996_v6  ;;  %v3999_v27 = vld [vmem:[#allocation3 + $0x142] sm:$0xff]  ;;  %v3744_v63 = vld [vmem:[#allocation3 + $0x78] sm:$0xff] }
 0x453   : > { %v3906_v3 = vld [vmem:[#allocation3 + $0x168] sm:$0xff]  ;;  %v3742_v52 = vld [vmem:[#allocation3 + $0x60] sm:$0xff] }
 0x454   : > { %3732 = vst.msk [vmem:[#allocation3 + $0x181] sm:$0xff] %vm407_vm12, %v3700_v40  ;;  %v3701_v4 = vmax.f32 %v3635_v54, %v3669_v14  ;;  %4338 = vrot.lane.b32.xlu0 %v8641_v24, %s7090_s25  ;;  %v3812_v51 = vld [vmem:[#allocation3 + $0x169] sm:$0xff]  ;;  %v8835_v14 = vpack.c.bf16 %v3999_v27, %v3998_v7  ;;  %v3745_v6 = vld [vmem:[#allocation3 + $0x80] sm:$0xff]  ;;  %v3747_v27 = vld [vmem:[#allocation3 + $0x98] sm:$0xff] }
 0x455   : > { %4292 = vrot.lane.b32.xlu1 %v8779_v15, %s7090_s25  ;;  %v3907_v34 = vld [vmem:[#allocation3 + $0x170] sm:$0xff]  ;;  %v3830_v24 = vld [vmem:[#allocation3 + $0x2] sm:$0xff] }
 0x456   : > { %v3813_v46 = vld [vmem:[#allocation3 + $0x171] sm:$0xff]  ;;  %3733 = vst.msk [vmem:[#allocation3 + $0x189] sm:$0xff] %vm407_vm12, %v3701_v4  ;;  %v8787_v17 = vpack.c.bf16 %v3907_v34, %v3906_v3  ;;  %v3862_v11 = vpack.c.bf16 %v3831_v57, %v3830_v24  ;;  %v4001_v3 = vld [vmem:[#allocation3 + $0x15a] sm:$0xff] }
 0x457   : > { %v8789_v36 = vpack.c.bf16 %v3813_v46, %v3812_v51  ;;  %v3739_v4 = vld [vmem:[#allocation3 + $0x38] sm:$0xff]  ;;  %v3738_v51 = vld [vmem:[#allocation3 + $0x30] sm:$0xff] }
 0x458   : > { %4258 = vrot.lane.b32.xlu0 %v8787_v17, %s7090_s25  ;;  %v8841_v46 = vpack.c.bf16 %v3739_v4, %v3738_v51  ;;  %v4003_v21 = vld [vmem:[#allocation3 + $0x172] sm:$0xff] }
 0x459   : > { %4212 = vrot.lane.b32.xlu1 %v8789_v36, %s7090_s25  ;;  %v3741_v57 = vld [vmem:[#allocation3 + $0x50] sm:$0xff] }
 0x45a   : > { %v8859_v12 = vpack.c.bf16 %v3741_v57, %v3740_v23 }
 0x45b   : > { %v3908_v38 = vld [vmem:[#allocation3 + $0x180] sm:$0xff] }
 0x45c   : > { %4340 = vrot.lane.b32.xlu0 %v8662_v56, %s7090_s25  ;;  %v6878_v56 = vld [vmem:[%s9552_s6 + $0x108] sm:$0xff]  }
 0x45d   : > { %4294 = vrot.lane.b32.xlu1 %v8795_v22, %s7090_s25  ;;  %v3909_v35 = vld [vmem:[#allocation3 + $0x188] sm:$0xff] }
 0x45e   : > { %v4231_v5 = vpop.permute.xlu0 %4230  ;;  %v3925_v49 = vpack.c.bf16 %v3909_v35, %v3908_v38  ;;  %v4005_v55 = vld [vmem:[#allocation3 + $0x18a] sm:$0xff]  ;;  %v4100_v35 = vld [vmem:[#allocation3 + $0x199] sm:$0xff] }
 0x45f   : > { %v4424_v20 = vsel %vm407_vm12, %v3862_v11, %v4231_v5  ;;  %v4185_v2 = vpop.permute.xlu1 %4184  ;;  %v4099_v38 = vld [vmem:[#allocation3 + $0x189] sm:$0xff] }
 0x460   : > { %4989 = vmatprep.mubr.bf16.mxu0 %v4424_v20  ;;  %4260 = vrot.lane.b32.xlu0 %v3925_v49, %s7090_s25 }
 0x461   : > { %4296 = vrot.lane.b32.xlu1 %v8803_v58, %s7090_s25  ;;  %4990 = vmatmul.mubr.bf16.vlgmr.msra.gmra.mrb[80].mxu0 %v4360_v0  ;;  %v4101_v0 = vld [vmem:[#allocation3 + $0x1a1] sm:$0xff] }
 0x462   : > { %6717 = vmatpush3.bf16.msra.mxu0 %v8452_v30  ;;  %v4233_v41 = vpop.permute.xlu0 %4232  ;;  %v3736_v30 = vld [vmem:[#allocation3 + $0x18] sm:$0xff] }
 0x463   : > { %v4428_v19 = vsel %vm407_vm12, %v8632_v37, %v4233_v41  ;;  %6718 = vmatprep.subr.bf16.mxu0 %v6878_v56  ;;  %v3767_v37 = vpack.c.bf16 %v3737_v8, %v3736_v30  ;;  %v4187_v34 = vpop.permute.xlu1 %4186  ;;  %v8882_v30 = vpack.c.bf16 %v3745_v6, %v3744_v63 }
 0x464   : > { %4342 = vrot.lane.b32.xlu0 %v8684_v9, %s7090_s25  ;;  %4997 = vmatprep.mubr.bf16.mxu0 %v4428_v19 }
 0x465   : > { %4298 = vrot.lane.b32.xlu1 %v8814_v29, %s7090_s25  ;;  %v4364_v9 = vsel %vm407_vm12, %v3767_v37, %v4185_v2 }
 0x466   : > { %6719 = vmatpush3.bf16.msra.mxu0 %v6878_v56  ;;  %v3743_v56 = vld [vmem:[#allocation3 + $0x68] sm:$0xff] }
 0x467   : > { %6720 = vmatprep.subr.bf16.mxu0 %v6887_v42  ;;  %v8875_v41 = vpack.c.bf16 %v3743_v56, %v3742_v52 }
 0x468   : > { %4344 = vrot.lane.b32.xlu0 %v8706_v18, %s7090_s25  ;;  %v4000_v18 = vld [vmem:[#allocation3 + $0x152] sm:$0xff] }
 0x469   : > { %4300 = vrot.lane.b32.xlu1 %v8823_v13, %s7090_s25  ;;  %4998 = vmatmul.mubr.bf16.gmra.mrb[84].mxu0 %v4364_v9  ;;  %v8843_v39 = vpack.c.bf16 %v4001_v3, %v4000_v18 }
 0x46a   : > { %v4235_v54 = vpop.permute.xlu0 %4234  ;;  %6721 = vmatpush3.bf16.msra.mxu0 %v6887_v42 }
 0x46b   : > { %v4432_v40 = vsel %vm407_vm12, %v8649_v45, %v4235_v54  ;;  %6722 = vmatprep.subr.bf16.mxu0 %v6888_v62  ;;  %v4368_v45 = vsel %vm407_vm12, %v8841_v46, %v4187_v34  ;;  %v4189_v11 = vpop.permute.xlu1 %4188  ;;  %v3746_v54 = vld [vmem:[#allocation3 + $0x90] sm:$0xff]  ;;  %v3927_v34 = vld [vmem:[#allocation3 + $0x21] sm:$0xff] }
 0x46c   : > { %4346 = vrot.lane.b32.xlu0 %v8728_v31, %s7090_s25  ;;  %5005 = vmatprep.mubr.bf16.mxu0 %v4432_v40  ;;  %v4002_v31 = vld [vmem:[#allocation3 + $0x16a] sm:$0xff] }
 0x46d   : > { %4302 = vrot.lane.b32.xlu1 %v8835_v14, %s7090_s25  ;;  %v8851_v60 = vpack.c.bf16 %v4003_v21, %v4002_v31  ;;  %v3926_v31 = vld [vmem:[#allocation3 + $0x19] sm:$0xff] }
 0x46e   : > { %6723 = vmatpush3.bf16.msra.mxu0 %v6888_v62  ;;  %v3958_v21 = vpack.c.bf16 %v3927_v34, %v3926_v31  ;;  %v3934_v31 = vld [vmem:[#allocation3 + $0x79] sm:$0xff] }
 0x470   : > { %4348 = vrot.lane.b32.xlu0 %v8750_v32, %s7090_s25  ;;  %v4004_v32 = vld [vmem:[#allocation3 + $0x182] sm:$0xff] }
 0x471   : > { %4304 = vrot.lane.b32.xlu1 %v8843_v39, %s7090_s25  ;;  %5006 = vmatmul.mubr.bf16.gmra.mrb[88].mxu0 %v4368_v45  ;;  %v8861_v43 = vpack.c.bf16 %v4005_v55, %v4004_v32  ;;  %v3749_v45 = vld [vmem:[#allocation3 + $0xb0] sm:$0xff] }
 0x472   : > { %v4237_v44 = vpop.permute.xlu0 %4236 }
 0x473   : > { %v4436_v24 = vsel %vm407_vm12, %v8671_v53, %v4237_v44  ;;  %v4372_v53 = vsel %vm407_vm12, %v8859_v12, %v4189_v11  ;;  %v4191_v26 = vpop.permute.xlu1 %4190 }
 0x474   : > { %4350 = vrot.lane.b32.xlu0 %v8772_v59, %s7090_s25  ;;  %5013 = vmatprep.mubr.bf16.mxu0 %v4436_v24  ;;  %v4098_v59 = vld [vmem:[#allocation3 + $0x181] sm:$0xff]  ;;  %v4376_v19 = vsel %vm407_vm12, %v8875_v41, %v4191_v26 }
 0x475   : > { %4306 = vrot.lane.b32.xlu1 %v8851_v60, %s7090_s25  ;;  %v8869_v49 = vpack.c.bf16 %v4099_v38, %v4098_v59  ;;  %v3929_v59 = vld [vmem:[#allocation3 + $0x39] sm:$0xff] }
 0x478   : > { %4352 = vrot.lane.b32.xlu0 %v8789_v36, %s7090_s25  ;;  %v4117_v36 = vpack.c.bf16 %v4101_v0, %v4100_v35  ;;  %v3750_v35 = vld [vmem:[#allocation3 + $0xc0] sm:$0xff]  ;;  %v3928_v0 = vld [vmem:[#allocation3 + $0x31] sm:$0xff] }
 0x479   : > { %4308 = vrot.lane.b32.xlu1 %v8861_v43, %s7090_s25  ;;  %5014 = vmatmul.mubr.bf16.gmra.mrb[92].mxu0 %v4372_v53  ;;  %v3751_v53 = vld [vmem:[#allocation3 + $0xc8] sm:$0xff]  ;;  %v3959_v56 = vpack.c.bf16 %v3929_v59, %v3928_v0 }
 0x47a   : > { %v4239_v5 = vpop.permute.xlu0 %4238 }
 0x47b   : > { %v4440_v20 = vsel %vm407_vm12, %v8693_v28, %v4239_v5  ;;  %v4193_v8 = vpop.permute.xlu1 %4192 }
 0x47c   : > { %4354 = vrot.lane.b32.xlu0 %v8869_v49, %s7090_s25  ;;  %5021 = vmatprep.mubr.bf16.mxu0 %v4440_v20  ;;  %v4380_v37 = vsel %vm407_vm12, %v8882_v30, %v4193_v8  ;;  %v8903_v20 = vpack.c.bf16 %v3751_v53, %v3750_v35 }
 0x480   : > { %4356 = vrot.lane.b32.xlu0 %v4117_v36, %s7090_s25  ;;  %s5897_s25 = sshll.u32 %s347_s17, 4  ;;  %s9503_s25 = int_to_ptr.vmem [resolvable:$true] %s5897_s25 }
 0x481   : > { %5022 = vmatmul.mubr.bf16.gmra.mrb[96].mxu0 %v4376_v19  ;;  %s7017_s27 = scalar_lea.vmem %s9503_s25, 16 }
 0x482   : > { %v4241_v42 = vpop.permute.xlu0 %4240  ;;  %p7018_p11 = scmp.ne.s32.totalorder %s9503_s25, %s7017_s27 }
 0x483   : > { %v4444_v28 = vsel %vm407_vm12, %v8715_v10, %v4241_v42  ;;  %v4195_v2 = vpop.permute.xlu1 %4194  ;;  %v8888_v10 = vpack.c.bf16 %v3747_v27, %v3746_v54  ;;  %v3931_v42 = vld [vmem:[#allocation3 + $0x51] sm:$0xff]  ;;  %v3933_v27 = vld [vmem:[#allocation3 + $0x69] sm:$0xff]  ;;  %v3932_v54 = vld [vmem:[#allocation3 + $0x61] sm:$0xff] }
 0x484   : > { %5029 = vmatprep.mubr.bf16.mxu0 %v4444_v28  ;;  %v3930_v28 = vld [vmem:[#allocation3 + $0x49] sm:$0xff]  ;;  %p7019_p12 = pnand %p7018_p11, %p7181_p5 }
 0x485   : > { %v4384_v4 = vsel %vm407_vm12, %v8888_v10, %v4195_v2  ;;  %v3960_v2 = vpack.c.bf16 %v3931_v42, %v3930_v28  ;;  %v4037_v42 = vld [vmem:[#allocation3 + $0xe0] sm:$0xff] }
 0x486   : > { %p7020_p13 = pneg %p7019_p12 }
 0x489   : > { %5030 = vmatmul.mubr.bf16.gmra.mrb[100].mxu0 %v4380_v37 }
 0x48a   : > { %v4243_v62 = vpop.permute.xlu0 %4242 }
 0x48b   : > { %v4197_v9 = vpop.permute.xlu1 %4196  ;;  %v4448_v7 = vsel %vm407_vm12, %v8737_v48, %v4243_v62  ;;  %v3748_v48 = vld [vmem:[#allocation3 + $0xa8] sm:$0xff] }
 0x48c   : > { %5037 = vmatprep.mubr.bf16.mxu0 %v4448_v7  ;;  %v8894_v57 = vpack.c.bf16 %v3749_v45, %v3748_v48  ;;  %v3935_v45 = vld [vmem:[#allocation3 + $0x81] sm:$0xff] }
 0x48e   : > { %v4388_v11 = vsel %vm407_vm12, %v8894_v57, %v4197_v9 }
 0x48f   : > { %v4279_v40 = vpop.permute.xlu1 %4278 }
 0x490   : > { %v4488_v55 = vsel %vm407_vm12, %v3958_v21, %v4279_v40 }
 0x491   : > { %5038 = vmatmul.mubr.bf16.gmra.mrb[104].mxu0 %v4384_v4 }
 0x492   : > { %v4245_v18 = vpop.permute.xlu0 %4244 }
 0x493   : > { %v4199_v3 = vpop.permute.xlu1 %4198  ;;  %v4452_v51 = vsel %vm407_vm12, %v8759_v1, %v4245_v18  ;;  %v3961_v18 = vpack.c.bf16 %v3933_v27, %v3932_v54  ;;  %v4039_v27 = vld [vmem:[#allocation3 + $0xf8] sm:$0xff] }
 0x494   : > { %5045 = vmatprep.mubr.bf16.mxu0 %v4452_v51  ;;  %v4392_v26 = vsel %vm407_vm12, %v8903_v20, %v4199_v3 }
 0x496   : > { %v4327_v44 = vpop.permute.xlu0 %4326 }
 0x497   : > { %v4281_v24 = vpop.permute.xlu1 %4280  ;;  %v4552_v32 = vsel %vm407_vm12, %v8841_v46, %v4327_v44  ;;  %v3962_v44 = vpack.c.bf16 %v3935_v45, %v3934_v31 }
 0x498   : > { %5150 = vmatprep.mubr.bf16.mxu1 %v4552_v32  ;;  %v4492_v52 = vsel %vm407_vm12, %v3959_v56, %v4281_v24  ;;  %v3939_v56 = vld [vmem:[#allocation3 + $0xb1] sm:$0xff] }
 0x499   : > { %5046 = vmatmul.mubr.bf16.gmra.mrb[108].mxu0 %v4388_v11  ;;  %5151 = vmatmul.mubr.bf16.vlgmr.msra.gmra.mrb[112].mxu1 %v4488_v55 }
 0x49a   : > { %v4247_v1 = vpop.permute.xlu0 %4246 }
 0x49b   : > { %v4201_v23 = vpop.permute.xlu1 %4200  ;;  %v4456_v38 = vsel %vm407_vm12, %v8779_v15, %v4247_v1  ;;  %v3937_v1 = vld [vmem:[#allocation3 + $0x99] sm:$0xff] }
 0x49c   : > { %5053 = vmatprep.mubr.bf16.mxu0 %v4456_v38  ;;  %v4396_v37 = vsel %vm407_vm12, %v8660_v16, %v4201_v23  ;;  %v3936_v23 = vld [vmem:[#allocation3 + $0x91] sm:$0xff] }
 0x49d   : > { %v3963_v59 = vpack.c.bf16 %v3937_v1, %v3936_v23  ;;  %v4043_v1 = vld [vmem:[#allocation3 + $0x128] sm:$0xff] }
 0x49e   : > { %v4329_v5 = vpop.permute.xlu0 %4328 }
 0x49f   : > { %v4283_v46 = vpop.permute.xlu1 %4282  ;;  %v4556_v36 = vsel %vm407_vm12, %v8859_v12, %v4329_v5 }
 0x4a0   : > { %5158 = vmatprep.mubr.bf16.mxu1 %v4556_v36  ;;  %v4496_v62 = vsel %vm407_vm12, %v3960_v2, %v4283_v46  ;;  %v3938_v36 = vld [vmem:[#allocation3 + $0xa9] sm:$0xff] }
 0x4a1   : > { %5054 = vmatmul.mubr.bf16.gmra.mrb[112].mxu0 %v4392_v26  ;;  %5159 = vmatmul.mubr.bf16.gmra.mrb[116].mxu1 %v4492_v52  ;;  %v3964_v52 = vpack.c.bf16 %v3939_v56, %v3938_v36  ;;  %v3947_v36 = vld [vmem:[#allocation3 + $0x111] sm:$0xff] }
 0x4a2   : > { %v4249_v15 = vpop.permute.xlu0 %4248 }
 0x4a3   : > { %v4203_v19 = vpop.permute.xlu1 %4202  ;;  %v4460_v8 = vsel %vm407_vm12, %v8795_v22, %v4249_v15 }
 0x4a4   : > { %5061 = vmatprep.mubr.bf16.mxu0 %v4460_v8  ;;  %v4400_v16 = vsel %vm407_vm12, %v8682_v25, %v4203_v19 }
 0x4a6   : > { %v4331_v6 = vpop.permute.xlu0 %4330 }
 0x4a7   : > { %v4285_v63 = vpop.permute.xlu1 %4284  ;;  %v4560_v12 = vsel %vm407_vm12, %v8875_v41, %v4331_v6  ;;  %v3941_v6 = vld [vmem:[#allocation3 + $0xc9] sm:$0xff] }
 0x4a8   : > { %5166 = vmatprep.mubr.bf16.mxu1 %v4560_v12  ;;  %v4500_v3 = vsel %vm407_vm12, %v3961_v18, %v4285_v63  ;;  %v4036_v63 = vld [vmem:[#allocation3 + $0xd8] sm:$0xff]  ;;  %v3940_v12 = vld [vmem:[#allocation3 + $0xc1] sm:$0xff] }
 0x4a9   : > { %5062 = vmatmul.mubr.bf16.gmra.mrb[116].mxu0 %v4396_v37  ;;  %5167 = vmatmul.mubr.bf16.gmra.mrb[120].mxu1 %v4496_v62  ;;  %v4061_v2 = vpack.c.bf16 %v4037_v42, %v4036_v63  ;;  %v3965_v37 = vpack.c.bf16 %v3941_v6, %v3940_v12  ;;  %v4044_v6 = vld [vmem:[#allocation3 + $0x138] sm:$0xff] }
 0x4aa   : > { %v4251_v9 = vpop.permute.xlu0 %4250 }
 0x4ab   : > { %v4205_v7 = vpop.permute.xlu1 %4204  ;;  %v4464_v22 = vsel %vm407_vm12, %v8803_v58, %v4251_v9 }
 0x4ac   : > { %5069 = vmatprep.mubr.bf16.mxu0 %v4464_v22  ;;  %v4404_v25 = vsel %vm407_vm12, %v8704_v61, %v4205_v7 }
 0x4ae   : > { %v4333_v40 = vpop.permute.xlu0 %4332 }
 0x4af   : > { %v4287_v4 = vpop.permute.xlu1 %4286  ;;  %v4564_v41 = vsel %vm407_vm12, %v8882_v30, %v4333_v40  ;;  %v3943_v40 = vld [vmem:[#allocation3 + $0xe1] sm:$0xff] }
 0x4b0   : > { %5174 = vmatprep.mubr.bf16.mxu1 %v4564_v41  ;;  %v4504_v24 = vsel %vm407_vm12, %v3962_v44, %v4287_v4  ;;  %v4038_v4 = vld [vmem:[#allocation3 + $0xf0] sm:$0xff]  ;;  %v4040_v44 = vld [vmem:[#allocation3 + $0x108] sm:$0xff] }
 0x4b1   : > { %5070 = vmatmul.mubr.bf16.gmra.mrb[120].mxu0 %v4400_v16  ;;  %5175 = vmatmul.mubr.bf16.gmra.mrb[124].mxu1 %v4500_v3  ;;  %v4062_v41 = vpack.c.bf16 %v4039_v27, %v4038_v4  ;;  %v3942_v16 = vld [vmem:[#allocation3 + $0xd9] sm:$0xff]  ;;  %v3948_v27 = vld [vmem:[#allocation3 + $0x121] sm:$0xff] }
 0x4b2   : > { %v4253_v34 = vpop.permute.xlu0 %4252  ;;  %v4118_v3 = vld [vmem:[#allocation3 + $0x32] sm:$0xff] }
 0x4b3   : > { %v4207_v51 = vpop.permute.xlu1 %4206  ;;  %v4468_v58 = vsel %vm407_vm12, %v8814_v29, %v4253_v34  ;;  %v4119_v34 = vld [vmem:[#allocation3 + $0x3a] sm:$0xff] }
 0x4b4   : > { %5077 = vmatprep.mubr.bf16.mxu0 %v4468_v58  ;;  %v4408_v61 = vsel %vm407_vm12, %v8726_v47, %v4207_v51  ;;  %v3966_v58 = vpack.c.bf16 %v3943_v40, %v3942_v16  ;;  %v4131_v40 = vld [vmem:[#allocation3 + $0xca] sm:$0xff] }
 0x4b6   : > { %v4335_v48 = vpop.permute.xlu0 %4334 }
 0x4b7   : > { %v4289_v21 = vpop.permute.xlu1 %4288  ;;  %v4568_v30 = vsel %vm407_vm12, %v8888_v10, %v4335_v48 }
 0x4b8   : > { %5182 = vmatprep.mubr.bf16.mxu1 %v4568_v30  ;;  %v4508_v35 = vsel %vm407_vm12, %v3963_v59, %v4289_v21  ;;  %v4150_v21 = vpack.c.bf16 %v4119_v34, %v4118_v3 }
 0x4b9   : > { %5078 = vmatmul.mubr.bf16.gmra.mrb[124].mxu0 %v4404_v25  ;;  %5183 = vmatmul.mubr.bf16.gmra.mrb[128].mxu1 %v4504_v24 }
 0x4ba   : > { %v4255_v32 = vpop.permute.xlu0 %4254 }
 0x4bb   : > { %v4209_v55 = vpop.permute.xlu1 %4208  ;;  %v4472_v11 = vsel %vm407_vm12, %v8823_v13, %v4255_v32  ;;  %v3945_v32 = vld [vmem:[#allocation3 + $0xf9] sm:$0xff] }
 0x4bc   : > { %5085 = vmatprep.mubr.bf16.mxu0 %v4472_v11  ;;  %v4412_v47 = vsel %vm407_vm12, %v8748_v33, %v4209_v55  ;;  %v4120_v55 = vld [vmem:[#allocation3 + $0x4a] sm:$0xff]  ;;  %v4121_v11 = vld [vmem:[#allocation3 + $0x52] sm:$0xff] }
 0x4be   : > { %v4337_v38 = vpop.permute.xlu0 %4336 }
 0x4bf   : > { %v4291_v53 = vpop.permute.xlu1 %4290  ;;  %v4572_v10 = vsel %vm407_vm12, %v8894_v57, %v4337_v38  ;;  %v3944_v38 = vld [vmem:[#allocation3 + $0xf1] sm:$0xff] }
 0x4c0   : > { %5190 = vmatprep.mubr.bf16.mxu1 %v4572_v10  ;;  %v4512_v15 = vsel %vm407_vm12, %v3964_v52, %v4291_v53  ;;  %v4123_v53 = vld [vmem:[#allocation3 + $0x6a] sm:$0xff]  ;;  %v3967_v10 = vpack.c.bf16 %v3945_v32, %v3944_v38  ;;  %v4125_v52 = vld [vmem:[#allocation3 + $0x82] sm:$0xff] }
 0x4c1   : > { %5086 = vmatmul.mubr.bf16.gmra.mrb[128].mxu0 %v4408_v61  ;;  %5191 = vmatmul.mubr.bf16.gmra.mrb[132].mxu1 %v4508_v35  ;;  %v4042_v61 = vld [vmem:[#allocation3 + $0x120] sm:$0xff]  ;;  %v4151_v35 = vpack.c.bf16 %v4121_v11, %v4120_v55  ;;  %v4048_v55 = vld [vmem:[#allocation3 + $0x168] sm:$0xff] }
 0x4c2   : > { %v4257_v0 = vpop.permute.xlu0 %4256 }
 0x4c3   : > { %v4211_v5 = vpop.permute.xlu1 %4210  ;;  %v4476_v46 = vsel %vm407_vm12, %v8835_v14, %v4257_v0  ;;  %v4064_v0 = vpack.c.bf16 %v4043_v1, %v4042_v61  ;;  %v3952_v61 = vld [vmem:[#allocation3 + $0x151] sm:$0xff] }
 0x4c4   : > { %5093 = vmatprep.mubr.bf16.mxu0 %v4476_v46  ;;  %v4416_v9 = vsel %vm407_vm12, %v8770_v50, %v4211_v5  ;;  %v4041_v50 = vld [vmem:[#allocation3 + $0x110] sm:$0xff] }
 0x4c5   : > { %v4063_v30 = vpack.c.bf16 %v4041_v50, %v4040_v44  ;;  %v3951_v50 = vld [vmem:[#allocation3 + $0x141] sm:$0xff]  ;;  %v3950_v44 = vld [vmem:[#allocation3 + $0x139] sm:$0xff] }
 0x4c6   : > { %v4339_v26 = vpop.permute.xlu0 %4338  ;;  %v3970_v32 = vpack.c.bf16 %v3951_v50, %v3950_v44 }
 0x4c7   : > { %v4576_v57 = vsel %vm407_vm12, %v8903_v20, %v4339_v26  ;;  %v4293_v19 = vpop.permute.xlu1 %4292  ;;  %v4124_v26 = vld [vmem:[#allocation3 + $0x7a] sm:$0xff] }
 0x4c8   : > { %5198 = vmatprep.mubr.bf16.mxu1 %v4576_v57  ;;  %v4516_v7 = vsel %vm407_vm12, %v3965_v37, %v4293_v19  ;;  %v4045_v57 = vld [vmem:[#allocation3 + $0x140] sm:$0xff]  ;;  %v4126_v19 = vld [vmem:[#allocation3 + $0x92] sm:$0xff]  ;;  %v4153_v63 = vpack.c.bf16 %v4125_v52, %v4124_v26 }
 0x4c9   : > { %5094 = vmatmul.mubr.bf16.gmra.mrb[132].mxu0 %v4412_v47  ;;  %5199 = vmatmul.mubr.bf16.gmra.mrb[136].mxu1 %v4512_v15  ;;  %v3946_v15 = vld [vmem:[#allocation3 + $0x109] sm:$0xff]  ;;  %v4053_v26 = vld [vmem:[#allocation3 + $0x1a0] sm:$0xff] }
 0x4ca   : > { %v4259_v8 = vpop.permute.xlu0 %4258 }
 0x4cb   : > { %v4480_v28 = vsel %vm407_vm12, %v8843_v39, %v4259_v8  ;;  %v4213_v62 = vpop.permute.xlu1 %4212  ;;  %v4127_v8 = vld [vmem:[#allocation3 + $0x9a] sm:$0xff] }
 0x4cc   : > { %5101 = vmatprep.mubr.bf16.mxu0 %v4480_v28  ;;  %v4420_v31 = vsel %vm407_vm12, %v8787_v17, %v4213_v62  ;;  %v4122_v17 = vld [vmem:[#allocation3 + $0x62] sm:$0xff]  ;;  %v3968_v28 = vpack.c.bf16 %v3947_v36, %v3946_v15  ;;  %v4052_v36 = vld [vmem:[#allocation3 + $0x198] sm:$0xff] }
 0x4cd   : > { %v4152_v46 = vpack.c.bf16 %v4123_v53, %v4122_v17  ;;  %v3949_v62 = vld [vmem:[#allocation3 + $0x129] sm:$0xff]  ;;  %v3953_v53 = vld [vmem:[#allocation3 + $0x159] sm:$0xff] }
 0x4ce   : > { %v4341_v20 = vpop.permute.xlu0 %4340 }
 0x4cf   : > { %v4580_v33 = vsel %vm407_vm12, %v4061_v2, %v4341_v20  ;;  %v4295_v18 = vpop.permute.xlu1 %4294  ;;  %v4065_v2 = vpack.c.bf16 %v4045_v57, %v4044_v6  ;;  %v4154_v20 = vpack.c.bf16 %v4127_v8, %v4126_v19  ;;  %v3955_v57 = vld [vmem:[#allocation3 + $0x171] sm:$0xff]  ;;  %v3954_v8 = vld [vmem:[#allocation3 + $0x169] sm:$0xff] }
 0x4d0   : > { %5206 = vmatprep.mubr.bf16.mxu1 %v4580_v33  ;;  %v4520_v48 = vsel %vm407_vm12, %v3966_v58, %v4295_v18  ;;  %v4128_v33 = vld [vmem:[#allocation3 + $0xaa] sm:$0xff]  ;;  %v3969_v18 = vpack.c.bf16 %v3949_v62, %v3948_v27 }
 0x4d1   : > { %5102 = vmatmul.mubr.bf16.gmra.mrb[136].mxu0 %v4416_v9  ;;  %5207 = vmatmul.mubr.bf16.gmra.mrb[140].mxu1 %v4516_v7  ;;  %v4129_v9 = vld [vmem:[#allocation3 + $0xb2] sm:$0xff] }
 0x4d2   : > { %v4261_v22 = vpop.permute.xlu0 %4260  ;;  %v4047_v7 = vld [vmem:[#allocation3 + $0x158] sm:$0xff]  ;;  %v4155_v16 = vpack.c.bf16 %v4129_v9, %v4128_v33 }
 0x4d3   : > { %v4484_v54 = vsel %vm407_vm12, %v8851_v60, %v4261_v22  ;;  %v4297_v23 = vpop.permute.xlu1 %4296 }
 0x4d4   : > { %5109 = vmatprep.mubr.bf16.mxu0 %v4484_v54  ;;  %v4524_v5 = vsel %vm407_vm12, %v3967_v10, %v4297_v23  ;;  %v4130_v54 = vld [vmem:[#allocation3 + $0xc2] sm:$0xff] }
 0x4d6   : > { %v4343_v51 = vpop.permute.xlu0 %4342 }
 0x4d7   : > { %v4584_v45 = vsel %vm407_vm12, %v4062_v41, %v4343_v51  ;;  %v4299_v47 = vpop.permute.xlu1 %4298  ;;  %v4046_v41 = vld [vmem:[#allocation3 + $0x150] sm:$0xff]  ;;  %v4156_v51 = vpack.c.bf16 %v4131_v40, %v4130_v54 }
 0x4d8   : > { %5214 = vmatprep.mubr.bf16.mxu1 %v4584_v45  ;;  %v4528_v12 = vsel %vm407_vm12, %v3968_v28, %v4299_v47  ;;  %v4066_v3 = vpack.c.bf16 %v4047_v7, %v4046_v41  ;;  %v4132_v45 = vld [vmem:[#allocation3 + $0xda] sm:$0xff]  ;;  %v4069_v47 = vpack.c.bf16 %v4053_v26, %v4052_v36 }
 0x4d9   : > { %5110 = vmatmul.mubr.bf16.gmra.mrb[140].mxu0 %v4420_v31  ;;  %5215 = vmatmul.mubr.bf16.gmra.mrb[144].mxu1 %v4520_v48  ;;  %v4133_v31 = vld [vmem:[#allocation3 + $0xe2] sm:$0xff]  ;;  %v4049_v48 = vld [vmem:[#allocation3 + $0x170] sm:$0xff] }
 0x4da   : > { %v4345_v25 = vpop.permute.xlu0 %4344  ;;  %6724 = vmatprep.mubr.msk.bf16.mxu0 %vm407_vm12, %v4150_v21  ;;  %v4157_v11 = vpack.c.bf16 %v4133_v31, %v4132_v45  ;;  %v4067_v1 = vpack.c.bf16 %v4049_v48, %v4048_v55 }
 0x4db   : > { %v4588_v24 = vsel %vm407_vm12, %v4063_v30, %v4345_v25  ;;  %v4301_v22 = vpop.permute.xlu1 %4300  ;;  %v4134_v30 = vld [vmem:[#allocation3 + $0xf2] sm:$0xff]  ;;  %v4135_v25 = vld [vmem:[#allocation3 + $0xfa] sm:$0xff] }
 0x4dc   : > { %5222 = vmatprep.mubr.bf16.mxu1 %v4588_v24  ;;  %v4532_v34 = vsel %vm407_vm12, %v3969_v18, %v4301_v22  ;;  %v4158_v38 = vpack.c.bf16 %v4135_v25, %v4134_v30 }
 0x4de   : > { %v4347_v59 = vpop.permute.xlu0 %4346 }
 0x4df   : > { %v4592_v56 = vsel %vm407_vm12, %v4064_v0, %v4347_v59  ;;  %v4303_v21 = vpop.permute.xlu1 %4302  ;;  %v4051_v59 = vld [vmem:[#allocation3 + $0x188] sm:$0xff]  ;;  %v3971_v0 = vpack.c.bf16 %v3953_v53, %v3952_v61  ;;  %v9017_v61 = vld [vmem:[%s9553_s7] ss:$0 sm:$0xff] }
 0x4e0   : > { %v4536_v23 = vsel %vm407_vm12, %v3970_v32, %v4303_v21 }
 0x4e1   : > { %5223 = vmatmul.mubr.bf16.gmra.mrb[148].mxu1 %v4524_v5  ;;  %6725 = vmatmul.mubr.msk.bf16.vlgmr.msra.gmra.mrb[144].mxu0 %vm407_vm12, %v4151_v35  ;;  %v4050_v5 = vld [vmem:[#allocation3 + $0x180] sm:$0xff] }
 0x4e2   : > { %5230 = vmatprep.mubr.bf16.mxu1 %v4592_v56  ;;  %6728 = vmatprep.mubr.msk.bf16.mxu0 %vm407_vm12, %v4152_v46  ;;  %v4349_v42 = vpop.permute.xlu0 %4348  ;;  %v4068_v46 = vpack.c.bf16 %v4051_v59, %v4050_v5 }
 0x4e3   : > { %v4596_v37 = vsel %vm407_vm12, %v4065_v2, %v4349_v42  ;;  %v4305_v10 = vpop.permute.xlu1 %4304  ;;  %v3972_v42 = vpack.c.bf16 %v3955_v57, %v3954_v8  ;;  %v4149_v2 = vld [vmem:[#allocation3 + $0x1a2] sm:$0xff] }
 0x4e4   : > { %v4540_v56 = vsel %vm407_vm12, %v3971_v0, %v4305_v10 }
 0x4e6   : > { %v4351_v4 = vpop.permute.xlu0 %4350 }
 0x4e7   : > { %v4600_v58 = vsel %vm407_vm12, %v4066_v3, %v4351_v4  ;;  %v4307_v19 = vpop.permute.xlu1 %4306 }
 0x4e8   : > { %v4544_v6 = vsel %vm407_vm12, %v3972_v42, %v4307_v19 }
 0x4e9   : > { %5231 = vmatmul.mubr.bf16.gmra.mrb[152].mxu1 %v4528_v12  ;;  %6729 = vmatmul.mubr.msk.bf16.gmra.mrb[148].mxu0 %vm407_vm12, %v4153_v63  ;;  %v4148_v63 = vld [vmem:[#allocation3 + $0x19a] sm:$0xff] }
 0x4ea   : > { %5238 = vmatprep.mubr.bf16.mxu1 %v4596_v37  ;;  %6732 = vmatprep.mubr.msk.bf16.mxu0 %vm407_vm12, %v4154_v20  ;;  %v4353_v24 = vpop.permute.xlu0 %4352  ;;  %v4165_v12 = vpack.c.bf16 %v4149_v2, %v4148_v63 }
 0x4eb   : > { %v4604_v17 = vsel %vm407_vm12, %v4067_v1, %v4353_v24 }
 0x4ee   : > { %v4355_v35 = vpop.permute.xlu0 %4354 }
 0x4ef   : > { %v4608_v52 = vsel %vm407_vm12, %v4068_v46, %v4355_v35 }
 0x4f1   : > { %5239 = vmatmul.mubr.bf16.gmra.mrb[156].mxu1 %v4532_v34  ;;  %6733 = vmatmul.mubr.msk.bf16.gmra.mrb[152].mxu0 %vm407_vm12, %v4155_v16 }
 0x4f2   : > { %5246 = vmatprep.mubr.bf16.mxu1 %v4600_v58  ;;  %6736 = vmatprep.mubr.msk.bf16.mxu0 %vm407_vm12, %v4156_v51  ;;  %v4357_v15 = vpop.permute.xlu0 %4356 }
 0x4f3   : > { %v4612_v28 = vsel %vm407_vm12, %v4069_v47, %v4357_v15 }
 0x4f9   : > { %5247 = vmatmul.mubr.bf16.gmra.mrb[160].mxu1 %v4536_v23  ;;  %6737 = vmatmul.mubr.msk.bf16.gmra.mrb[156].mxu0 %vm407_vm12, %v4157_v11 }
 0x4fa   : > { %5254 = vmatprep.mubr.bf16.mxu1 %v4604_v17  ;;  %6740 = vmatprep.mubr.msk.bf16.mxu0 %vm407_vm12, %v4158_v38 }
 0x501   : > { %5255 = vmatmul.mubr.bf16.gmra.mrb[164].mxu1 %v4540_v56  ;;  %6741 = vmatmul.mubr.msk.bf16.gmra.mrb[160].mxu0 %vm407_vm12, %v8814_v29  ;;  %v4309_v29 = vpop.permute.xlu1 %4308 }
 0x502   : > { %5262 = vmatprep.mubr.bf16.mxu1 %v4608_v52  ;;  %6744 = vmatprep.mubr.msk.bf16.mxu0 %vm407_vm12, %v8823_v13  ;;  %v4548_v13 = vsel %vm407_vm12, %v8869_v49, %v4309_v29 }
 0x509   : > { %5263 = vmatmul.mubr.bf16.gmra.mrb[168].mxu1 %v4544_v6  ;;  %6745 = vmatmul.mubr.msk.bf16.gmra.mrb[164].mxu0 %vm407_vm12, %v8835_v14 }
 0x50a   : > { %6748 = vmatprep.mubr.msk.bf16.mxu0 %vm407_vm12, %v8843_v39  ;;  %5270 = vmatprep.mubr.bf16.mxu1 %v4612_v28 }
 0x511   : > { %5271 = vmatmul.mubr.bf16.gmra.mrb[172].mxu1 %v4548_v13  ;;  %6749 = vmatmul.mubr.msk.bf16.gmra.mrb[168].mxu0 %vm407_vm12, %v8851_v60 }
 0x512   : > { %6752 = vmatprep.mubr.msk.bf16.mxu0 %vm407_vm12, %v8861_v43 }
 0x519   : > { %6753 = vmatmul.mubr.msk.bf16.gmra.mrb[172].mxu0 %vm407_vm12, %v4165_v12 }
 0x534   : > { %v6410_v14 = vpop.f32.mrb[80].mxu0 }
 0x535   : > { %v6411_v20 = vpop.f32.mrb[81].mxu0 }
 0x536   : > { %v6412_v39 = vadd.f32 %v6411_v20, %v6410_v14  ;;  %v6413_v37 = vpop.f32.mrb[82].mxu0 }
 0x537   : > { %v6414_v62 = vpop.f32.mrb[83].mxu0 }
 0x538   : > { %v6415_v33 = vadd.f32 %v6414_v62, %v6413_v37  ;;  %v4992_v56 = vadd.f32 %v6412_v39, %v9017_v61 }
 0x53a   : > { %v4995_v19 = vadd.f32 %v6415_v33, %v9017_v61 }
 0x53c   : > { %v6416_v9 = vpop.f32.mrb[84].mxu0 }
 0x53d   : > { %v6417_v49 = vpop.f32.mrb[85].mxu0 }
 0x53e   : > { %v6418_v7 = vadd.f32 %v6417_v49, %v6416_v9  ;;  %v6419_v22 = vpop.f32.mrb[86].mxu0 }
 0x53f   : > { %v6420_v27 = vpop.f32.mrb[87].mxu0 }
 0x540   : > { %v6421_v60 = vadd.f32 %v6420_v27, %v6419_v22  ;;  %v5000_v12 = vadd.f32 %v6418_v7, %v9017_v61 }
 0x542   : > { %v5003_v9 = vadd.f32 %v6421_v60, %v9017_v61 }
 0x544   : > { %v6422_v54 = vpop.f32.mrb[88].mxu0 }
 0x545   : > { %v6423_v40 = vpop.f32.mrb[89].mxu0 }
 0x546   : > { %v8994_v43 = vadd.f32 %v6423_v40, %v6422_v54  ;;  %v6425_v4 = vpop.f32.mrb[90].mxu0 }
 0x547   : > { %v6426_v18 = vpop.f32.mrb[91].mxu0 }
 0x548   : > { %v8996_v41 = vadd.f32 %v6426_v18, %v6425_v4 }
 0x54c   : > { %v6428_v16 = vpop.f32.mrb[92].mxu0 }
 0x54d   : > { %v6429_v3 = vpop.f32.mrb[93].mxu0 }
 0x54e   : > { %v8998_v34 = vadd.f32 %v6429_v3, %v6428_v16  ;;  %v6431_v51 = vpop.f32.mrb[94].mxu0  ;;  %v5008_v16 = vadd.f32 %v8994_v43, %v9017_v61 }
 0x54f   : > { %v6432_v58 = vpop.f32.mrb[95].mxu0 }
 0x550   : > { %v9000_v50 = vadd.f32 %v6432_v58, %v6431_v51 }
 0x554   : > { %v6434_v45 = vpop.f32.mrb[96].mxu0 }
 0x555   : > { %v6435_v31 = vpop.f32.mrb[97].mxu0 }
 0x556   : > { %v9002_v48 = vadd.f32 %v6435_v31, %v6434_v45  ;;  %v6437_v21 = vpop.f32.mrb[98].mxu0 }
 0x557   : > { %v6438_v44 = vpop.f32.mrb[99].mxu0 }
 0x558   : > { %v9004_v30 = vadd.f32 %v6438_v44, %v6437_v21  ;;  %v5011_v21 = vadd.f32 %v8996_v41, %v9017_v61 }
 0x55c   : > { %v6440_v25 = vpop.f32.mrb[100].mxu0 }
 0x55d   : > { %v6441_v24 = vpop.f32.mrb[101].mxu0 }
 0x55e   : > { %v9006_v32 = vadd.f32 %v6441_v24, %v6440_v25  ;;  %v6443_v55 = vpop.f32.mrb[102].mxu0 }
 0x55f   : > { %v6444_v11 = vpop.f32.mrb[103].mxu0 }
 0x560   : > { %v9008_v1 = vadd.f32 %v6444_v11, %v6443_v55 }
 0x564   : > { %v6446_v23 = vpop.f32.mrb[104].mxu0 }
 0x565   : > { %v6447_v38 = vpop.f32.mrb[105].mxu0 }
 0x566   : > { %v9010_v17 = vadd.f32 %v6447_v38, %v6446_v23  ;;  %v6449_v53 = vpop.f32.mrb[106].mxu0 }
 0x567   : > { %v6450_v59 = vpop.f32.mrb[107].mxu0 }
 0x568   : > { %v9012_v10 = vadd.f32 %v6450_v59, %v6449_v53  ;;  %v5016_v53 = vadd.f32 %v8998_v34, %v9017_v61 }
 0x56c   : > { %v6452_v35 = vpop.f32.mrb[108].mxu0  ;;  %v6522_v0 = vpop.f32.mrb[112].mxu1 }
 0x56d   : > { %v6453_v5 = vpop.f32.mrb[109].mxu0  ;;  %v6523_v46 = vpop.f32.mrb[113].mxu1 }
 0x56e   : > { %v9020_v36 = vadd.f32 %v6453_v5, %v6452_v35  ;;  %v6524_v26 = vadd.f32 %v6523_v46, %v6522_v0  ;;  %v6455_v52 = vpop.f32.mrb[110].mxu0  ;;  %v6525_v57 = vpop.f32.mrb[114].mxu1 }
 0x56f   : > { %v6456_v47 = vpop.f32.mrb[111].mxu0  ;;  %v6526_v15 = vpop.f32.mrb[115].mxu1 }
 0x570   : > { %v9023_v8 = vadd.f32 %v6456_v47, %v6455_v52  ;;  %v6527_v42 = vadd.f32 %v6526_v15, %v6525_v57  ;;  %v9025_v28 = vadd.f32 %v6524_v26, %v4992_v56  ;;  %v5019_v56 = vadd.f32 %v9000_v50, %v9017_v61 }
 0x572   : > { %v9027_v6 = vadd.f32 %v6527_v42, %v4995_v19 }
 0x574   : > { %v6458_v29 = vpop.f32.mrb[112].mxu0  ;;  %v6528_v13 = vpop.f32.mrb[116].mxu1 }
 0x575   : > { %v6459_v63 = vpop.f32.mrb[113].mxu0  ;;  %v6529_v2 = vpop.f32.mrb[117].mxu1 }
 0x576   : > { %v9030_v14 = vadd.f32 %v6459_v63, %v6458_v29  ;;  %v6530_v20 = vadd.f32 %v6529_v2, %v6528_v13  ;;  %v6461_v39 = vpop.f32.mrb[114].mxu0  ;;  %v6531_v37 = vpop.f32.mrb[118].mxu1  ;;  %v5024_v29 = vadd.f32 %v9002_v48, %v9017_v61 }
 0x577   : > { %v6462_v62 = vpop.f32.mrb[115].mxu0  ;;  %v6532_v33 = vpop.f32.mrb[119].mxu1 }
 0x578   : > { %v9033_v49 = vadd.f32 %v6462_v62, %v6461_v39  ;;  %v6533_v22 = vadd.f32 %v6532_v33, %v6531_v37  ;;  %v9035_v27 = vadd.f32 %v6530_v20, %v5000_v12  ;;  %v5027_v39 = vadd.f32 %v9004_v30, %v9017_v61 }
 0x57a   : > { %v9037_v54 = vadd.f32 %v6533_v22, %v5003_v9 }
 0x57c   : > { %v6464_v40 = vpop.f32.mrb[116].mxu0  ;;  %v6534_v4 = vpop.f32.mrb[120].mxu1 }
 0x57d   : > { %v6465_v18 = vpop.f32.mrb[117].mxu0  ;;  %v6535_v7 = vpop.f32.mrb[121].mxu1 }
 0x57e   : > { %v9041_v3 = vadd.f32 %v6465_v18, %v6464_v40  ;;  %v6536_v51 = vadd.f32 %v6535_v7, %v6534_v4  ;;  %v6467_v58 = vpop.f32.mrb[118].mxu0  ;;  %v6537_v45 = vpop.f32.mrb[122].mxu1  ;;  %v5032_v18 = vadd.f32 %v9006_v32, %v9017_v61 }
 0x57f   : > { %v6468_v60 = vpop.f32.mrb[119].mxu0  ;;  %v6538_v31 = vpop.f32.mrb[123].mxu1 }
 0x580   : > { %v9045_v44 = vadd.f32 %v6468_v60, %v6467_v58  ;;  %v6539_v25 = vadd.f32 %v6538_v31, %v6537_v45  ;;  %v9047_v24 = vadd.f32 %v6536_v51, %v5008_v16  ;;  %v5035_v60 = vadd.f32 %v9008_v1, %v9017_v61 }
 0x582   : > { %v9049_v55 = vadd.f32 %v6539_v25, %v5011_v21 }
 0x584   : > { %v6470_v11 = vpop.f32.mrb[120].mxu0  ;;  %v6540_v23 = vpop.f32.mrb[124].mxu1 }
 0x585   : > { %v6471_v43 = vpop.f32.mrb[121].mxu0  ;;  %v6541_v38 = vpop.f32.mrb[125].mxu1 }
 0x586   : > { %v9053_v59 = vadd.f32 %v6471_v43, %v6470_v11  ;;  %v6542_v35 = vadd.f32 %v6541_v38, %v6540_v23  ;;  %v6473_v0 = vpop.f32.mrb[122].mxu0  ;;  %v6543_v5 = vpop.f32.mrb[126].mxu1 }
 0x587   : > { %v6474_v41 = vpop.f32.mrb[123].mxu0  ;;  %v6544_v46 = vpop.f32.mrb[127].mxu1 }
 0x588   : > { %v9057_v26 = vadd.f32 %v6474_v41, %v6473_v0  ;;  %v6545_v52 = vadd.f32 %v6544_v46, %v6543_v5  ;;  %v9059_v57 = vadd.f32 %v6542_v35, %v5016_v53  ;;  %v5040_v53 = vadd.f32 %v9010_v17, %v9017_v61 }
 0x58a   : > { %v9061_v47 = vadd.f32 %v6545_v52, %v5019_v56  ;;  %v5043_v56 = vadd.f32 %v9012_v10, %v9017_v61 }
 0x58c   : > { %v6476_v15 = vpop.f32.mrb[124].mxu0  ;;  %v6546_v19 = vpop.f32.mrb[128].mxu1 }
 0x58d   : > { %v6477_v34 = vpop.f32.mrb[125].mxu0  ;;  %v6547_v42 = vpop.f32.mrb[129].mxu1 }
 0x58e   : > { %v9065_v13 = vadd.f32 %v6477_v34, %v6476_v15  ;;  %v6548_v63 = vadd.f32 %v6547_v42, %v6546_v19  ;;  %v6479_v2 = vpop.f32.mrb[126].mxu0  ;;  %v6549_v12 = vpop.f32.mrb[130].mxu1 }
 0x58f   : > { %v6480_v50 = vpop.f32.mrb[127].mxu0  ;;  %v6550_v20 = vpop.f32.mrb[131].mxu1 }
 0x590   : > { %v9069_v37 = vadd.f32 %v6480_v50, %v6479_v2  ;;  %v6551_v62 = vadd.f32 %v6550_v20, %v6549_v12  ;;  %v9071_v33 = vadd.f32 %v6548_v63, %v5024_v29  ;;  %v5048_v2 = vadd.f32 %v9020_v36, %v9017_v61 }
 0x592   : > { %v9073_v9 = vadd.f32 %v6551_v62, %v5027_v39 }
 0x594   : > { %v6482_v22 = vpop.f32.mrb[128].mxu0  ;;  %v6552_v40 = vpop.f32.mrb[132].mxu1 }
 0x595   : > { %v6483_v48 = vpop.f32.mrb[129].mxu0  ;;  %v6553_v4 = vpop.f32.mrb[133].mxu1 }
 0x596   : > { %v9077_v7 = vadd.f32 %v6483_v48, %v6482_v22  ;;  %v6554_v16 = vadd.f32 %v6553_v4, %v6552_v40  ;;  %v6485_v51 = vpop.f32.mrb[130].mxu0  ;;  %v6555_v58 = vpop.f32.mrb[134].mxu1  ;;  %v5051_v22 = vadd.f32 %v9023_v8, %v9017_v61 }
 0x597   : > { %v6486_v30 = vpop.f32.mrb[131].mxu0  ;;  %v6556_v45 = vpop.f32.mrb[135].mxu1 }
 0x598   : > { %v9081_v31 = vadd.f32 %v6486_v30, %v6485_v51  ;;  %v6557_v21 = vadd.f32 %v6556_v45, %v6555_v58  ;;  %v9083_v25 = vadd.f32 %v6554_v16, %v5032_v18  ;;  %v5056_v30 = vadd.f32 %v9030_v14, %v9017_v61 }
 0x59a   : > { %v9085_v11 = vadd.f32 %v6557_v21, %v5035_v60 }
 0x59c   : > { %v6488_v23 = vpop.f32.mrb[132].mxu0  ;;  %v6558_v43 = vpop.f32.mrb[136].mxu1 }
 0x59d   : > { %v6489_v32 = vpop.f32.mrb[133].mxu0  ;;  %v6559_v38 = vpop.f32.mrb[137].mxu1 }
 0x59e   : > { %v9089_v35 = vadd.f32 %v6489_v32, %v6488_v23  ;;  %v6560_v0 = vadd.f32 %v6559_v38, %v6558_v43  ;;  %v6491_v5 = vpop.f32.mrb[134].mxu0  ;;  %v6561_v41 = vpop.f32.mrb[138].mxu1  ;;  %v5059_v32 = vadd.f32 %v9033_v49, %v9017_v61 }
 0x59f   : > { %v6492_v1 = vpop.f32.mrb[135].mxu0  ;;  %v6562_v46 = vpop.f32.mrb[139].mxu1 }
 0x5a0   : > { %v9093_v52 = vadd.f32 %v6492_v1, %v6491_v5  ;;  %v6563_v15 = vadd.f32 %v6562_v46, %v6561_v41  ;;  %v9095_v19 = vadd.f32 %v6560_v0, %v5040_v53 }
 0x5a2   : > { %v9097_v34 = vadd.f32 %v6563_v15, %v5043_v56  ;;  %v5064_v15 = vadd.f32 %v9041_v3, %v9017_v61 }
 0x5a4   : > { %v6494_v42 = vpop.f32.mrb[136].mxu0  ;;  %v6564_v29 = vpop.f32.mrb[140].mxu1 }
 0x5a5   : > { %v6495_v17 = vpop.f32.mrb[137].mxu0  ;;  %v6565_v63 = vpop.f32.mrb[141].mxu1 }
 0x5a6   : > { %v9101_v12 = vadd.f32 %v6495_v17, %v6494_v42  ;;  %v6566_v50 = vadd.f32 %v6565_v63, %v6564_v29  ;;  %v6497_v20 = vpop.f32.mrb[138].mxu0  ;;  %v6567_v39 = vpop.f32.mrb[142].mxu1  ;;  %v5067_v63 = vadd.f32 %v9045_v44, %v9017_v61 }
 0x5a7   : > { %v6498_v10 = vpop.f32.mrb[139].mxu0  ;;  %v6568_v62 = vpop.f32.mrb[143].mxu1 }
 0x5a8   : > { %v9105_v40 = vadd.f32 %v6498_v10, %v6497_v20  ;;  %v6569_v48 = vadd.f32 %v6568_v62, %v6567_v39  ;;  %v9107_v4 = vadd.f32 %v6566_v50, %v5048_v2 }
 0x5aa   : > { %v9109_v18 = vadd.f32 %v6569_v48, %v5051_v22  ;;  %v5072_v48 = vadd.f32 %v9053_v59, %v9017_v61 }
 0x5ac   : > { %v6500_v16 = vpop.f32.mrb[140].mxu0  ;;  %v6570_v51 = vpop.f32.mrb[144].mxu1 }
 0x5ad   : > { %v6501_v36 = vpop.f32.mrb[141].mxu0  ;;  %v6571_v58 = vpop.f32.mrb[145].mxu1 }
 0x5ae   : > { %v9113_v45 = vadd.f32 %v6501_v36, %v6500_v16  ;;  %v6572_v60 = vadd.f32 %v6571_v58, %v6570_v51  ;;  %v6503_v21 = vpop.f32.mrb[142].mxu0  ;;  %v6573_v23 = vpop.f32.mrb[146].mxu1  ;;  %v5075_v58 = vadd.f32 %v9057_v26, %v9017_v61 }
 0x5af   : > { %v6504_v8 = vpop.f32.mrb[143].mxu0  ;;  %v6574_v43 = vpop.f32.mrb[147].mxu1 }
 0x5b0   : > { %v9117_v38 = vadd.f32 %v6504_v8, %v6503_v21  ;;  %v6575_v53 = vadd.f32 %v6574_v43, %v6573_v23  ;;  %v9119_v0 = vadd.f32 %v6572_v60, %v5056_v30 }
 0x5b2   : > { %v9121_v5 = vadd.f32 %v6575_v53, %v5059_v32 }
 0x5b4   : > { %v6576_v41 = vpop.f32.mrb[148].mxu1  ;;  %v6726_v1 = vpop.f32.mrb[144].mxu0 }
 0x5b5   : > { %v5322_v14 = vadd.f32 %v6726_v1, %v9035_v27  ;;  %v6577_v46 = vpop.f32.mrb[149].mxu1  ;;  %v5313_v56 = vpop.f32.mrb[145].mxu0 }
 0x5b6   : > { %v6578_v42 = vadd.f32 %v6577_v46, %v6576_v41  ;;  %v5314_v29 = vadd.f32 %v5313_v56, %v9025_v28  ;;  %v6579_v49 = vpop.f32.mrb[150].mxu1  ;;  %v6727_v17 = vpop.f32.mrb[146].mxu0 }
 0x5b7   : > { %6889 = vtanh.f32 %v5322_v14  ;;  %v5325_v2 = vadd.f32 %v6727_v17, %v9037_v54  ;;  %v6580_v50 = vpop.f32.mrb[151].mxu1  ;;  %5636 = vrot.lane.b32.xlu0 %v5322_v14, %s7091_s24  ;;  %v5316_v27 = vpop.f32.mrb[147].mxu0 }
 0x5b8   : > { %6891 = vtanh.f32 %v5314_v29  ;;  %v6581_v20 = vadd.f32 %v6580_v50, %v6579_v49  ;;  %v5317_v3 = vadd.f32 %v5316_v27, %v9027_v6  ;;  %v9132_v39 = vadd.f32 %v6578_v42, %v5064_v15 }
 0x5b9   : > { %6893 = vtanh.f32 %v5325_v2  ;;  %v5083_v27 = vadd.f32 %v9069_v37, %v9017_v61 }
 0x5ba   : > { %6895 = vtanh.f32 %v5317_v3  ;;  %5634 = vrot.lane.b32.xlu1 %v5317_v3, %s7091_s24  ;;  %v9135_v28 = vadd.f32 %v6581_v20, %v5067_v63 }
 0x5bb   : > { %5632 = vrot.lane.b32.xlu0 %v5314_v29, %s7091_s24  ;;  %v5080_v29 = vadd.f32 %v9065_v13, %v9017_v61 }
 0x5bc   : > { %v6582_v54 = vpop.f32.mrb[152].mxu1  ;;  %v6730_v44 = vpop.f32.mrb[148].mxu0 }
 0x5bd   : > { %v5338_v10 = vadd.f32 %v6730_v44, %v9059_v57  ;;  %v6583_v62 = vpop.f32.mrb[153].mxu1  ;;  %v5329_v22 = vpop.f32.mrb[149].mxu0 }
 0x5be   : > { %v6584_v6 = vadd.f32 %v6583_v62, %v6582_v54  ;;  %v5330_v16 = vadd.f32 %v5329_v22, %v9047_v24  ;;  %v6585_v51 = vpop.f32.mrb[154].mxu1  ;;  %v6731_v36 = vpop.f32.mrb[150].mxu0 }
 0x5bf   : > { %6897 = vtanh.f32 %v5338_v10  ;;  %v5341_v30 = vadd.f32 %v6731_v36, %v9061_v47  ;;  %v6586_v60 = vpop.f32.mrb[155].mxu1  ;;  %v5332_v21 = vpop.f32.mrb[151].mxu0  ;;  %5638 = vrot.lane.b32.xlu0 %v5325_v2, %s7091_s24 }
 0x5c0   : > { %6899 = vtanh.f32 %v5330_v16  ;;  %v6587_v57 = vadd.f32 %v6586_v60, %v6585_v51  ;;  %v5333_v23 = vadd.f32 %v5332_v21, %v9049_v55  ;;  %5640 = vrot.lane.b32.xlu1 %v5330_v16, %s7091_s24  ;;  %v9148_v59 = vadd.f32 %v6584_v6, %v5072_v48 }
 0x5c1   : > { %v9150_v24 = vpop.eup %6889  ;;  %6901 = vtanh.f32 %v5341_v30  ;;  %v5088_v16 = vadd.f32 %v9077_v7, %v9017_v61  ;;  %v5091_v7 = vadd.f32 %v9081_v31, %v9017_v61 }
 0x5c2   : > { %v9152_v8 = vpop.eup %6891  ;;  %v5793_v26 = vsel %vm364_vm0, %v9150_v24, 0.0  ;;  %6903 = vtanh.f32 %v5333_v23  ;;  %v9156_v47 = vadd.f32 %v6587_v57, %v5075_v58 }
 0x5c3   : > { %v9158_v43 = vpop.eup %6893  ;;  %v5792_v55 = vsel %vm364_vm0, %v9152_v8, 0.0  ;;  %5644 = vrot.lane.b32.xlu0 %v5338_v10, %s7091_s24 }
 0x5c4   : > { %v9163_v32 = vpop.eup %6895  ;;  %v5794_v53 = vadd.f32 %v5793_v26, %v5792_v55  ;;  %v5826_v41 = vsel %vm364_vm0, %v9158_v43, 0.0  ;;  %v6588_v1 = vpop.f32.mrb[156].mxu1  ;;  %5646 = vrot.lane.b32.xlu1 %v5341_v30, %s7091_s24 }
 0x5c5   : > { %v6734_v14 = vpop.f32.mrb[152].mxu0  ;;  %v5825_v46 = vsel %vm364_vm0, %v9163_v32, 0.0  ;;  %v6589_v15 = vpop.f32.mrb[157].mxu1 }
 0x5c6   : > { %v5354_v56 = vadd.f32 %v6734_v14, %v9083_v25  ;;  %v5345_v42 = vpop.f32.mrb[153].mxu0  ;;  %v5827_v49 = vadd.f32 %v5826_v41, %v5825_v46  ;;  %v6590_v17 = vadd.f32 %v6589_v15, %v6588_v1  ;;  %v6591_v2 = vpop.f32.mrb[158].mxu1 }
 0x5c7   : > { %v5346_v63 = vadd.f32 %v5345_v42, %v9071_v33  ;;  %v6735_v50 = vpop.f32.mrb[154].mxu0  ;;  %v6592_v3 = vpop.f32.mrb[159].mxu1 }
 0x5c8   : > { %6905 = vtanh.f32 %v5354_v56  ;;  %v5357_v20 = vadd.f32 %v6735_v50, %v9085_v11  ;;  %v5348_v54 = vpop.f32.mrb[155].mxu0  ;;  %5652 = vrot.lane.b32.xlu0 %v5354_v56, %s7091_s24  ;;  %v6593_v25 = vadd.f32 %v6592_v3, %v6591_v2  ;;  %5642 = vrot.lane.b32.xlu1 %v5333_v23, %s7091_s24  ;;  %v9180_v44 = vadd.f32 %v6590_v17, %v5080_v29 }
 0x5c9   : > { %6907 = vtanh.f32 %v5346_v63  ;;  %v5349_v13 = vadd.f32 %v5348_v54, %v9073_v9  ;;  %v9182_v33 = vpop.eup %6897  ;;  %v5096_v50 = vadd.f32 %v9089_v35, %v9017_v61  ;;  %v5099_v35 = vadd.f32 %v9093_v52, %v9017_v61 }
 0x5ca   : > { %6909 = vtanh.f32 %v5357_v20  ;;  %v9184_v10 = vpop.eup %6899  ;;  %v9186_v37 = vadd.f32 %v6593_v25, %v5083_v27  ;;  %v5797_v51 = vsel %vm364_vm0, %v9182_v33, 0.0 }
 0x5cb   : > { %6911 = vtanh.f32 %v5349_v13  ;;  %v9188_v11 = vpop.eup %6901  ;;  %v5795_v62 = vsel %vm364_vm0, %v9184_v10, 0.0 }
 0x5cc   : > { %5648 = vrot.lane.b32.xlu0 %v5346_v63, %s7091_s24  ;;  %v9193_v9 = vpop.eup %6903  ;;  %v5796_v22 = vadd.f32 %v5795_v62, %v5794_v53  ;;  %v6594_v48 = vpop.f32.mrb[160].mxu1  ;;  %5654 = vrot.lane.b32.xlu1 %v5357_v20, %s7091_s24  ;;  %v5830_v41 = vsel %vm364_vm0, %v9188_v11, 0.0 }
 0x5cd   : > { %v6738_v6 = vpop.f32.mrb[156].mxu0  ;;  %v5828_v36 = vsel %vm364_vm0, %v9193_v9, 0.0  ;;  %v6595_v30 = vpop.f32.mrb[161].mxu1 }
 0x5ce   : > { %v5370_v58 = vadd.f32 %v6738_v6, %v9107_v4  ;;  %v5361_v60 = vpop.f32.mrb[157].mxu0  ;;  %v5829_v21 = vadd.f32 %v5828_v36, %v5827_v49  ;;  %v5798_v57 = vadd.f32 %v5797_v51, %v5796_v22  ;;  %v6596_v23 = vadd.f32 %v6595_v30, %v6594_v48  ;;  %v6597_v55 = vpop.f32.mrb[162].mxu1 }
 0x5cf   : > { %v5362_v26 = vadd.f32 %v5361_v60, %v9095_v19  ;;  %v6739_v53 = vpop.f32.mrb[158].mxu0  ;;  %v6598_v14 = vpop.f32.mrb[163].mxu1 }
 0x5d0   : > { %6913 = vtanh.f32 %v5370_v58  ;;  %v5373_v1 = vadd.f32 %v6739_v53, %v9109_v18  ;;  %v5364_v4 = vpop.f32.mrb[159].mxu0  ;;  %5660 = vrot.lane.b32.xlu0 %v5370_v58, %s7091_s24  ;;  %v5831_v46 = vadd.f32 %v5830_v41, %v5829_v21  ;;  %v6599_v56 = vadd.f32 %v6598_v14, %v6597_v55  ;;  %5650 = vrot.lane.b32.xlu1 %v5349_v13, %s7091_s24 }
 0x5d1   : > { %6915 = vtanh.f32 %v5362_v26  ;;  %v5365_v19 = vadd.f32 %v5364_v4, %v9097_v34  ;;  %v9214_v31 = vadd.f32 %v6596_v23, %v5088_v16  ;;  %v5104_v41 = vadd.f32 %v9101_v12, %v9017_v61 }
 0x5d2   : > { %v9212_v15 = vpop.eup %6905  ;;  %6917 = vtanh.f32 %v5373_v1  ;;  %v9218_v18 = vadd.f32 %v6599_v56, %v5091_v7  ;;  %v5107_v12 = vadd.f32 %v9105_v40, %v9017_v61 }
 0x5d3   : > { %v9216_v42 = vpop.eup %6907  ;;  %6919 = vtanh.f32 %v5365_v19  ;;  %v5801_v27 = vsel %vm364_vm0, %v9212_v15, 0.0 }
 0x5d4   : > { %v9220_v29 = vpop.eup %6909  ;;  %v5799_v49 = vsel %vm364_vm0, %v9216_v42, 0.0  ;;  %5656 = vrot.lane.b32.xlu0 %v5362_v26, %s7091_s24  ;;  %v6600_v63 = vpop.f32.mrb[164].mxu1  ;;  %5662 = vrot.lane.b32.xlu1 %v5373_v1, %s7091_s24 }
 0x5d5   : > { %v9225_v34 = vpop.eup %6911  ;;  %v5800_v17 = vadd.f32 %v5799_v49, %v5798_v57  ;;  %v6742_v2 = vpop.f32.mrb[160].mxu0  ;;  %v5834_v51 = vsel %vm364_vm0, %v9220_v29, 0.0 }
 0x5d6   : > { %v5832_v20 = vsel %vm364_vm0, %v9225_v34, 0.0  ;;  %v5386_v3 = vadd.f32 %v6742_v2, %v9132_v39  ;;  %v6601_v54 = vpop.f32.mrb[165].mxu1  ;;  %v5377_v25 = vpop.f32.mrb[161].mxu0 }
 0x5d7   : > { %v5833_v13 = vadd.f32 %v5832_v20, %v5831_v46  ;;  %v5802_v62 = vadd.f32 %v5801_v27, %v5800_v17  ;;  %v6602_v22 = vadd.f32 %v6601_v54, %v6600_v63  ;;  %v5378_v48 = vadd.f32 %v5377_v25, %v9119_v0  ;;  %v6603_v6 = vpop.f32.mrb[166].mxu1  ;;  %v6743_v16 = vpop.f32.mrb[162].mxu0 }
 0x5d8   : > { %6921 = vtanh.f32 %v5386_v3  ;;  %v5389_v36 = vadd.f32 %v6743_v16, %v9135_v28  ;;  %v6604_v58 = vpop.f32.mrb[167].mxu1  ;;  %v5380_v39 = vpop.f32.mrb[163].mxu0  ;;  %5668 = vrot.lane.b32.xlu0 %v5386_v3, %s7091_s24  ;;  %5658 = vrot.lane.b32.xlu1 %v5365_v19, %s7091_s24 }
 0x5d9   : > { %v5835_v30 = vadd.f32 %v5834_v51, %v5833_v13  ;;  %6923 = vtanh.f32 %v5378_v48  ;;  %v6605_v60 = vadd.f32 %v6604_v58, %v6603_v6  ;;  %v5381_v0 = vadd.f32 %v5380_v39, %v9121_v5 }
 0x5da   : > { %v9244_v21 = vpop.eup %6913  ;;  %6925 = vtanh.f32 %v5389_v36  ;;  %v5257_v52 = vadd.f32 %v6602_v22, %v5096_v50  ;;  %v5112_v51 = vadd.f32 %v9113_v45, %v9017_v61 }
 0x5db   : > { %v9246_v57 = vpop.eup %6915  ;;  %6927 = vtanh.f32 %v5381_v0  ;;  %v5260_v23 = vadd.f32 %v6605_v60, %v5099_v35  ;;  %v5805_v1 = vsel %vm364_vm0, %v9244_v21, 0.0 }
 0x5dc   : > { %v9248_v28 = vpop.eup %6917  ;;  %v5803_v26 = vsel %vm364_vm0, %v9246_v57, 0.0  ;;  %5664 = vrot.lane.b32.xlu0 %v5378_v48, %s7091_s24  ;;  %v6606_v53 = vpop.f32.mrb[168].mxu1  ;;  %5670 = vrot.lane.b32.xlu1 %v5389_v36, %s7091_s24 }
 0x5dd   : > { %v9253_v55 = vpop.eup %6919  ;;  %v5804_v5 = vadd.f32 %v5803_v26, %v5802_v62  ;;  %v6746_v7 = vpop.f32.mrb[164].mxu0  ;;  %v5838_v27 = vsel %vm364_vm0, %v9248_v28, 0.0 }
 0x5de   : > { %v5836_v14 = vsel %vm364_vm0, %v9253_v55, 0.0  ;;  %v5402_v4 = vadd.f32 %v6746_v7, %v9180_v44  ;;  %v6607_v46 = vpop.f32.mrb[169].mxu1  ;;  %v5393_v56 = vpop.f32.mrb[165].mxu0 }
 0x5df   : > { %v5837_v19 = vadd.f32 %v5836_v14, %v5835_v30  ;;  %v5806_v49 = vadd.f32 %v5805_v1, %v5804_v5  ;;  %v6608_v17 = vadd.f32 %v6607_v46, %v6606_v53  ;;  %v5394_v63 = vadd.f32 %v5393_v56, %v9148_v59  ;;  %v6609_v2 = vpop.f32.mrb[170].mxu1  ;;  %v6747_v50 = vpop.f32.mrb[166].mxu0 }
 0x5e0   : > { %6929 = vtanh.f32 %v5402_v4  ;;  %v5405_v20 = vadd.f32 %v6747_v50, %v9186_v37  ;;  %v6610_v3 = vpop.f32.mrb[171].mxu1  ;;  %v5396_v44 = vpop.f32.mrb[167].mxu0  ;;  %5676 = vrot.lane.b32.xlu0 %v5402_v4, %s7091_s24  ;;  %5666 = vrot.lane.b32.xlu1 %v5381_v0, %s7091_s24  ;;  %v5115_v1 = vadd.f32 %v9117_v38, %v9017_v61 }
 0x5e1   : > { %v5839_v54 = vadd.f32 %v5838_v27, %v5837_v19  ;;  %6931 = vtanh.f32 %v5394_v63  ;;  %v6611_v25 = vadd.f32 %v6610_v3, %v6609_v2  ;;  %v5397_v59 = vadd.f32 %v5396_v44, %v9156_v47 }
 0x5e2   : > { %v9272_v13 = vpop.eup %6921  ;;  %6933 = vtanh.f32 %v5405_v20  ;;  %v5265_v40 = vadd.f32 %v6608_v17, %v5104_v41 }
 0x5e3   : > { %v9274_v62 = vpop.eup %6923  ;;  %6935 = vtanh.f32 %v5397_v59  ;;  %v5268_v22 = vadd.f32 %v6611_v25, %v5107_v12  ;;  %v5809_v36 = vsel %vm364_vm0, %v9272_v13, 0.0 }
 0x5e4   : > { %v9276_v37 = vpop.eup %6925  ;;  %v5807_v48 = vsel %vm364_vm0, %v9274_v62, 0.0  ;;  %5672 = vrot.lane.b32.xlu0 %v5394_v63, %s7091_s24  ;;  %v6612_v16 = vpop.f32.mrb[172].mxu1  ;;  %5678 = vrot.lane.b32.xlu1 %v5405_v20, %s7091_s24 }
 0x5e5   : > { %v9281_v6 = vpop.eup %6927  ;;  %v5808_v47 = vadd.f32 %v5807_v48, %v5806_v49  ;;  %v6750_v35 = vpop.f32.mrb[168].mxu0  ;;  %v5842_v45 = vsel %vm364_vm0, %v9276_v37, 0.0 }
 0x5e6   : > { %v5840_v58 = vsel %vm364_vm0, %v9281_v6, 0.0  ;;  %v5418_v39 = vadd.f32 %v6750_v35, %v5257_v52  ;;  %v6613_v30 = vpop.f32.mrb[173].mxu1  ;;  %v5409_v60 = vpop.f32.mrb[169].mxu0 }
 0x5e7   : > { %v5841_v0 = vadd.f32 %v5840_v58, %v5839_v54  ;;  %v6614_v26 = vadd.f32 %v6613_v30, %v6612_v16  ;;  %v5410_v5 = vadd.f32 %v5409_v60, %v9214_v31  ;;  %v6615_v53 = vpop.f32.mrb[174].mxu1  ;;  %v6751_v7 = vpop.f32.mrb[170].mxu0  ;;  %v5810_v41 = vadd.f32 %v5809_v36, %v5808_v47 }
 0x5e8   : > { %6937 = vtanh.f32 %v5418_v39  ;;  %v5421_v14 = vadd.f32 %v6751_v7, %v5260_v23  ;;  %v6616_v4 = vpop.f32.mrb[175].mxu1  ;;  %v5412_v46 = vpop.f32.mrb[171].mxu0  ;;  %5684 = vrot.lane.b32.xlu0 %v5418_v39, %s7091_s24  ;;  %5674 = vrot.lane.b32.xlu1 %v5397_v59, %s7091_s24 }
 0x5e9   : > { %6939 = vtanh.f32 %v5410_v5  ;;  %v6617_v52 = vadd.f32 %v6616_v4, %v6615_v53  ;;  %v5413_v56 = vadd.f32 %v5412_v46, %v9218_v18  ;;  %v5273_v31 = vadd.f32 %v6614_v26, %v5112_v51 }
 0x5ea   : > { %v9298_v19 = vpop.eup %6929  ;;  %6941 = vtanh.f32 %v5421_v14  ;;  %v5843_v61 = vadd.f32 %v5842_v45, %v5841_v0 }
 0x5eb   : > { %v9300_v38 = vpop.eup %6931  ;;  %6943 = vtanh.f32 %v5413_v56  ;;  %v5276_v49 = vadd.f32 %v6617_v52, %v5115_v1  ;;  %v5813_v20 = vsel %vm364_vm0, %v9298_v19, 0.0 }
 0x5ec   : > { %v9302_v23 = vpop.eup %6933  ;;  %v5811_v17 = vsel %vm364_vm0, %v9300_v38, 0.0  ;;  %5680 = vrot.lane.b32.xlu0 %v5410_v5, %s7091_s24  ;;  %v6754_v18 = vpop.f32.mrb[172].mxu0  ;;  %5686 = vrot.lane.b32.xlu1 %v5421_v14, %s7091_s24 }
 0x5ed   : > { %v9307_v63 = vpop.eup %6935  ;;  %v5812_v2 = vadd.f32 %v5811_v17, %v5810_v41  ;;  %v9312_v12 = vadd.f32 %v6754_v18, %v5273_v31  ;;  %v5425_v27 = vpop.f32.mrb[173].mxu0  ;;  %v5846_v47 = vsel %vm364_vm0, %v9302_v23, 0.0 }
 0x5ee   : > { %v5844_v50 = vsel %vm364_vm0, %v9307_v63, 0.0  ;;  %v5426_v3 = vadd.f32 %v5425_v27, %v5265_v40  ;;  %v6755_v44 = vpop.f32.mrb[174].mxu0  ;;  %v5503_v27 = vld [vmem:[%s9355_s28 + $0xf8] sm:$0xff] }
 0x5ef   : > { %v5845_v54 = vadd.f32 %v5844_v50, %v5843_v61  ;;  %v5814_v25 = vadd.f32 %v5813_v20, %v5812_v2  ;;  %6945 = vtanh.f32 %v9312_v12  ;;  %v9317_v59 = vadd.f32 %v6755_v44, %v5276_v49  ;;  %v5428_v48 = vpop.f32.mrb[175].mxu0  ;;  %v5502_v2 = vld [vmem:[%s9355_s28 + $0xf0] sm:$0xff] }
 0x5f0   : > { %6947 = vtanh.f32 %v5426_v3  ;;  %v5429_v16 = vadd.f32 %v5428_v48, %v5268_v22  ;;  %5688 = vrot.lane.b32.xlu0 %v5426_v3, %s7091_s24  ;;  %5682 = vrot.lane.b32.xlu1 %v5413_v56, %s7091_s24  ;;  %v5504_v48 = vmul.f32 1.442695, %v9152_v8  ;;  %v5474_v8 = vld [vmem:[%s9355_s28 + $0x10] sm:$0xff] }
 0x5f1   : > { %v5847_v35 = vadd.f32 %v5846_v47, %v5845_v54  ;;  %6949 = vtanh.f32 %v9317_v59  ;;  %v5508_v54 = vmul.f32 1.442695, %v9150_v24  ;;  %v5510_v47 = vmul.f32 1.442695, %v9158_v43 }
 0x5f2   : > { %v9323_v51 = vpop.eup %6937  ;;  %6951 = vtanh.f32 %v5429_v16 }
 0x5f3   : > { %v9326_v40 = vpop.eup %6939  ;;  %v5817_v60 = vsel %vm364_vm0, %v9323_v51, 0.0 }
 0x5f4   : > { %v9328_v36 = vpop.eup %6941  ;;  %v5815_v58 = vsel %vm364_vm0, %v9326_v40, 0.0  ;;  %5690 = vrot.lane.b32.xlu1 %v5429_v16, %s7091_s24  ;;  %v5512_v16 = vmul.f32 1.442695, %v9184_v10 }
 0x5f5   : > { %v9332_v39 = vpop.eup %6943  ;;  %v5816_v22 = vadd.f32 %v5815_v58, %v5814_v25  ;;  %v5850_v5 = vsel %vm364_vm0, %v9328_v36, 0.0  ;;  %v5506_v25 = vmul.f32 1.442695, %v9163_v32  ;;  %v5518_v58 = vmul.f32 1.442695, %v9188_v11 }
 0x5f6   : > { %v5848_v30 = vsel %vm364_vm0, %v9332_v39, 0.0  ;;  %v5524_v32 = vmul.f32 1.442695, %v9212_v15  ;;  %v5472_v15 = vld [vmem:[%s9355_s28] sm:$0xff] }
 0x5f7   : > { %v5849_v0 = vadd.f32 %v5848_v30, %v5847_v35  ;;  %v5818_v26 = vadd.f32 %v5817_v60, %v5816_v22  ;;  %v5516_v35 = vmul.f32 1.442695, %v9182_v33  ;;  %v5514_v22 = vmul.f32 1.442695, %v9193_v9  ;;  %v5473_v30 = vld [vmem:[%s9355_s28 + $0x8] sm:$0xff] }
 0x5f8   : > { %v5520_v9 = vmul.f32 1.442695, %v9216_v42  ;;  %v5476_v42 = vld [vmem:[%s9355_s28 + $0x20] sm:$0xff] }
 0x5f9   : > { %v5851_v53 = vadd.f32 %v5850_v5, %v5849_v0  ;;  %v6946_v7 = vpop.eup %6945  ;;  %v5526_v0 = vmul.f32 1.442695, %v9220_v29  ;;  %v5522_v29 = vmul.f32 1.442695, %v9225_v34  ;;  %v5534_v34 = vmul.f32 1.442695, %v9248_v28 }
 0x5fa   : > { %v9341_v41 = vpop.eup %6947  ;;  %v5564_v1 = vmul.f32 1.442695, %v6946_v7  ;;  %v5821_v31 = vsel %vm364_vm0, %v6946_v7, 0.0  ;;  %v5540_v28 = vmul.f32 1.442695, %v9272_v13 }
 0x5fb   : > { %v6950_v45 = vpop.eup %6949  ;;  %v5819_v14 = vsel %vm364_vm0, %v9341_v41, 0.0 }
 0x5fc   : > { %v9345_v4 = vpop.eup %6951  ;;  %v5566_v46 = vmul.f32 1.442695, %v6950_v45  ;;  %v5820_v52 = vadd.f32 %v5819_v14, %v5818_v26  ;;  %6953 = vpow2.f32 %v5564_v1  ;;  %v5854_v17 = vsel %vm364_vm0, %v6950_v45, 0.0  ;;  %v5475_v1 = vld [vmem:[%s9355_s28 + $0x18] sm:$0xff] }
 0x5fd   : > { %v5852_v56 = vsel %vm364_vm0, %v9345_v4, 0.0 }
 0x5fe   : > { %v5853_v61 = vadd.f32 %v5852_v56, %v5851_v53  ;;  %v5822_v49 = vadd.f32 %v5821_v31, %v5820_v52  ;;  %6955 = vpow2.f32 %v5566_v46  ;;  %v5532_v46 = vmul.f32 1.442695, %v9244_v21  ;;  %v5479_v21 = vld [vmem:[%s9355_s28 + $0x38] sm:$0xff] }
 0x5ff   : > { %6957 = vpow2.f32 %v5508_v54 }
 0x600   : > { %v5855_v18 = vadd.f32 %v5854_v17, %v5853_v61  ;;  %6959 = vpow2.f32 %v5506_v25 }
 0x601   : > { %6961 = vpow2.f32 %v5504_v48 }
 0x602   : > { %6963 = vpow2.f32 %v5510_v47  ;;  %v5482_v47 = vld [vmem:[%s9355_s28 + $0x50] sm:$0xff] }
 0x603   : > { %6965 = vpow2.f32 %v5512_v16 }
 0x604   : > { %6967 = vpow2.f32 %v5516_v35 }
 0x605   : > { %6969 = vpow2.f32 %v5518_v58  ;;  %v5477_v58 = vld [vmem:[%s9355_s28 + $0x28] sm:$0xff] }
 0x606   : > { %v6954_v50 = vpop.eup %6953  ;;  %6971 = vpow2.f32 %v5524_v32 }
 0x607   : > { %v9359_v20 = vmul.f32 %v6954_v50, %v5502_v2  ;;  %6973 = vpow2.f32 %v5514_v22  ;;  %v5528_v50 = vmul.f32 1.442695, %v9246_v57 }
 0x608   : > { %v6956_v3 = vpop.eup %6955  ;;  %6975 = vpow2.f32 %v5520_v9  ;;  %v5542_v9 = vmul.f32 1.442695, %v9276_v37  ;;  %v5548_v37 = vmul.f32 1.442695, %v9298_v19 }
 0x609   : > { %v9361_v44 = vmul.f32 %v6956_v3, %v5503_v27  ;;  %v6958_v24 = vpop.eup %6957  ;;  %6977 = vpow2.f32 %v5526_v0 }
 0x60a   : > { %v6960_v43 = vpop.eup %6959  ;;  %v5570_v10 = vmul.f32 %v6958_v24, %v5474_v8  ;;  %6979 = vpow2.f32 %v5532_v46  ;;  %v5530_v8 = vmul.f32 1.442695, %v9253_v55  ;;  %v5536_v55 = vmul.f32 1.442695, %v9274_v62 }
 0x60b   : > { %v6962_v33 = vpop.eup %6961  ;;  %v5569_v60 = vmul.f32 %v6960_v43, %v5473_v30  ;;  %6981 = vpow2.f32 %v5522_v29  ;;  %v5480_v30 = vld [vmem:[%s9355_s28 + $0x40] sm:$0xff] }
 0x60c   : > { %v5568_v5 = vmul.f32 %v6962_v33, %v5472_v15  ;;  %v6964_v53 = vpop.eup %6963  ;;  %6983 = vpow2.f32 %v5528_v50  ;;  %v5483_v15 = vld [vmem:[%s9355_s28 + $0x58] sm:$0xff] }
 0x60d   : > { %v6966_v45 = vpop.eup %6965  ;;  %v5571_v52 = vmul.f32 %v6964_v53, %v5475_v1  ;;  %6985 = vpow2.f32 %v5534_v34  ;;  %v5486_v53 = vld [vmem:[%s9355_s28 + $0x70] sm:$0xff]  ;;  %v5481_v1 = vld [vmem:[%s9355_s28 + $0x48] sm:$0xff] }
 0x60e   : > { %v6968_v56 = vpop.eup %6967  ;;  %v5572_v61 = vmul.f32 %v6966_v45, %v5476_v42  ;;  %6987 = vpow2.f32 %v5540_v28  ;;  %v5490_v34 = vld [vmem:[%s9355_s28 + $0x90] sm:$0xff]  ;;  %v5488_v28 = vld [vmem:[%s9355_s28 + $0x80] sm:$0xff] }
 0x60f   : > { %5856 = vadd.xlane.f32.xlu0 %v5855_v18  ;;  %v6970_v17 = vpop.eup %6969  ;;  %6989 = vpow2.f32 %v5530_v8 }
 0x610   : > { %v6972_v54 = vpop.eup %6971  ;;  %v5575_v48 = vmul.f32 %v6970_v17, %v5479_v21  ;;  %6991 = vpow2.f32 %v5536_v55 }
 0x611   : > { %v6974_v16 = vpop.eup %6973  ;;  %v5578_v32 = vmul.f32 %v6972_v54, %v5482_v47  ;;  %6993 = vpow2.f32 %v5542_v9  ;;  %v5546_v47 = vmul.f32 1.442695, %v9307_v63  ;;  %v5552_v63 = vmul.f32 1.442695, %v9326_v40 }
 0x612   : > { %v6976_v43 = vpop.eup %6975  ;;  %6995 = vpow2.f32 %v5548_v37 }
 0x613   : > { %v6978_v33 = vpop.eup %6977 }
 0x614   : > { %v6980_v0 = vpop.eup %6979 }
 0x615   : > { %v5582_v42 = vmul.f32 %v6980_v0, %v5486_v53 }
 0x618   : > { %5823 = vadd.xlane.f32.xlu1 %v5822_v49  ;;  %v5478_v49 = vld [vmem:[%s9355_s28 + $0x30] sm:$0xff] }
 0x619   : > { %v5574_v3 = vmul.f32 %v6968_v56, %v5478_v49  ;;  %v5484_v56 = vld [vmem:[%s9355_s28 + $0x60] sm:$0xff]  ;;  %v5487_v49 = vld [vmem:[%s9355_s28 + $0x78] sm:$0xff] }
 0x625   : > { %5692 = vrot.lane.b32.xlu0 %v9312_v12, %s7091_s24 }
 0x629   : > { %v5637_v11 = vpop.permute.xlu0 %5636  ;;  %5694 = vrot.lane.b32.xlu1 %v9317_v59, %s7091_s24 }
 0x62a   : > { %v5730_v12 = vadd.f32 %v5637_v11, %v5570_v10  ;;  %v5573_v10 = vmul.f32 %v6974_v16, %v5477_v58 }
 0x62c   : > { %5762 = vst.msk [vmem:[%s9380_s21 + $0x10] sm:$0xff] %vm364_vm0, %v5730_v12  ;;  %v5635_v26 = vpop.permute.xlu1 %5634 }
 0x62d   : > { %v5729_v7 = vadd.f32 %v5635_v26, %v5569_v60  ;;  %v5633_v59 = vpop.permute.xlu0 %5632  ;;  %v5576_v60 = vmul.f32 %v6976_v43, %v5480_v30 }
 0x62e   : > { %v5728_v14 = vadd.f32 %v5633_v59, %v5568_v5  ;;  %v5579_v5 = vmul.f32 %v6978_v33, %v5483_v15 }
 0x62f   : > { %5761 = vst.msk [vmem:[%s9380_s21 + $0x8] sm:$0xff] %vm364_vm0, %v5729_v7  ;;  %v6982_v7 = vpop.eup %6981 }
 0x630   : > { %5760 = vst.msk [vmem:[%s9380_s21] sm:$0xff] %vm364_vm0, %v5728_v14  ;;  %v5538_v14 = vmul.f32 1.442695, %v9281_v6  ;;  %v6984_v46 = vpop.eup %6983  ;;  %v5544_v6 = vmul.f32 1.442695, %v9300_v38 }
 0x631   : > { %v5639_v31 = vpop.permute.xlu0 %5638 }
 0x632   : > { %v5731_v18 = vadd.f32 %v5639_v31, %v5571_v52  ;;  %v5641_v2 = vpop.permute.xlu1 %5640  ;;  %v5577_v52 = vmul.f32 %v6982_v7, %v5481_v1  ;;  %v6986_v31 = vpop.eup %6985  ;;  %6997 = vpow2.f32 %v5538_v14  ;;  %v5492_v7 = vld [vmem:[%s9355_s28 + $0xa0] sm:$0xff]  ;;  %v5495_v1 = vld [vmem:[%s9355_s28 + $0xb8] sm:$0xff] }
 0x633   : > { %v5732_v27 = vadd.f32 %v5641_v2, %v5572_v61  ;;  %v5580_v2 = vmul.f32 %v6984_v46, %v5484_v56  ;;  %v6988_v21 = vpop.eup %6987  ;;  %6999 = vpow2.f32 %v5544_v6 }
 0x634   : > { %5763 = vst.msk [vmem:[%s9380_s21 + $0x18] sm:$0xff] %vm364_vm0, %v5731_v18  ;;  %v5550_v18 = vmul.f32 1.442695, %v9302_v23  ;;  %v5556_v23 = vmul.f32 1.442695, %v9323_v51  ;;  %v5586_v16 = vmul.f32 %v6988_v21, %v5490_v34 }
 0x635   : > { %5764 = vst.msk [vmem:[%s9380_s21 + $0x20] sm:$0xff] %vm364_vm0, %v5732_v27  ;;  %v5645_v25 = vpop.permute.xlu0 %5644  ;;  %v5583_v27 = vmul.f32 %v6986_v31, %v5487_v49 }
 0x636   : > { %v5734_v35 = vadd.f32 %v5645_v25, %v5574_v3  ;;  %v5647_v57 = vpop.permute.xlu1 %5646  ;;  %v6990_v3 = vpop.eup %6989  ;;  %v5485_v25 = vld [vmem:[%s9355_s28 + $0x68] sm:$0xff]  ;;  %7001 = vpow2.f32 %v5550_v18  ;;  %v5496_v18 = vld [vmem:[%s9355_s28 + $0xc0] sm:$0xff] }
 0x637   : > { %v5735_v24 = vadd.f32 %v5647_v57, %v5575_v48  ;;  %v5581_v58 = vmul.f32 %v6990_v3, %v5485_v25  ;;  %7003 = vpow2.f32 %v5556_v23 }
 0x638   : > { %5766 = vst.msk [vmem:[%s9380_s21 + $0x30] sm:$0xff] %vm364_vm0, %v5734_v35  ;;  %v6992_v35 = vpop.eup %6991  ;;  %7005 = vpow2.f32 %v5546_v47 }
 0x639   : > { %5767 = vst.msk [vmem:[%s9380_s21 + $0x38] sm:$0xff] %vm364_vm0, %v5735_v24  ;;  %v6994_v24 = vpop.eup %6993  ;;  %7007 = vpow2.f32 %v5552_v63 }
 0x63a   : > { %v5653_v22 = vpop.permute.xlu0 %5652  ;;  %v5643_v13 = vpop.permute.xlu1 %5642 }
 0x63b   : > { %v5738_v11 = vadd.f32 %v5653_v22, %v5578_v32  ;;  %v5733_v12 = vadd.f32 %v5643_v13, %v5573_v10  ;;  %v5491_v32 = vld [vmem:[%s9355_s28 + $0x98] sm:$0xff]  ;;  %v5558_v22 = vmul.f32 1.442695, %v9328_v36  ;;  %v5584_v10 = vmul.f32 %v6992_v35, %v5488_v28  ;;  %v6996_v30 = vpop.eup %6995  ;;  %v5494_v13 = vld [vmem:[%s9355_s28 + $0xb0] sm:$0xff]  ;;  %v5497_v35 = vld [vmem:[%s9355_s28 + $0xc8] sm:$0xff] }
 0x63c   : > { %v6998_v15 = vpop.eup %6997  ;;  %v5554_v36 = vmul.f32 1.442695, %v9332_v39  ;;  %v5590_v0 = vmul.f32 %v6996_v30, %v5494_v13 }
 0x63d   : > { %5770 = vst.msk [vmem:[%s9380_s21 + $0x50] sm:$0xff] %vm364_vm0, %v5738_v11  ;;  %5765 = vst.msk [vmem:[%s9380_s21 + $0x28] sm:$0xff] %vm364_vm0, %v5733_v12  ;;  %v5587_v11 = vmul.f32 %v6994_v24, %v5491_v32  ;;  %v5489_v12 = vld [vmem:[%s9355_s28 + $0x88] sm:$0xff]  ;;  %7009 = vpow2.f32 %v5558_v22 }
 0x63e   : > { %v5649_v26 = vpop.permute.xlu0 %5648  ;;  %v5655_v62 = vpop.permute.xlu1 %5654  ;;  %v5585_v53 = vmul.f32 %v6998_v15, %v5489_v12  ;;  %7011 = vpow2.f32 %v5554_v36  ;;  %v5501_v32 = vld [vmem:[%s9355_s28 + $0xe8] sm:$0xff] }
 0x63f   : > { %v5736_v59 = vadd.f32 %v5649_v26, %v5576_v60  ;;  %v5739_v45 = vadd.f32 %v5655_v62, %v5579_v5  ;;  %v5560_v60 = vmul.f32 1.442695, %v9341_v41  ;;  %v7000_v26 = vpop.eup %6999  ;;  %v5562_v41 = vmul.f32 1.442695, %v9345_v4 }
 0x641   : > { %5768 = vst.msk [vmem:[%s9380_s21 + $0x40] sm:$0xff] %vm364_vm0, %v5736_v59  ;;  %5771 = vst.msk [vmem:[%s9380_s21 + $0x58] sm:$0xff] %vm364_vm0, %v5739_v45  ;;  %v7002_v59 = vpop.eup %7001  ;;  %v5588_v45 = vmul.f32 %v7000_v26, %v5492_v7  ;;  %7013 = vpow2.f32 %v5560_v60 }
 0x642   : > { %v5661_v29 = vpop.permute.xlu0 %5660  ;;  %v5651_v19 = vpop.permute.xlu1 %5650  ;;  %v5591_v46 = vmul.f32 %v7002_v59, %v5495_v1  ;;  %7015 = vpow2.f32 %v5562_v41 }
 0x643   : > { %v5742_v61 = vadd.f32 %v5661_v29, %v5582_v42  ;;  %v5737_v17 = vadd.f32 %v5651_v19, %v5577_v52  ;;  %v7004_v14 = vpop.eup %7003  ;;  %v5498_v29 = vld [vmem:[%s9355_s28 + $0xd0] sm:$0xff] }
 0x644   : > { %v7006_v52 = vpop.eup %7005  ;;  %v5594_v4 = vmul.f32 %v7004_v14, %v5498_v29 }
 0x645   : > { %5774 = vst.msk [vmem:[%s9380_s21 + $0x70] sm:$0xff] %vm364_vm0, %v5742_v61  ;;  %5769 = vst.msk [vmem:[%s9380_s21 + $0x48] sm:$0xff] %vm364_vm0, %v5737_v17  ;;  %v5493_v61 = vld [vmem:[%s9355_s28 + $0xa8] sm:$0xff]  ;;  %v7008_v49 = vpop.eup %7007 }
 0x646   : > { %v5657_v50 = vpop.permute.xlu0 %5656  ;;  %v5663_v38 = vpop.permute.xlu1 %5662  ;;  %v5589_v17 = vmul.f32 %v7006_v52, %v5493_v61  ;;  %v5592_v3 = vmul.f32 %v7008_v49, %v5496_v18 }
 0x647   : > { %v5740_v54 = vadd.f32 %v5657_v50, %v5580_v2  ;;  %v5743_v48 = vadd.f32 %v5663_v38, %v5583_v27  ;;  %v7010_v2 = vpop.eup %7009  ;;  %v5499_v27 = vld [vmem:[%s9355_s28 + $0xd8] sm:$0xff] }
 0x648   : > { %v5595_v25 = vmul.f32 %v7010_v2, %v5499_v27 }
 0x649   : > { %5772 = vst.msk [vmem:[%s9380_s21 + $0x60] sm:$0xff] %vm364_vm0, %v5740_v54  ;;  %5775 = vst.msk [vmem:[%s9380_s21 + $0x78] sm:$0xff] %vm364_vm0, %v5743_v48  ;;  %v7012_v54 = vpop.eup %7011 }
 0x64a   : > { %v5669_v57 = vpop.permute.xlu0 %5668  ;;  %v5659_v51 = vpop.permute.xlu1 %5658  ;;  %v5593_v28 = vmul.f32 %v7012_v54, %v5497_v35 }
 0x64b   : > { %v5746_v8 = vadd.f32 %v5669_v57, %v5586_v16  ;;  %v5741_v43 = vadd.f32 %v5659_v51, %v5581_v58  ;;  %v7014_v23 = vpop.eup %7013  ;;  %v5500_v16 = vld [vmem:[%s9355_s28 + $0xe0] sm:$0xff]  ;;  %s7092_s28 = smov [#allocation4]  }
 0x64c   : > { %v5596_v58 = vmul.f32 %v7014_v23, %v5500_v16  ;;  %v7016_v24 = vpop.eup %7015  ;;  %s7021_s29 = sshll.u32 %s7092_s28, 4  ;;  %s7022_s29 = int_to_ptr.vmem [resolvable:$false] %s7021_s29 }
 0x64d   : > { %5778 = vst.msk [vmem:[%s9380_s21 + $0x90] sm:$0xff] %vm364_vm0, %v5746_v8  ;;  %5773 = vst.msk [vmem:[%s9380_s21 + $0x68] sm:$0xff] %vm364_vm0, %v5741_v43  ;;  %v5597_v22 = vmul.f32 %v7016_v24, %v5501_v32  ;;  %s7023_s14 = scalar_lea.vmem %s7022_s29, 32  ;;  %p7024_p0 = scmp.lt.s32.totalorder %s9503_s25, %s7022_s29 }
 0x64e   : > { %v5665_v33 = vpop.permute.xlu0 %5664  ;;  %v5671_v40 = vpop.permute.xlu1 %5670  ;;  %p7025_p1 = scmp.lt.s32.totalorder %s7023_s14, %s7017_s27 }
 0x64f   : > { %v5744_v55 = vadd.f32 %v5665_v33, %v5584_v10  ;;  %v5747_v9 = vadd.f32 %v5671_v40, %v5587_v11  ;;  %v5860_v33 = vlaneseq }
 0x650   : > { %p7026_p2 = por %p7025_p1, %p7024_p0 }
 0x651   : > { %5776 = vst.msk [vmem:[%s9380_s21 + $0x80] sm:$0xff] %vm364_vm0, %v5744_v55  ;;  %5779 = vst.msk [vmem:[%s9380_s21 + $0x98] sm:$0xff] %vm364_vm0, %v5747_v9  ;;  %v5861_v11 = vand.u32 127, %v5860_v33  ;;  %v5863_v15 = vshrl.u32 %v5860_v33, 7 }
 0x652   : > { %v5677_v5 = vpop.permute.xlu0 %5676  ;;  %v5667_v39 = vpop.permute.xlu1 %5666  ;;  %p7027_p3 = pnand %p7026_p2, %p7020_p13 }
 0x653   : > { %v5750_v62 = vadd.f32 %v5677_v5, %v5590_v0  ;;  %v5745_v37 = vadd.f32 %v5667_v39, %v5585_v53  ;;  %v5866_v55 = vadd.s32 4294967288, %v5861_v11  ;;  %v5864_v9 = vsub.s32 %v5861_v11, %v5863_v15 }
 0x655   : > { %5782 = vst.msk [vmem:[%s9380_s21 + $0xb0] sm:$0xff] %vm364_vm0, %v5750_v62  ;;  %5777 = vst.msk [vmem:[%s9380_s21 + $0x88] sm:$0xff] %vm364_vm0, %v5745_v37  ;;  %v5869_v36 = vsub.s32 %v5866_v55, %v5863_v15 }
 0x656   : > { %v5673_v42 = vpop.permute.xlu0 %5672  ;;  %v5679_v31 = vpop.permute.xlu1 %5678 }
 0x657   : > { %v5748_v56 = vadd.f32 %v5673_v42, %v5588_v45  ;;  %v5751_v19 = vadd.f32 %v5679_v31, %v5591_v46 }
 0x659   : > { %5780 = vst.msk [vmem:[%s9380_s21 + $0xa0] sm:$0xff] %vm364_vm0, %v5748_v56  ;;  %5783 = vst.msk [vmem:[%s9380_s21 + $0xb8] sm:$0xff] %vm364_vm0, %v5751_v19 }
 0x65a   : > { %v5685_v6 = vpop.permute.xlu0 %5684  ;;  %v5675_v50 = vpop.permute.xlu1 %5674 }
 0x65b   : > { %v5754_v21 = vadd.f32 %v5685_v6, %v5594_v4  ;;  %v5749_v34 = vadd.f32 %v5675_v50, %v5589_v17 }
 0x65d   : > { %5786 = vst.msk [vmem:[%s9380_s21 + $0xd0] sm:$0xff] %vm364_vm0, %v5754_v21  ;;  %5781 = vst.msk [vmem:[%s9380_s21 + $0xa8] sm:$0xff] %vm364_vm0, %v5749_v34 }
 0x65e   : > { %v5681_v38 = vpop.permute.xlu0 %5680  ;;  %v5687_v47 = vpop.permute.xlu1 %5686 }
 0x65f   : > { %v5752_v48 = vadd.f32 %v5681_v38, %v5592_v3  ;;  %v5755_v57 = vadd.f32 %v5687_v47, %v5595_v25 }
 0x661   : > { %5784 = vst.msk [vmem:[%s9380_s21 + $0xc0] sm:$0xff] %vm364_vm0, %v5752_v48  ;;  %5787 = vst.msk [vmem:[%s9380_s21 + $0xd8] sm:$0xff] %vm364_vm0, %v5755_v57 }
 0x662   : > { %v5689_v8 = vpop.permute.xlu0 %5688  ;;  %v5683_v51 = vpop.permute.xlu1 %5682 }
 0x663   : > { %v5756_v63 = vadd.f32 %v5689_v8, %v5596_v58  ;;  %v5753_v43 = vadd.f32 %v5683_v51, %v5593_v28 }
 0x665   : > { %5788 = vst.msk [vmem:[%s9380_s21 + $0xe0] sm:$0xff] %vm364_vm0, %v5756_v63  ;;  %5785 = vst.msk [vmem:[%s9380_s21 + $0xc8] sm:$0xff] %vm364_vm0, %v5753_v43 }
 0x666   : > { %v5691_v10 = vpop.permute.xlu1 %5690 }
 0x667   : > { %v5757_v30 = vadd.f32 %v5691_v10, %v5597_v22 }
 0x669   : > { %5789 = vst.msk [vmem:[%s9380_s21 + $0xe8] sm:$0xff] %vm364_vm0, %v5757_v30 }
 0x69c   : > { %v5857_v13 = vpop.xlane.xlu0 %5856 }
 0x69d   : > { %v5870_v0 = vrot.slane %v5857_v13, %v5869_v36 }
 0x6a0   : > { %v5693_v40 = vpop.permute.xlu0 %5692 }
 0x6a1   : > { %v5758_v12 = vadd.f32 %v5693_v40, %v9359_v20 }
 0x6a3   : > { %5790 = vst.msk [vmem:[%s9380_s21 + $0xf0] sm:$0xff] %vm364_vm0, %v5758_v12 }
 0x6a5   : > { %v5824_v60 = vpop.xlane.xlu1 %5823 }
 0x6a6   : > { %v5865_v26 = vrot.slane %v5824_v60, %v5864_v9 }
 0x6a8   : > { %v5872_v20 = vsel %vm5871_vm15, %v5870_v0, %v5865_v26 }
 0x6a9   : > { %v5695_v5 = vpop.permute.xlu1 %5694  ;;  %5875 = vst.msk [vmem:[%s347_s17] sm:$0x1] %vm5874_vm1, %v5872_v20 }
 0x6aa   : > { %v5759_v53 = vadd.f32 %v5695_v5, %v9361_v44 }
 0x6ab   : > { %7030 = shalt.err (!%p7027_p3)
}
 0x6ac   : > { %s7031_s22 = scalar_lea.hbm %s9501_s26, 16  ;;  %s7035_s23 = scalar_lea.hbm %s9555_s9, 32 }
 0x6ad   : > { %p7032_p4 = scmp.ne.s32.totalorder %s9501_s26, %s7031_s22  ;;  %p7036_p9 = scmp.lt.u32.totalorder %s9501_s26, %s9555_s9 }
 0x6ae   : > { %p7037_p10 = scmp.lt.u32.totalorder %s7035_s23, %s7031_s22  ;;  %p7039_p12 = scmp.lt.u32.totalorder %s7031_s22, %s9501_s26 }
 0x6af   : > { %p7033_p7 = pnand %p7032_p4, %p7181_p5 }
 0x6b0   : > { %p7038_p11 = por %p7037_p10, %p7036_p9 }
 0x6b1   : > { %p7034_p8 = pneg %p7033_p7 }
 0x6b2   : > { %p7040_p13 = por %p7039_p12, %p7038_p11 }
 0x6b4   : > { %p7041_p0 = pnand %p7040_p13, %p7034_p8 }
 0x6b6   : > { %7044 = shalt.err (!%p7041_p0)
}
 0x6b7   : > { %6764 = dma.vmem_to_hbm [thread:$0]  (%p7181_p5), %s9503_s25, 16, %s9501_s26, %s5882_s13   ;;  %5791 = vst.msk [vmem:[%s9380_s21 + $0xf8] sm:$0xff] %vm364_vm0, %v5759_v53 }
 0x6b8 PF: > { %p6770_p1 = scmp.ge.s32.totalorder %s7079_s12, 2  ;;  %s5917_s27 = sand.u32 1, %s7067_s30  }
 0x6b9   : > { %s5918_s29 = scalar_lea.sflag [#allocation5], %s5917_s27 }
 0x6ba   : > { %p6767_p2 = pnand %p6770_p1, %p7185_p6 }
 0x6bc   : > { %7062 = dma.done.wait (!%p6767_p2), %s5918_s29, 16  }
 0x6bd   : > { %7064 = vsyncadd (!%p6767_p2), %s5918_s29, 4294967280  ;;  %p20_p3 = scmp.ge.s32.totalorder %s7168_s15, 4   ;;  %s9558_s30 = smov %s7071_s10 }
 0x6be   : > { %s9559_s10 = smov %s7075_s11  ;;  %s9560_s11 = smov %s7179_s18 }
 0x6bf   : > { %s9561_s12 = smov %s7168_s15  ;;  %22 = sbr.rel (!%p20_p3) target bundleno = 3 (0x3), region = 108 }
 0x6c6   :  { %5922 = vsyncpa [#allocation5], 1 }
 0x6c7   :  { %5924 = vsyncpa [#allocation5 + $0x1], 1 }

</bundles_post_ra>
